<compile_context>
chip_gen: v6e
topology: v6e:2x2x1
jax: 0.10.0
libtpu: 0.0.40
codegen_flags: <defaults>
</compile_context>

<pallas_src>
import functools

import jax
import jax.numpy as jnp
from jax.experimental import pallas as pl
from jax.experimental.pallas import tpu as pltpu

_HALO = 8  # sublane-aligned halo window (rows) fetched above/below each row tile


# ----------------------------------------------------------------------------
# Kernel: one (batch, row-tile) program.
# ----------------------------------------------------------------------------
def _resconv_kernel(x_ref, xt_ref, xb_ref,
                    w1_ref, s1_ref, t1_ref, w2_ref, s2_ref, t2_ref,
                    o_ref, *, TH, WC):
    t = pl.program_id(1)
    T = pl.num_programs(1)
    H = TH * T
    f32, bf16 = jnp.float32, jnp.bfloat16

    x = x_ref[0]                                               # (TH, WC) f32 (residual)

    # conv1 input = relu(x) on image rows t*TH-2 .. t*TH+TH+1 (2-row halo each side),
    # with rows outside the image forced to zero (conv1's vertical zero padding).
    top = jnp.maximum(xt_ref[0, _HALO - 2:_HALO, :], 0.0)      # rows t*TH-2, t*TH-1
    bot = jnp.maximum(xb_ref[0, 0:2, :], 0.0)                  # rows t*TH+TH, t*TH+TH+1
    top = jnp.where(t > 0, top, 0.0)
    bot = jnp.where(t < T - 1, bot, 0.0)
    xp = jnp.concatenate([top, jnp.maximum(x, 0.0), bot], axis=0)   # (TH+4, WC) f32

    # conv1 (+ folded BN1 + relu) on TH+2 output rows (1 halo row each side for conv2):
    # three accumulating band matmuls (dy taps; dx taps + L/R padding live in the weights).
    acc = jnp.dot(xp[0:TH + 2].astype(bf16), w1_ref[0], preferred_element_type=f32)
    acc = acc + jnp.dot(xp[1:TH + 3].astype(bf16), w1_ref[1], preferred_element_type=f32)
    acc = acc + jnp.dot(xp[2:TH + 4].astype(bf16), w1_ref[2], preferred_element_type=f32)
    h1 = jnp.maximum(acc * s1_ref[...] + t1_ref[...], 0.0)     # (TH+2, WC) f32

    # conv2's vertical zero padding: h1 rows outside the image must be exactly zero.
    row = t * TH - 1 + jax.lax.broadcasted_iota(jnp.int32, (TH + 2, 1), 0)
    h1 = jnp.where((row >= 0) & (row < H), h1, 0.0).astype(bf16)

    # conv2 (+ folded BN2) + residual.
    acc2 = jnp.dot(h1[0:TH], w2_ref[0], preferred_element_type=f32)
    acc2 = acc2 + jnp.dot(h1[1:TH + 1], w2_ref[1], preferred_element_type=f32)
    acc2 = acc2 + jnp.dot(h1[2:TH + 2], w2_ref[2], preferred_element_type=f32)
    o_ref[0] = x + (acc2 * s2_ref[...] + t2_ref[...])          # lane-dense f32 store


# ----------------------------------------------------------------------------
# Host-side helpers.
# ----------------------------------------------------------------------------
def _band_weights(w_hwio, W):
    """Fold the dx taps and the left/right zero padding of a 3x3 conv into three
    (W*Cin, W*Cout) band matrices:  out_row[h] = sum_dy  in_row[h+dy-1] @ B[dy]."""
    KH, KW, Cin, Cout = w_hwio.shape
    assert KH == 3 and KW == 3
    wi = jnp.arange(W)[:, None]          # input column
    wo = jnp.arange(W)[None, :]          # output column
    dx = wi - wo + 1
    valid = (dx >= 0) & (dx < KW)
    dx_c = jnp.clip(dx, 0, KW - 1)
    mats = []
    for dy in range(KH):
        blk = jnp.where(valid[:, :, None, None], w_hwio[dy][dx_c], 0.0)  # (W,W,Cin,Cout)
        mats.append(jnp.transpose(blk, (0, 2, 1, 3)).reshape(W * Cin, W * Cout))
    return jnp.stack(mats)               # (3, W*Cin, W*Cout)


def _vmem_capacity_bytes():
    try:
        cap = getattr(pltpu.get_tpu_info(), "vmem_capacity_bytes", None)
        if cap:
            return int(cap)
    except Exception:
        pass
    return 64 * 1024 * 1024              # conservative default (v7x per-TensorCore)


def _pick_row_tile(H, WC, budget_bytes):
    """Largest row tile (multiple of 8, dividing H) whose double-buffer-aware VMEM
    footprint fits the budget, preferring >= 2 row tiles (keeps both v7x TCs busy)."""
    def footprint(th):
        pipelined = 2 * (2 * th * WC * 4 + 2 * _HALO * WC * 4)  # x/out + halos, x2 buffers
        live = ((th + 4) * WC * 4          # xp (f32)
                + 2 * (th + 2) * WC * 4    # conv accumulators / h1 (f32)
                + 2 * (th + 2) * WC * 2    # bf16 matmul operand copies
                + th * WC * 4)             # residual/out tile
        return pipelined + live
    cands = [d for d in range(8, H + 1, 8) if H % d == 0]
    assert cands, f"H={H} must be a multiple of 8"
    pref = [d for d in cands if H // d >= 2] or cands
    fits = [d for d in pref if footprint(d) <= budget_bytes]
    return max(fits) if fits else min(pref)


def res_conv_block_nhwc(x_nhwc, params, *, row_tile=None):
    """Fused ResConvBlock forward (eval-mode BN).  NHWC in -> NHWC out."""
    B, H, W, C = x_nhwc.shape
    WC = W * C
    assert WC % 128 == 0, "W*C must be a multiple of 128 for the lane-dense layout"
    assert H % 8 == 0, "row tiling assumes H is a multiple of 8"

    cap = _vmem_capacity_bytes()
    w_bytes = 2 * 2 * 3 * WC * WC * 2            # two bf16 (3,WC,WC) stacks, x2 buffering
    assert w_bytes <= cap // 2, "W*C too large for the band-matrix path (see TODO)"
    TH = row_tile or _pick_row_tile(H, WC, max(cap // 3 - w_bytes, 1 << 20))
    assert H % TH == 0 and TH % 8 == 0
    T = H // TH
    nbh = TH // _HALO                            # halo-window blocks per row tile
    nbh_max = H // _HALO - 1

    xf = x_nhwc.reshape(B, H, WC)                # lane-dense rows (metadata-only reshape)
    w1b = _band_weights(params["w1"], W).astype(jnp.bfloat16)
    w2b = _band_weights(params["w2"], W).astype(jnp.bfloat16)
    s1 = jnp.tile(params["scale1"], W).reshape(1, WC)
    t1 = jnp.tile(params["shift1"], W).reshape(1, WC)
    s2 = jnp.tile(params["scale2"], W).reshape(1, WC)
    t2 = jnp.tile(params["shift2"], W).reshape(1, WC)

    kern = functools.partial(_resconv_kernel, TH=TH, WC=WC)

    out = pl.pallas_call(
        kern,
        out_shape=jax.ShapeDtypeStruct((B, H, WC), jnp.float32),
        grid=(B, T),
        in_specs=[
            # current row tile (conv input + residual)
            pl.BlockSpec((1, TH, WC), lambda b, t: (b, t, 0)),
            # 8-row window ending just above the tile (clamped at the top border)
            pl.BlockSpec((1, _HALO, WC),
                         lambda b, t: (b, jnp.maximum(t * nbh - 1, 0), 0)),
            # 8-row window starting just below the tile (clamped at the bottom border)
            pl.BlockSpec((1, _HALO, WC),
                         lambda b, t: (b, jnp.minimum((t + 1) * nbh, nbh_max), 0)),
            pl.BlockSpec((3, WC, WC), lambda b, t: (0, 0, 0)),   # conv1 band weights
            pl.BlockSpec((1, WC), lambda b, t: (0, 0)),          # BN1 scale (tiled over W)
            pl.BlockSpec((1, WC), lambda b, t: (0, 0)),          # BN1 shift
            pl.BlockSpec((3, WC, WC), lambda b, t: (0, 0, 0)),   # conv2 band weights
            pl.BlockSpec((1, WC), lambda b, t: (0, 0)),          # BN2 scale
            pl.BlockSpec((1, WC), lambda b, t: (0, 0)),          # BN2 shift
        ],
        out_specs=pl.BlockSpec((1, TH, WC), lambda b, t: (b, t, 0)),
        compiler_params=pltpu.CompilerParams(
            dimension_semantics=("parallel", "parallel"),
            vmem_limit_bytes=int(min(cap * 3 // 4, 100 * 1024 * 1024)),
        ),
    )(xf, xf, xf, w1b, s1, t1, w2b, s2, t2)

    return out.reshape(B, H, W, C)


def res_conv_block(x_nchw, params, *, row_tile=None):
    """PyTorch-parity entry point: (B, C, H, W) -> (B, C, H, W).

    NOTE: the two transposes below exist only because the PyTorch module is NCHW; an
    NHWC-native caller should call res_conv_block_nhwc directly and skip both full HBM
    round trips (per the perf review)."""
    x = jnp.transpose(x_nchw, (0, 2, 3, 1))
    y = res_conv_block_nhwc(x, params, row_tile=row_tile)
    return jnp.transpose(y, (0, 3, 1, 2))


def _fold_bn(gamma, beta, mean, var, eps=1e-5):
    scale = gamma * jax.lax.rsqrt(var + eps)
    return scale, beta - mean * scale


if __name__ == "__main__":
    B, C, H, W = 2, 32, 16, 16
    key = jax.random.PRNGKey(0)
    keys = iter(jax.random.split(key, 16))

    def nrm(kk, shape, s=0.1):
        return s * jax.random.normal(kk, shape, dtype=jnp.float32)

    x = jax.random.normal(next(keys), (B, C, H, W), dtype=jnp.float32)

    params = {}
    for i in (1, 2):
        # conv3x3 is the ResNet-style helper: 3x3, pad=1, bias=False.  Weights in HWIO.
        params[f"w{i}"] = nrm(next(keys), (3, 3, C, C))
        gamma = 1.0 + nrm(next(keys), (C,))
        beta = nrm(next(keys), (C,))
        mean = nrm(next(keys), (C,))
        var = 1.0 + 0.1 * jax.random.uniform(next(keys), (C,))
        params[f"scale{i}"], params[f"shift{i}"] = _fold_bn(gamma, beta, mean, var)

    out = jax.block_until_ready(res_conv_block(x, params))

    # Pure-JAX f32 reference (eval-mode BatchNorm folded the same way).
    def ref_fwd(x_nchw):
        xh = jnp.transpose(x_nchw, (0, 2, 3, 1))

        def conv(inp, w):
            return jax.lax.conv_general_dilated(
                inp, w, window_strides=(1, 1), padding=((1, 1), (1, 1)),
                dimension_numbers=("NHWC", "HWIO", "NHWC"),
                precision=jax.lax.Precision.HIGHEST)

        h = conv(jax.nn.relu(xh), params["w1"]) * params["scale1"] + params["shift1"]
        h = conv(jax.nn.relu(h), params["w2"]) * params["scale2"] + params["shift2"]
        return jnp.transpose(xh + h, (0, 3, 1, 2))

    ref = jax.block_until_ready(ref_fwd(x))

    assert out.shape == (B, C, H, W), out.shape
    assert bool(jnp.all(jnp.isfinite(out)))
    err = float(jnp.max(jnp.abs(out - ref)))
    # Kernel uses bf16 MXU operands with f32 accumulation vs an f32 HIGHEST reference.
    assert err < 5e-2, f"max abs error vs reference: {err}"
    print("KERNEL_OK")
</pallas_src>

<mosaic_0001>
module attributes {stable_mosaic.version = 11 : i64} {
  func.func @_resconv_kernel(%arg0: i32, %arg1: i32, %arg2: memref<1x8x512xf32, #tpu.memory_space<vmem>>, %arg3: memref<1x8x512xf32, #tpu.memory_space<vmem>>, %arg4: memref<1x8x512xf32, #tpu.memory_space<vmem>>, %arg5: memref<3x512x512xbf16, #tpu.memory_space<vmem>>, %arg6: memref<1x512xf32, #tpu.memory_space<vmem>>, %arg7: memref<1x512xf32, #tpu.memory_space<vmem>>, %arg8: memref<3x512x512xbf16, #tpu.memory_space<vmem>>, %arg9: memref<1x512xf32, #tpu.memory_space<vmem>>, %arg10: memref<1x512xf32, #tpu.memory_space<vmem>>, %arg11: memref<1x8x512xf32, #tpu.memory_space<vmem>>) attributes {dimension_semantics = [#tpu.dimension_semantics<parallel>, #tpu.dimension_semantics<parallel>], iteration_bounds = array<i64: 2, 2>, scalar_prefetch = 0 : i64, scratch_operands = 0 : i64, tpu.core_type = #tpu.core_type<tc>, window_params = [{transform_indices = @transform_0, window_bounds = array<i64: 1, 8, 512>}, {transform_indices = @transform_1, window_bounds = array<i64: 1, 8, 512>}, {transform_indices = @transform_2, window_bounds = array<i64: 1, 8, 512>}, {pipeline_mode = #tpu.pipeline_mode<synchronous>, transform_indices = @transform_3, window_bounds = array<i64: 3, 512, 512>}, {pipeline_mode = #tpu.pipeline_mode<synchronous>, transform_indices = @transform_4, window_bounds = array<i64: 1, 512>}, {pipeline_mode = #tpu.pipeline_mode<synchronous>, transform_indices = @transform_5, window_bounds = array<i64: 1, 512>}, {pipeline_mode = #tpu.pipeline_mode<synchronous>, transform_indices = @transform_6, window_bounds = array<i64: 3, 512, 512>}, {pipeline_mode = #tpu.pipeline_mode<synchronous>, transform_indices = @transform_7, window_bounds = array<i64: 1, 512>}, {pipeline_mode = #tpu.pipeline_mode<synchronous>, transform_indices = @transform_8, window_bounds = array<i64: 1, 512>}, {transform_indices = @transform_9, window_bounds = array<i64: 1, 8, 512>}]} {
    %c0 = arith.constant 0 : index
    %c0_0 = arith.constant 0 : index
    %c0_1 = arith.constant 0 : index
    %0 = vector.load %arg2[%c0, %c0_0, %c0_1] : memref<1x8x512xf32, #tpu.memory_space<vmem>>, vector<1x8x512xf32>
    %1 = vector.shape_cast %0 : vector<1x8x512xf32> to vector<8x512xf32>
    %c0_2 = arith.constant 0 : index
    %c6 = arith.constant 6 : index
    %c0_3 = arith.constant 0 : index
    %2 = vector.load %arg3[%c0_2, %c6, %c0_3] : memref<1x8x512xf32, #tpu.memory_space<vmem>>, vector<1x2x512xf32>
    %3 = vector.shape_cast %2 : vector<1x2x512xf32> to vector<2x512xf32>
    %cst = arith.constant 0.000000e+00 : f32
    %4 = vector.broadcast %cst : f32 to vector<2x512xf32>
    %5 = arith.maximumf %3, %4 : vector<2x512xf32>
    %c0_4 = arith.constant 0 : index
    %c0_5 = arith.constant 0 : index
    %c0_6 = arith.constant 0 : index
    %6 = vector.load %arg4[%c0_4, %c0_5, %c0_6] : memref<1x8x512xf32, #tpu.memory_space<vmem>>, vector<1x2x512xf32>
    %7 = vector.shape_cast %6 : vector<1x2x512xf32> to vector<2x512xf32>
    %cst_7 = arith.constant 0.000000e+00 : f32
    %8 = vector.broadcast %cst_7 : f32 to vector<2x512xf32>
    %9 = arith.maximumf %7, %8 : vector<2x512xf32>
    %c0_i32 = arith.constant 0 : i32
    %10 = arith.cmpi sgt, %arg1, %c0_i32 : i32
    %cst_8 = arith.constant 0.000000e+00 : f32
    %11 = vector.broadcast %cst_8 : f32 to vector<2x512xf32>
    %12 = arith.select %10, %5, %11 : vector<2x512xf32>
    %c1_i32 = arith.constant 1 : i32
    %13 = arith.cmpi slt, %arg1, %c1_i32 : i32
    %cst_9 = arith.constant 0.000000e+00 : f32
    %14 = vector.broadcast %cst_9 : f32 to vector<2x512xf32>
    %15 = arith.select %13, %9, %14 : vector<2x512xf32>
    %cst_10 = arith.constant 0.000000e+00 : f32
    %16 = vector.broadcast %cst_10 : f32 to vector<8x512xf32>
    %17 = arith.maximumf %1, %16 : vector<8x512xf32>
    %18 = tpu.concatenate %12, %17, %15 in 0 : vector<2x512xf32>, vector<8x512xf32>, vector<2x512xf32> -> vector<12x512xf32>
    %19 = vector.extract_strided_slice %18 {offsets = [0, 0], sizes = [10, 512], strides = [1, 1]} : vector<12x512xf32> to vector<10x512xf32>
    %20 = arith.truncf %19 : vector<10x512xf32> to vector<10x512xbf16>
    %c0_11 = arith.constant 0 : index
    %c0_12 = arith.constant 0 : index
    %c0_13 = arith.constant 0 : index
    %21 = vector.load %arg5[%c0_11, %c0_12, %c0_13] : memref<3x512x512xbf16, #tpu.memory_space<vmem>>, vector<1x512x512xbf16>
    %22 = vector.shape_cast %21 : vector<1x512x512xbf16> to vector<512x512xbf16>
    %cst_14 = arith.constant dense<0.000000e+00> : vector<10x512xf32>
    %23 = tpu.matmul %20, %22, %cst_14 {dimension_numbers = #tpu.dot_dimension_numbers<[1], [0], [0], [1], [0, 0, 1, 1], [], []>} : vector<10x512xbf16>, vector<512x512xbf16>, vector<10x512xf32> -> vector<10x512xf32>
    %24 = vector.extract_strided_slice %18 {offsets = [1, 0], sizes = [10, 512], strides = [1, 1]} : vector<12x512xf32> to vector<10x512xf32>
    %25 = arith.truncf %24 : vector<10x512xf32> to vector<10x512xbf16>
    %c1 = arith.constant 1 : index
    %c0_15 = arith.constant 0 : index
    %c0_16 = arith.constant 0 : index
    %26 = vector.load %arg5[%c1, %c0_15, %c0_16] : memref<3x512x512xbf16, #tpu.memory_space<vmem>>, vector<1x512x512xbf16>
    %27 = vector.shape_cast %26 : vector<1x512x512xbf16> to vector<512x512xbf16>
    %cst_17 = arith.constant dense<0.000000e+00> : vector<10x512xf32>
    %28 = tpu.matmul %25, %27, %cst_17 {dimension_numbers = #tpu.dot_dimension_numbers<[1], [0], [0], [1], [0, 0, 1, 1], [], []>} : vector<10x512xbf16>, vector<512x512xbf16>, vector<10x512xf32> -> vector<10x512xf32>
    %29 = arith.addf %23, %28 : vector<10x512xf32>
    %30 = vector.extract_strided_slice %18 {offsets = [2, 0], sizes = [10, 512], strides = [1, 1]} : vector<12x512xf32> to vector<10x512xf32>
    %31 = arith.truncf %30 : vector<10x512xf32> to vector<10x512xbf16>
    %c2 = arith.constant 2 : index
    %c0_18 = arith.constant 0 : index
    %c0_19 = arith.constant 0 : index
    %32 = vector.load %arg5[%c2, %c0_18, %c0_19] : memref<3x512x512xbf16, #tpu.memory_space<vmem>>, vector<1x512x512xbf16>
    %33 = vector.shape_cast %32 : vector<1x512x512xbf16> to vector<512x512xbf16>
    %cst_20 = arith.constant dense<0.000000e+00> : vector<10x512xf32>
    %34 = tpu.matmul %31, %33, %cst_20 {dimension_numbers = #tpu.dot_dimension_numbers<[1], [0], [0], [1], [0, 0, 1, 1], [], []>} : vector<10x512xbf16>, vector<512x512xbf16>, vector<10x512xf32> -> vector<10x512xf32>
    %35 = arith.addf %29, %34 : vector<10x512xf32>
    %c0_21 = arith.constant 0 : index
    %c0_22 = arith.constant 0 : index
    %36 = vector.load %arg6[%c0_21, %c0_22] : memref<1x512xf32, #tpu.memory_space<vmem>>, vector<1x512xf32>
    %37 = vector.broadcast %36 : vector<1x512xf32> to vector<10x512xf32>
    %38 = arith.mulf %35, %37 : vector<10x512xf32>
    %c0_23 = arith.constant 0 : index
    %c0_24 = arith.constant 0 : index
    %39 = vector.load %arg7[%c0_23, %c0_24] : memref<1x512xf32, #tpu.memory_space<vmem>>, vector<1x512xf32>
    %40 = vector.broadcast %39 : vector<1x512xf32> to vector<10x512xf32>
    %41 = arith.addf %38, %40 : vector<10x512xf32>
    %cst_25 = arith.constant 0.000000e+00 : f32
    %42 = vector.broadcast %cst_25 : f32 to vector<10x512xf32>
    %43 = arith.maximumf %41, %42 : vector<10x512xf32>
    %c8_i32 = arith.constant 8 : i32
    %44 = arith.muli %arg1, %c8_i32 : i32
    %c1_i32_26 = arith.constant 1 : i32
    %45 = arith.subi %44, %c1_i32_26 : i32
    %46 = tpu.iota {dimensions = array<i32: 0>} : vector<10x1xi32>
    %47 = vector.broadcast %45 : i32 to vector<10x1xi32>
    %48 = arith.addi %47, %46 : vector<10x1xi32>
    %c0_i32_27 = arith.constant 0 : i32
    %49 = vector.broadcast %c0_i32_27 : i32 to vector<10x1xi32>
    %50 = arith.cmpi sge, %48, %49 : vector<10x1xi32>
    %c16_i32 = arith.constant 16 : i32
    %51 = vector.broadcast %c16_i32 : i32 to vector<10x1xi32>
    %52 = arith.cmpi slt, %48, %51 : vector<10x1xi32>
    %53 = arith.andi %50, %52 : vector<10x1xi1>
    %cst_28 = arith.constant 0.000000e+00 : f32
    %54 = vector.shape_cast %53 : vector<10x1xi1> to vector<10x1xi1>
    %55 = vector.broadcast %54 : vector<10x1xi1> to vector<10x512xi1>
    %56 = vector.broadcast %cst_28 : f32 to vector<10x512xf32>
    %57 = arith.select %55, %43, %56 : vector<10x512xi1>, vector<10x512xf32>
    %58 = arith.truncf %57 : vector<10x512xf32> to vector<10x512xbf16>
    %59 = vector.extract_strided_slice %58 {offsets = [0, 0], sizes = [8, 512], strides = [1, 1]} : vector<10x512xbf16> to vector<8x512xbf16>
    %c0_29 = arith.constant 0 : index
    %c0_30 = arith.constant 0 : index
    %c0_31 = arith.constant 0 : index
    %60 = vector.load %arg8[%c0_29, %c0_30, %c0_31] : memref<3x512x512xbf16, #tpu.memory_space<vmem>>, vector<1x512x512xbf16>
    %61 = vector.shape_cast %60 : vector<1x512x512xbf16> to vector<512x512xbf16>
    %cst_32 = arith.constant dense<0.000000e+00> : vector<8x512xf32>
    %62 = tpu.matmul %59, %61, %cst_32 {dimension_numbers = #tpu.dot_dimension_numbers<[1], [0], [0], [1], [0, 0, 1, 1], [], []>} : vector<8x512xbf16>, vector<512x512xbf16>, vector<8x512xf32> -> vector<8x512xf32>
    %63 = vector.extract_strided_slice %58 {offsets = [1, 0], sizes = [8, 512], strides = [1, 1]} : vector<10x512xbf16> to vector<8x512xbf16>
    %c1_33 = arith.constant 1 : index
    %c0_34 = arith.constant 0 : index
    %c0_35 = arith.constant 0 : index
    %64 = vector.load %arg8[%c1_33, %c0_34, %c0_35] : memref<3x512x512xbf16, #tpu.memory_space<vmem>>, vector<1x512x512xbf16>
    %65 = vector.shape_cast %64 : vector<1x512x512xbf16> to vector<512x512xbf16>
    %cst_36 = arith.constant dense<0.000000e+00> : vector<8x512xf32>
    %66 = tpu.matmul %63, %65, %cst_36 {dimension_numbers = #tpu.dot_dimension_numbers<[1], [0], [0], [1], [0, 0, 1, 1], [], []>} : vector<8x512xbf16>, vector<512x512xbf16>, vector<8x512xf32> -> vector<8x512xf32>
    %67 = arith.addf %62, %66 : vector<8x512xf32>
    %68 = vector.extract_strided_slice %58 {offsets = [2, 0], sizes = [8, 512], strides = [1, 1]} : vector<10x512xbf16> to vector<8x512xbf16>
    %c2_37 = arith.constant 2 : index
    %c0_38 = arith.constant 0 : index
    %c0_39 = arith.constant 0 : index
    %69 = vector.load %arg8[%c2_37, %c0_38, %c0_39] : memref<3x512x512xbf16, #tpu.memory_space<vmem>>, vector<1x512x512xbf16>
    %70 = vector.shape_cast %69 : vector<1x512x512xbf16> to vector<512x512xbf16>
    %cst_40 = arith.constant dense<0.000000e+00> : vector<8x512xf32>
    %71 = tpu.matmul %68, %70, %cst_40 {dimension_numbers = #tpu.dot_dimension_numbers<[1], [0], [0], [1], [0, 0, 1, 1], [], []>} : vector<8x512xbf16>, vector<512x512xbf16>, vector<8x512xf32> -> vector<8x512xf32>
    %72 = arith.addf %67, %71 : vector<8x512xf32>
    %c0_41 = arith.constant 0 : index
    %c0_42 = arith.constant 0 : index
    %73 = vector.load %arg9[%c0_41, %c0_42] : memref<1x512xf32, #tpu.memory_space<vmem>>, vector<1x512xf32>
    %74 = vector.broadcast %73 : vector<1x512xf32> to vector<8x512xf32>
    %75 = arith.mulf %72, %74 : vector<8x512xf32>
    %c0_43 = arith.constant 0 : index
    %c0_44 = arith.constant 0 : index
    %76 = vector.load %arg10[%c0_43, %c0_44] : memref<1x512xf32, #tpu.memory_space<vmem>>, vector<1x512xf32>
    %77 = vector.broadcast %76 : vector<1x512xf32> to vector<8x512xf32>
    %78 = arith.addf %75, %77 : vector<8x512xf32>
    %79 = arith.addf %1, %78 : vector<8x512xf32>
    %c0_45 = arith.constant 0 : index
    %c0_46 = arith.constant 0 : index
    %c0_47 = arith.constant 0 : index
    %80 = vector.load %arg11[%c0_45, %c0_46, %c0_47] : memref<1x8x512xf32, #tpu.memory_space<vmem>>, vector<1x8x512xf32>
    %81 = vector.shape_cast %80 : vector<1x8x512xf32> to vector<8x512xf32>
    %82 = vector.shape_cast %79 : vector<8x512xf32> to vector<1x8x512xf32>
    tpu.vector_store %arg11[%c0_45, %c0_46, %c0_47], %82 {strides = array<i32>} : memref<1x8x512xf32, #tpu.memory_space<vmem>>, vector<1x8x512xf32>,
    return
  }
  func.func @transform_0(%arg0: i32, %arg1: i32) -> (i32, i32, i32) {
    %c0_i32 = arith.constant 0 : i32
    %c0_i32_0 = arith.constant 0 : i32
    return %arg0, %arg1, %c0_i32 : i32, i32, i32
  }
  func.func @transform_1(%arg0: i32, %arg1: i32) -> (i32, i32, i32) {
    %c1_i32 = arith.constant 1 : i32
    %0 = arith.muli %arg1, %c1_i32 : i32
    %c1_i32_0 = arith.constant 1 : i32
    %1 = arith.subi %0, %c1_i32_0 : i32
    %c0_i32 = arith.constant 0 : i32
    %2 = arith.maxsi %1, %c0_i32 : i32
    %c0_i32_1 = arith.constant 0 : i32
    %c0_i32_2 = arith.constant 0 : i32
    return %arg0, %2, %c0_i32_1 : i32, i32, i32
  }
  func.func @transform_2(%arg0: i32, %arg1: i32) -> (i32, i32, i32) {
    %c1_i32 = arith.constant 1 : i32
    %0 = arith.addi %arg1, %c1_i32 : i32
    %c1_i32_0 = arith.constant 1 : i32
    %1 = arith.muli %0, %c1_i32_0 : i32
    %c1_i32_1 = arith.constant 1 : i32
    %2 = arith.minsi %1, %c1_i32_1 : i32
    %c0_i32 = arith.constant 0 : i32
    %c0_i32_2 = arith.constant 0 : i32
    return %arg0, %2, %c0_i32 : i32, i32, i32
  }
  func.func @transform_3(%arg0: i32, %arg1: i32) -> (i32, i32, i32) {
    %c0_i32 = arith.constant 0 : i32
    %c0_i32_0 = arith.constant 0 : i32
    %c0_i32_1 = arith.constant 0 : i32
    %c0_i32_2 = arith.constant 0 : i32
    return %c0_i32, %c0_i32_0, %c0_i32_1 : i32, i32, i32
  }
  func.func @transform_4(%arg0: i32, %arg1: i32) -> (i32, i32) {
    %c0_i32 = arith.constant 0 : i32
    %c0_i32_0 = arith.constant 0 : i32
    %c0_i32_1 = arith.constant 0 : i32
    return %c0_i32, %c0_i32_0 : i32, i32
  }
  func.func @transform_5(%arg0: i32, %arg1: i32) -> (i32, i32) {
    %c0_i32 = arith.constant 0 : i32
    %c0_i32_0 = arith.constant 0 : i32
    %c0_i32_1 = arith.constant 0 : i32
    return %c0_i32, %c0_i32_0 : i32, i32
  }
  func.func @transform_6(%arg0: i32, %arg1: i32) -> (i32, i32, i32) {
    %c0_i32 = arith.constant 0 : i32
    %c0_i32_0 = arith.constant 0 : i32
    %c0_i32_1 = arith.constant 0 : i32
    %c0_i32_2 = arith.constant 0 : i32
    return %c0_i32, %c0_i32_0, %c0_i32_1 : i32, i32, i32
  }
  func.func @transform_7(%arg0: i32, %arg1: i32) -> (i32, i32) {
    %c0_i32 = arith.constant 0 : i32
    %c0_i32_0 = arith.constant 0 : i32
    %c0_i32_1 = arith.constant 0 : i32
    return %c0_i32, %c0_i32_0 : i32, i32
  }
  func.func @transform_8(%arg0: i32, %arg1: i32) -> (i32, i32) {
    %c0_i32 = arith.constant 0 : i32
    %c0_i32_0 = arith.constant 0 : i32
    %c0_i32_1 = arith.constant 0 : i32
    return %c0_i32, %c0_i32_0 : i32, i32
  }
  func.func @transform_9(%arg0: i32, %arg1: i32) -> (i32, i32, i32) {
    %c0_i32 = arith.constant 0 : i32
    %c0_i32_0 = arith.constant 0 : i32
    return %arg0, %arg1, %c0_i32 : i32, i32, i32
  }
}

</mosaic_0001>

<bundles_post_ra>
// kernel: tpu_custom_call.1
= control target key start
LH: loop header
LB: loop body
LE: loop exit
PB: predicated region body
PF: predicated region fallthrough
CT: control target
= control target key end

     0   :  { %s10184_s0 = inlined_call_operand.hbm [shape: f32[2,16,512], index: 0, kind: input, shape index: {}]   ;;  %s10185_s1 = inlined_call_operand.hbm [shape: f32[2,16,512], index: 1, kind: input, shape index: {}]   ;;  %s10186_s2 = inlined_call_operand.hbm [shape: f32[2,16,512], index: 2, kind: input, shape index: {}]   ;;  %s10187_s3 = inlined_call_operand.hbm [shape: bf16[3,512,512], index: 3, kind: input, shape index: {}]   ;;  %s10188_s4 = inlined_call_operand.hbm [shape: f32[1,512], index: 4, kind: input, shape index: {}]   ;;  %s10189_s5 = inlined_call_operand.hbm [shape: f32[1,512], index: 5, kind: input, shape index: {}]   ;;  %s10190_s6 = inlined_call_operand.hbm [shape: bf16[3,512,512], index: 6, kind: input, shape index: {}]   ;;  %s10191_s7 = inlined_call_operand.hbm [shape: f32[1,512], index: 7, kind: input, shape index: {}]   ;;  %s10192_s8 = inlined_call_operand.hbm [shape: f32[1,512], index: 8, kind: input, shape index: {}]   ;;  %s10193_s9 = inlined_call_operand.hbm [shape: f32[2,16,512], index: 9, kind: output, shape index: {}]  }
   0x1   :  { %10220 = sst [smem:[#allocation36_spill]] %s10185_s1 }
   0x2   :  { %10221 = sst [smem:[#allocation37_spill]] %s10186_s2 }
   0x3   :  { %10222 = sst [smem:[#allocation38_spill]] %s10187_s3 }
   0x4   :  { %10223 = sst [smem:[#allocation39_spill]] %s10188_s4 }
   0x5   :  { %10224 = sst [smem:[#allocation40_spill]] %s10189_s5 }
   0x6   :  { %10225 = sst [smem:[#allocation41_spill]] %s10190_s6 }
   0x7   :  { %10226 = sst [smem:[#allocation42_spill]] %s10191_s7 }
   0x8   :  { %10227 = sst [smem:[#allocation43_spill]] %s10193_s9 }
   0x9   :  { %14 = vsyncpa [#allocation3], 0 }
   0xa   :  { %16 = vsyncpa [#allocation3 + $0x1], 0 }
   0xb   :  { %17 = vsyncpa [#allocation6], 0 }
   0xc   :  { %19 = vsyncpa [#allocation6 + $0x1], 0 }
   0xd   :  { %20 = vsyncpa [#allocation9], 0 }
   0xe   :  { %21 = vsyncpa [#allocation12], 0 }
   0xf   :  { %22 = vsyncpa [#allocation15], 0 }
  0x10   :  { %23 = vsyncpa [#allocation4], 0 }
  0x11   :  { %25 = vsyncpa [#allocation4 + $0x1], 0  ;;  %s9391_s30 = smov 0   ;;  %s9393_s10 = smov 0  }
  0x12   :  { %s9395_s11 = smov 0   ;;  %s9397_s12 = smov 0  }
  0x13   :  { %s9399_s13 = smov 0   ;;  %s9401_s14 = smov 0  }
  0x14   :  { %s9403_s15 = smov 0   ;;  %s9405_s16 = smov 0  }
  0x15   :  { %s9407_s17 = smov 0   ;;  %s9409_s18 = smov 0  }
  0x16   :  { %s9411_s19 = smov 0   ;;  %s9413_s20 = smov 0  }
  0x17   :  { %s9415_s21 = smov 0   ;;  %s9417_s22 = smov 0  }
  0x18 LB: > { %10228 = sst [smem:[#allocation25_spill]] %s9275_s30  ;;  %s9462_s23 = sadd.s32 4294967295, %s9327_s22   ;;  %s9327_s22 = sphi %s9417_s22, %s31_s22   ;;  %s9323_s21 = sphi %s9415_s21, %s10321_s21   ;;  %s9319_s20 = sphi %s9413_s20, %s10320_s20   ;;  %s9315_s19 = sphi %s9411_s19, %s10319_s19   ;;  %s9311_s18 = sphi %s9409_s18, %s10318_s18   ;;  %s9307_s17 = sphi %s9407_s17, %s10317_s17   ;;  %s9303_s16 = sphi %s9405_s16, %s10316_s16   ;;  %s9299_s15 = sphi %s9403_s15, %s10315_s15   ;;  %s9295_s14 = sphi %s9401_s14, %s10309_s14   ;;  %s9291_s13 = sphi %s9399_s13, %s10308_s13   ;;  %s9287_s12 = sphi %s9397_s12, %s10307_s12   ;;  %s9283_s11 = sphi %s9395_s11, %s10314_s11   ;;  %s9279_s10 = sphi %s9393_s10, %s10313_s10   ;;  %s9275_s30 = sphi %s9391_s30, %s10306_s30  }
  0x19   : > { %10229 = sst [smem:[#allocation26_spill]] %s9279_s10  ;;  %p6732_p0 = scmp.ge.s32.totalorder %s9327_s22, 1 }
  0x1a   : > { %10230 = sst [smem:[#allocation27_spill]] %s9291_s13  ;;  %p10199_p1 = scmp.eq.s32.totalorder %s9462_s23, 0 }
  0x1b   : > { %10231 = sst [smem:[#allocation28_spill]] %s9295_s14  ;;  %p298_p2 = scmp.lt.s32.totalorder %s9327_s22, 5 }
  0x1c   : > { %10232 = sst [smem:[#allocation29_spill]] %s9311_s18  ;;  %s9329_s25 = smov [#allocation8]  }
  0x1d   : > { %10233 = sst [smem:[#allocation30_spill]] %s9315_s19  ;;  %p9467_p3 = pnand %p6732_p0, %p298_p2 }
  0x1e   : > { %s310_s26 = sshll.u32 %s9329_s25, 4  ;;  %s9330_s28 = smov [#allocation11]   ;;  %s311_s26 = int_to_ptr.vmem [resolvable:$true] %s310_s26 }
  0x1f   : > { %s10234_s24 = scalar_select %p9467_p3, 1, 0 }
  0x20   : > { %p7596_p4 = pneg %p9467_p3  ;;  %s335_s29 = sshll.u32 %s9330_s28, 4  ;;  %s336_s29 = int_to_ptr.vmem [resolvable:$true] %s335_s29 }
  0x21   : > { %10235 = sst [smem:[#allocation31_spill]] %s10234_s24  ;;  %s9331_s9 = smov [#allocation14]  }
  0x22   : > { %p9475_p5 = pnand %p7596_p4, %p10199_p1  ;;  %s359_s19 = sshll.u32 %s9331_s9, 4  ;;  %s360_s19 = int_to_ptr.vmem [resolvable:$true] %s359_s19 }
  0x23   : > { %s8930_s25 = scalar_lea.vmem %s311_s26, 49152  ;;  %p8938_p10 = scmp.lt.s32.totalorder %s311_s26, %s311_s26 }
  0x24   : > { %s10236_s27 = scalar_select %p9475_p5, 1, 0 }
  0x25   : > { %p9481_p6 = pneg %p9475_p5  ;;  %p8931_p7 = scmp.ne.s32.totalorder %s311_s26, %s8930_s25 }
  0x26   : > { %p8939_p11 = scmp.lt.s32.totalorder %s8930_s25, %s8930_s25 }
  0x27   : > { %s10237_s18 = scalar_select %p9481_p6, 1, 0 }
  0x28   : > { %p8933_p8 = pnand %p8931_p7, %p9481_p6  ;;  %p8940_p12 = por %p8939_p11, %p8938_p10 }
  0x2a   : > { %p8934_p9 = pneg %p8933_p8 }
  0x2c   : > { %p8941_p13 = pnand %p8940_p12, %p8934_p9 }
  0x2e   : > { %8944 = shalt.err (!%p8941_p13)
}
  0x2f   : > { %s10201_s28 = smov 256   ;;  %s10202_s9 = smov 16  }
  0x30   : > { %s10238_s3 = sld [smem:[#allocation38_spill]]  ;;  %s8956_s30 = scalar_lea.vmem %s336_s29, 64 }
  0x31   : > { %p8957_p0 = scmp.ne.s32.totalorder %s336_s29, %s8956_s30  ;;  %p8964_p7 = scmp.lt.s32.totalorder %s336_s29, %s336_s29 }
  0x32   : > { %p8965_p8 = scmp.lt.s32.totalorder %s8956_s30, %s8956_s30 }
  0x33   : > { %p8959_p2 = pnand %p8957_p0, %p9481_p6 }
  0x34   : > { %p8966_p9 = por %p8965_p8, %p8964_p7 }
  0x35   : > { %p8960_p4 = pneg %p8959_p2 }
  0x36   : > { %7599 = dma.hbm_to_vmem [thread:$0]  (!%p9475_p5), %s10238_s3, 49152, %s311_s26, [#allocation9], %s10201_s28, %s10201_s28, %s10202_s9  }
  0x37   : > { %p8967_p10 = pnand %p8966_p9, %p8960_p4 }
  0x39   : > { %8970 = shalt.err (!%p8967_p10)
}
  0x3a   : > { %s10239_s5 = sld [smem:[#allocation40_spill]]  ;;  %s8982_s2 = scalar_lea.vmem %s360_s19, 64 }
  0x3b   : > { %p8983_p11 = scmp.ne.s32.totalorder %s360_s19, %s8982_s2  ;;  %p8990_p0 = scmp.lt.s32.totalorder %s360_s19, %s360_s19 }
  0x3c   : > { %p8991_p2 = scmp.lt.s32.totalorder %s8982_s2, %s8982_s2 }
  0x3d   : > { %p8985_p12 = pnand %p8983_p11, %p9481_p6 }
  0x3e   : > { %p8992_p1 = por %p8991_p2, %p8990_p0 }
  0x3f   : > { %p8986_p13 = pneg %p8985_p12 }
  0x40   : > { %7605 = dma.hbm_to_vmem [thread:$0]  (!%p9475_p5), %s10239_s5, 64, %s336_s29, [#allocation12]  }
  0x41   : > { %p8993_p3 = pnand %p8992_p1, %p8986_p13 }
  0x43   : > { %8996 = shalt.err (!%p8993_p3)
}
  0x44   : > { %s10240_s7 = sld [smem:[#allocation42_spill]]  ;;  %s40_s10 = sadd.s32 1, %s9319_s20 }
  0x45   : > { %p41_p1 = scmp.ge.s32.totalorder %s40_s10, 2  ;;  %s43_s26 = sadd.s32 1, %s9323_s21 }
  0x46   : > { %p10211_p3 = scmp.eq.s32.totalorder %s9327_s22, 0  ;;  %p93_p7 = scmp.ne.s32.totalorder %s9295_s14, %s9291_s13 }
  0x47   : > { %s10323_s10 = smov (%p41_p1, %s40_s10), 0  ;;  %s10325_s26 = smov (!%p41_p1, %s43_s26), %s9323_s21 }
  0x48   : > { %10241 = sst [smem:[#allocation32_spill]] %s10323_s10  ;;  %s48_s29 = ssub.s32 %s9319_s20, %s10323_s10 }
  0x49   : > { %p45_p4 = scmp.ge.s32.totalorder %s10325_s26, 2  ;;  %p99_p8 = scmp.ne.s32.totalorder %s9291_s13, %s9287_s12 }
  0x4a   : > { %7611 = dma.hbm_to_vmem [thread:$0]  (!%p9475_p5), %s10240_s7, 64, %s360_s19, [#allocation15]  }
  0x4b   : > { %s10327_s26 = smov (%p45_p4, %s10325_s26), 0  ;;  %s86_s19 = sadd.s32 1, %s9295_s14 }
  0x4c   : > { %10242 = sst [smem:[#allocation33_spill]] %s10327_s26  ;;  %s9522_s25 = ssub.s32 %s9323_s21, %s10327_s26 }
  0x4d   : > { %s9527_s2 = sor.u32 %s48_s29, %s9522_s25  ;;  %p9534_p10 = por %p93_p7, %p10211_p3 }
  0x4e   : > { %p10244_p11 = scmp.eq.s32.totalorder %s9462_s23, 0  ;;  %p10210_p13 = scmp.lt.s32.totalorder %s9327_s22, 4 }
  0x4f   : > { %s402_s9 = sand.u32 1, %s9327_s22   ;;  %p10209_p0 = scmp.eq.s32.totalorder %s9522_s25, 0 }
  0x50   : > { %p9540_p12 = por %p99_p8, %p10244_p11  ;;  %s404_s29 = sand.u32 1, %s9295_s14  }
  0x51   : > { %s9552_s12 = scalar_select %p10209_p0, %s9295_s14, %s86_s19  }
  0x52   : > { %s10245_s24 = scalar_select %p9540_p12, 1, 0 }
  0x53   : > { %10247 = sst [smem:[#allocation35_spill]] %s9552_s12  ;;  %s6744_s3 = sshll.u32 %s404_s29, 5 }
  0x54   : > { %10246 = sst [smem:[#allocation34_spill]] %s10245_s24  ;;  %s10208_s5 = sshll.u32 %s9323_s21, 10 }
  0x55   : > { %s10248_s1 = sld [smem:[#allocation36_spill]]  ;;  %s406_s24 = scalar_lea.vmem [#allocation5], %s6744_s3 }
  0x56   : > { %s419_s13 = sshll.u32 %s406_s24, 4  ;;  %p9568_p2 = pnand %p10210_p13, %p9534_p10  ;;  %s9562_s13 = int_to_ptr.vmem [resolvable:$true] %s419_s13 }
  0x57   : > { %s9334_s29 = smov [#allocation10]   ;;  %s9572_s12 = scalar_lea.sflag [#allocation6], %s402_s9 }
  0x58   : > { %s324_s28 = sshll.u32 %s9334_s29, 4  ;;  %p8999_p4 = pneg %p9568_p2  ;;  %s325_s28 = int_to_ptr.vmem [resolvable:$true] %s324_s28 }
  0x5b   : > { %s9560_s10 = scalar_lea.hbm %s10248_s1, %s10208_s5  ;;  %s9002_s30 = scalar_lea.hbm %s10248_s1, 2048 }
  0x5c   : > { %s8997_s7 = scalar_lea.hbm %s9560_s10, 512  ;;  %p9003_p10 = scmp.lt.s32.totalorder %s9560_s10, %s10248_s1 }
  0x5d   : > { %p8998_p1 = scmp.ne.s32.totalorder %s9560_s10, %s8997_s7  ;;  %p9004_p11 = scmp.lt.s32.totalorder %s9002_s30, %s8997_s7 }
  0x5f   : > { %p9000_p7 = pnand %p8999_p4, %p8998_p1  ;;  %p9005_p0 = por %p9004_p11, %p9003_p10 }
  0x61   : > { %p9001_p8 = pneg %p9000_p7 }
  0x63   : > { %p9006_p13 = pnand %p9005_p0, %p9001_p8 }
  0x65   : > { %9009 = shalt.err (!%p9006_p13)
}
  0x66   : > { %s9010_s9 = scalar_lea.vmem %s9562_s13, 512  ;;  %s9335_s29 = smov [#allocation5]  }
  0x67   : > { %p9011_p3 = scmp.ne.s32.totalorder %s9562_s13, %s9010_s9  ;;  %s9015_s14 = sshll.u32 %s9335_s29, 4  ;;  %s9016_s14 = int_to_ptr.vmem [resolvable:$false] %s9015_s14 }
  0x68   : > { %s9017_s3 = scalar_lea.vmem %s9016_s14, 1024  ;;  %p9018_p7 = scmp.lt.s32.totalorder %s9562_s13, %s9016_s14 }
  0x69   : > { %p9013_p9 = pnand %p9011_p3, %p8999_p4  ;;  %p9019_p12 = scmp.lt.s32.totalorder %s9017_s3, %s9010_s9 }
  0x6b   : > { %p9014_p1 = pneg %p9013_p9  ;;  %p9020_p5 = por %p9019_p12, %p9018_p7 }
  0x6d   : > { %p9021_p6 = pnand %p9020_p5, %p9014_p1 }
  0x6f   : > { %9024 = shalt.err (!%p9021_p6)
}
  0x70   : > { %7621 = dma.hbm_to_vmem [thread:$0]  (!%p9568_p2), %s9560_s10, 512, %s9562_s13, %s9572_s12  }
  0x71   : > { %s9336_s5 = smov [#allocation13]   ;;  %s9036_s26 = scalar_lea.vmem %s325_s28, 64 }
  0x72   : > { %s345_s7 = sshll.u32 %s9336_s5, 4  ;;  %p9037_p3 = scmp.ne.s32.totalorder %s325_s28, %s9036_s26  ;;  %s346_s7 = int_to_ptr.vmem [resolvable:$true] %s345_s7 }
  0x73   : > { %p10250_p9 = scmp.ne.s32.totalorder %s10237_s18, 0  ;;  %p9044_p4 = scmp.lt.s32.totalorder %s325_s28, %s325_s28 }
  0x74   : > { %p9045_p8 = scmp.lt.s32.totalorder %s9036_s26, %s9036_s26 }
  0x75   : > { %p9039_p13 = pnand %p9037_p3, %p10250_p9 }
  0x76   : > { %p9046_p12 = por %p9045_p8, %p9044_p4 }
  0x77   : > { %p9040_p0 = pneg %p9039_p13 }
  0x79   : > { %p9047_p5 = pnand %p9046_p12, %p9040_p0 }
  0x7b   : > { %9050 = shalt.err (!%p9047_p5)
}
  0x7c   : > { %p10251_p6 = scmp.ne.s32.totalorder %s10236_s27, 0  ;;  %s10252_s4 = sld [smem:[#allocation39_spill]] }
  0x7d   : > { %s9062_s13 = scalar_lea.vmem %s346_s7, 49152  ;;  %p9070_p1 = scmp.lt.s32.totalorder %s346_s7, %s346_s7 }
  0x7e   : > { %p9063_p2 = scmp.ne.s32.totalorder %s346_s7, %s9062_s13  ;;  %p9071_p7 = scmp.lt.s32.totalorder %s9062_s13, %s9062_s13 }
  0x80   : > { %p9065_p10 = pnand %p9063_p2, %p10250_p9  ;;  %p9072_p3 = por %p9071_p7, %p9070_p1 }
  0x82   : > { %7602 = dma.hbm_to_vmem [thread:$0]  (!%p10251_p6), %s10252_s4, 64, %s325_s28, [#allocation9]  }
  0x83   : > { %p9066_p11 = pneg %p9065_p10 }
  0x85   : > { %p9073_p13 = pnand %p9072_p3, %p9066_p11 }
  0x87   : > { %9076 = shalt.err (!%p9073_p13)
}
  0x88   : > { %s10253_s10 = smov 16   ;;  %s10254_s30 = smov 256  }
  0x89   : > { %s10255_s6 = sld [smem:[#allocation41_spill]]  ;;  %s9337_s28 = smov [#allocation16]  }
  0x8a   : > { %s370_s29 = sshll.u32 %s9337_s28, 4  ;;  %s371_s29 = int_to_ptr.vmem [resolvable:$true] %s370_s29 }
  0x8b   : > { %s9088_s3 = scalar_lea.vmem %s371_s29, 64  ;;  %p9096_p12 = scmp.lt.s32.totalorder %s371_s29, %s371_s29 }
  0x8c   : > { %p9089_p0 = scmp.ne.s32.totalorder %s371_s29, %s9088_s3  ;;  %p9097_p5 = scmp.lt.s32.totalorder %s9088_s3, %s9088_s3 }
  0x8e   : > { %p9091_p4 = pnand %p9089_p0, %p10250_p9  ;;  %p9098_p2 = por %p9097_p5, %p9096_p12 }
  0x8f   : > { %7608 = dma.hbm_to_vmem [thread:$0]  (!%p10251_p6), %s10255_s6, 49152, %s346_s7, [#allocation12], %s10254_s30, %s10254_s30, %s10253_s10  }
  0x90   : > { %p9092_p8 = pneg %p9091_p4 }
  0x92   : > { %p9099_p10 = pnand %p9098_p2, %p9092_p8 }
  0x94   : > { %9102 = shalt.err (!%p9099_p10)
}
  0x95   : > { %7614 = dma.hbm_to_vmem [thread:$0]  (!%p10251_p6), %s10192_s8, 64, %s371_s29, [#allocation15]  }
  0x96   : > { %s6729_s18 = sadd.s32 4294967294, %s9327_s22   ;;  %s52_s27 = sadd.s32 1, %s9307_s17 }
  0x97   : > { %p10256_p9 = scmp.eq.s32.totalorder %s9527_s2, 0  ;;  %p59_p11 = scmp.ne.s32.totalorder %s9307_s17, %s9303_s16 }
  0x98   : > { %p65_p1 = scmp.ne.s32.totalorder %s9303_s16, %s9299_s15  ;;  %p285_p7 = scmp.eq.s32.totalorder %s9462_s23, 3 }
  0x99   : > { %s9622_s7 = scalar_select %p10256_p9, %s9307_s17, %s52_s27  }
  0x9a   : > { %p291_p3 = scmp.eq.s32.totalorder %s6729_s18, 3  ;;  %p10257_p13 = scmp.eq.s32.totalorder %s9327_s22, 0 }
  0x9b   : > { %p10259_p4 = scmp.eq.s32.totalorder %s9462_s23, 0  ;;  %p9641_p6 = por %p285_p7, %p59_p11 }
  0x9c   : > { %p9631_p0 = por %p10257_p13, %p59_p11  ;;  %p9645_p12 = por %p291_p3, %p65_p1 }
  0x9d   : > { %p9637_p8 = por %p10259_p4, %p65_p1  ;;  %s381_s10 = sand.u32 1, %s9307_s17  }
  0x9e   : > { %s10261_s2 = scalar_select %p9641_p6, 1, 0 }
  0x9f   : > { %s10262_s13 = scalar_select %p9645_p12, 1, 0 }
  0xa0   : > { %s6741_s30 = sshll.u32 %s9319_s20, 2  ;;  %s6740_s24 = sshll.u32 %s381_s10, 5 }
  0xa1   : > { %s10263_s9 = sshll.u32 %s9323_s21, 3  ;;  %s385_s3 = scalar_lea.vmem [#allocation2], %s6740_s24 }
  0xa2   : > { %s391_s28 = sadd.s32 %s10263_s9, %s6741_s30  ;;  %s395_s5 = sshll.u32 %s385_s3, 4  ;;  %s396_s5 = int_to_ptr.vmem [resolvable:$true] %s395_s5 }
  0xa3   : > { %s6743_s29 = sshll.u32 %s391_s28, 7  ;;  %p10264_p5 = scmp.lt.s32.totalorder %s9327_s22, 4 }
  0xa4   : > { %s393_s27 = scalar_lea.hbm %s10184_s0, %s6743_s29  ;;  %s382_s4 = scalar_lea.sflag [#allocation3], %s381_s10 }
  0xa5   : > { %p9660_p2 = pnand %p10264_p5, %p9631_p0  ;;  %s9116_s6 = scalar_lea.vmem %s396_s5, 512 }
  0xa6   : > { %p9117_p9 = scmp.ne.s32.totalorder %s396_s5, %s9116_s6  ;;  %s9338_s30 = smov [#allocation2]  }
  0xa7   : > { %p9105_p10 = pneg %p9660_p2  ;;  %s9121_s24 = sshll.u32 %s9338_s30, 4  ;;  %s9122_s24 = int_to_ptr.vmem [resolvable:$false] %s9121_s24 }
  0xa8   : > { %s9123_s9 = scalar_lea.vmem %s9122_s24, 1024  ;;  %p9124_p7 = scmp.lt.s32.totalorder %s396_s5, %s9122_s24 }
  0xa9   : > { %p9119_p11 = pnand %p9117_p9, %p9105_p10  ;;  %p9125_p3 = scmp.lt.s32.totalorder %s9123_s9, %s9116_s6 }
  0xab   : > { %p9120_p1 = pneg %p9119_p11  ;;  %p9126_p13 = por %p9125_p3, %p9124_p7 }
  0xad   : > { %p9127_p4 = pnand %p9126_p13, %p9120_p1 }
  0xaf   : > { %9130 = shalt.err (!%p9127_p4)
}
  0xb0   : > { %s10266_s14 = sld [smem:[#allocation26_spill]]  ;;  %s120_s28 = sadd.s32 1, %s9283_s11 }
  0xb1   : > { %s10267_s10 = sld [smem:[#allocation25_spill]]  ;;  %s428_s6 = sand.u32 1, %s9283_s11  }
  0xb2   : > { %7618 = dma.hbm_to_vmem [thread:$0]  (!%p9660_p2), %s393_s27, 512, %s396_s5, %s382_s4  }
  0xb3   : > { %p10268_p10 = scmp.eq.s32.totalorder %s9327_s22, 0  ;;  %p10269_p11 = scmp.eq.s32.totalorder %s9462_s23, 0 }
  0xb4   : > { %s6749_s29 = sshll.u32 %s428_s6, 5  ;;  %p10271_p7 = scmp.eq.s32.totalorder %s9522_s25, 0 }
  0xb5   : > { %s10272_s26 = sshll.u32 %s9323_s21, 10  ;;  %s430_s30 = scalar_lea.vmem [#allocation7], %s6749_s29 }
  0xb6   : > { %p127_p0 = scmp.ne.s32.totalorder %s9283_s11, %s10266_s14  ;;  %s9271_s18 = sadd.s32 512, %s10272_s26 }
  0xb7   : > { %p133_p5 = scmp.ne.s32.totalorder %s10266_s14, %s10267_s10  ;;  %s443_s24 = sshll.u32 %s430_s30, 4  ;;  %s444_s24 = int_to_ptr.vmem [resolvable:$true] %s443_s24 }
  0xb8   : > { %p129_p9 = por %p127_p0, %p10268_p10  ;;  %s10273_s27 = sld [smem:[#allocation37_spill]] }
  0xb9   : > { %p9678_p1 = por %p133_p5, %p10269_p11  ;;  %p10274_p2 = scmp.lt.s32.totalorder %s9327_s22, 4 }
  0xba   : > { %s9685_s3 = scalar_select %p10271_p7, %s9283_s11, %s120_s28  }
  0xbb   : > { %s10270_s1 = scalar_select %p9678_p1, 1, 0 }
  0xbc   : > { %p9694_p3 = pnand %p10274_p2, %p129_p9 }
  0xbe   : > { %s441_s9 = scalar_lea.hbm %s10273_s27, %s9271_s18  ;;  %p9133_p4 = pneg %p9694_p3 }
  0xbf   : > { %s9131_s10 = scalar_lea.hbm %s441_s9, 512  ;;  %s9136_s6 = scalar_lea.hbm %s10273_s27, 2048 }
  0xc0   : > { %p9132_p13 = scmp.ne.s32.totalorder %s441_s9, %s9131_s10  ;;  %p9138_p10 = scmp.lt.s32.totalorder %s9136_s6, %s9131_s10 }
  0xc2   : > { %p9134_p0 = pnand %p9133_p4, %p9132_p13 }
  0xc4   : > { %p9135_p5 = pneg %p9134_p0 }
  0xc6   : > { %p9140_p11 = pnand %p9138_p10, %p9135_p5 }
  0xc8   : > { %9143 = shalt.err (!%p9140_p11)
}
  0xc9   : > { %s9144_s29 = scalar_lea.vmem %s444_s24, 512  ;;  %s9339_s26 = smov [#allocation7]  }
  0xca   : > { %p9145_p7 = scmp.ne.s32.totalorder %s444_s24, %s9144_s29  ;;  %s9149_s18 = sshll.u32 %s9339_s26, 4  ;;  %s9150_s18 = int_to_ptr.vmem [resolvable:$false] %s9149_s18 }
  0xcb   : > { %s9151_s30 = scalar_lea.vmem %s9150_s18, 1024  ;;  %p9152_p12 = scmp.lt.s32.totalorder %s444_s24, %s9150_s18 }
  0xcc   : > { %p9147_p9 = pnand %p9145_p7, %p9133_p4  ;;  %p9153_p6 = scmp.lt.s32.totalorder %s9151_s30, %s9144_s29 }
  0xce   : > { %p9148_p2 = pneg %p9147_p9  ;;  %p9154_p1 = por %p9153_p6, %p9152_p12 }
  0xd0   : > { %p9155_p13 = pnand %p9154_p1, %p9148_p2 }
  0xd2   : > { %9158 = shalt.err (!%p9155_p13)
}
  0xd3   : > { %7624 = dma.hbm_to_vmem [thread:$0]  (!%p9694_p3), %s441_s9, 512, %s444_s24, %s9572_s12  }
  0xd4   : > { %s10276_s4 = sld [smem:[#allocation31_spill]] }
  0xda   : > { %p10277_p0 = scmp.ne.s32.totalorder %s10276_s4, 0 }
  0xdb   : > { %s9709_s5 = sand.u32 (!%p10277_p0), 1, %s9303_s16  }
  0xdc   : > { %452 = sbr.rel (%p10277_p0) target bundleno = 1399 (0x577), region = 56  ;;  %s6754_s10 = sshll.u32 (!%p10277_p0), %s9709_s5, 5 }
  0xdd   : > { %s455_s25 = scalar_lea.sflag (!%p10277_p0), [#allocation3], %s9709_s5  ;;  %s9715_s28 = scalar_lea.vmem (!%p10277_p0), [#allocation2], %s6754_s10 }
  0xe1   : > { %9242 = dma.done.wait (%p9637_p8), %s455_s25, 512  }
  0xe2   : > { %9244 = vsyncadd (%p9637_p8), %s455_s25, 4294966784  ;;  %s10278_s12 = sld [smem:[#allocation27_spill]]  ;;  %s463_s9 = sand.u32 1, %s9462_s23  }
  0xe3   : > { %s10279_s24 = sld [smem:[#allocation34_spill]]  ;;  %s464_s29 = scalar_lea.sflag [#allocation6], %s463_s9 }
  0xe8   : > { %s465_s14 = sand.u32 1, %s10278_s12  }
  0xe9   : > { %s6755_s6 = sshll.u32 %s465_s14, 5  ;;  %p10280_p6 = scmp.ne.s32.totalorder %s10279_s24, 0 }
  0xea   : > { %s9723_s26 = scalar_lea.vmem [#allocation5], %s6755_s6 }
  0xeb   : > { %9246 = dma.done.wait (%p10280_p6), %s464_s29, 512  }
  0xec   : > { %9248 = vsyncadd (%p10280_p6), %s464_s29, 4294966784  ;;  %s10281_s18 = sld [smem:[#allocation26_spill]]  ;;  %p10282_p8 = scmp.ne.s32.totalorder %s10270_s1, 0 }
  0xf2   : > { %s474_s30 = sand.u32 1, %s10281_s18  }
  0xf3   : > { %s6756_s4 = sshll.u32 %s474_s30, 5 }
  0xf4   : > { %s9730_s19 = scalar_lea.vmem [#allocation7], %s6756_s4 }
  0xf5   : > { %9250 = dma.done.wait (%p10282_p8), %s464_s29, 512  }
  0xf6   : > { %9252 = vsyncadd (%p10282_p8), %s464_s29, 4294966784  ;;  %p10283_p12 = scmp.eq.s32.totalorder %s9462_s23, 0 }
  0xf8   : > { %9254 = dma.done.wait (%p10283_p12), [#allocation9], 49216   ;;  %p10284_p1 = pmov %p10283_p12 }
  0xfa   : > { %9256 = vsyncadd (%p10284_p1), [#allocation9], 4294918080  ;;  %p10285_p3 = pmov %p10284_p1 }
  0xfb   : > { %p10286_p4 = pmov %p10284_p1 }
  0xfc   : > { %9258 = dma.done.wait (%p10285_p3), [#allocation12], 49216  }
  0xfd   : > { %9260 = vsyncadd (%p10286_p4), [#allocation12], 4294918080  ;;  %p10287_p5 = pmov %p10284_p1 }
  0xfe   : > { %p10288_p10 = pmov %p10284_p1 }
  0xff   : > { %9262 = dma.done.wait (%p10287_p5), [#allocation15], 128  }
 0x100   : > { %9264 = vsyncadd (%p10288_p10), [#allocation15], 4294967168  ;;  %v7763_v0 = vld [vmem:[#allocation8 + $0x4e4] ss:$16 sps:$4 sm:$0xff]   ;;  %v7767_v2 = vld [vmem:[#allocation8 + $0x4e0] ss:$16 sps:$4 sm:$0xff]  }
 0x101   : > { %v7765_v1 = vld [vmem:[#allocation8 + $0x6e4] ss:$16 sps:$4 sm:$0xff]   ;;  %1569 = vmatprep.subr.bf16.mxu0 %v7763_v0  ;;  %v7768_v3 = vld [vmem:[#allocation8 + $0x6e0] ss:$16 sps:$4 sm:$0xff]   ;;  %s10289_s23 = sld [smem:[#allocation29_spill]]  ;;  %vm627_vm1 = vcmask 1041408  }
 0x102   : > { %1612 = vmatprep.subr.bf16.mxu1 %v7765_v1  ;;  %v7769_v4 = vld [vmem:[#allocation8 + $0x4c4] ss:$16 sps:$4 sm:$0xff]   ;;  %1570 = vmatpush1.bf16.msra.mxu0 %v7767_v2  ;;  %v7773_v6 = vld [vmem:[#allocation8 + $0x4c0] ss:$16 sps:$4 sm:$0xff]   ;;  %v552_v51 = vld [vmem:[%s9715_s28 + $0x8] sm:$0xff]  ;;  %s10300_s9 = sld [smem:[#allocation30_spill]] }
 0x103   : > { %1613 = vmatpush1.bf16.msra.mxu1 %v7768_v3  ;;  %v7771_v5 = vld [vmem:[#allocation8 + $0x6c4] ss:$16 sps:$4 sm:$0xff]   ;;  %1571 = vmatprep.subr.bf16.mxu0 %v7769_v4  ;;  %v7774_v7 = vld [vmem:[#allocation8 + $0x6c0] ss:$16 sps:$4 sm:$0xff]   ;;  %v556_v55 = vld [vmem:[%s9723_s26 + $0x8] sm:$0xc0] }
 0x104   : > { %1614 = vmatprep.subr.bf16.mxu1 %v7771_v5  ;;  %v7775_v8 = vld [vmem:[#allocation8 + $0x4a4] ss:$16 sps:$4 sm:$0xff]   ;;  %v7779_v10 = vld [vmem:[#allocation8 + $0x4a0] ss:$16 sps:$4 sm:$0xff]   ;;  %v564_v56 = vld [vmem:[%s9730_s19 + $0x8] sm:$0x3] }
 0x105   : > { %v7777_v9 = vld [vmem:[#allocation8 + $0x6a4] ss:$16 sps:$4 sm:$0xff]   ;;  %v7780_v11 = vld [vmem:[#allocation8 + $0x6a0] ss:$16 sps:$4 sm:$0xff]   ;;  %v588_v57 = vmax.f32 %v552_v51, 0.0  ;;  %v554_v58 = vld [vmem:[%s9715_s28 + $0x18] sm:$0xff] }
 0x106   : > { %1572 = vmatpush1.bf16.msra.mxu0 %v7773_v6  ;;  %v7781_v12 = vld [vmem:[#allocation8 + $0x484] ss:$16 sps:$4 sm:$0xff]   ;;  %v7785_v14 = vld [vmem:[#allocation8 + $0x480] ss:$16 sps:$4 sm:$0xff]   ;;  %v560_v59 = vmax.f32 %v556_v55, 0.0  ;;  %v568_v60 = vmax.f32 %v564_v56, 0.0 }
 0x107   : > { %1615 = vmatpush1.bf16.msra.mxu1 %v7774_v7  ;;  %1573 = vmatprep.subr.bf16.mxu0 %v7775_v8  ;;  %v7783_v13 = vld [vmem:[#allocation8 + $0x684] ss:$16 sps:$4 sm:$0xff]   ;;  %v7786_v15 = vld [vmem:[#allocation8 + $0x680] ss:$16 sps:$4 sm:$0xff]   ;;  %p571_p11 = scmp.gt.s32.totalorder %s10289_s23, 0  ;;  %p579_p7 = scmp.lt.s32.totalorder %s10289_s23, 1 }
 0x108   : > { %1616 = vmatprep.subr.bf16.mxu1 %v7777_v9  ;;  %v7787_v16 = vld [vmem:[#allocation8 + $0x464] ss:$16 sps:$4 sm:$0xff]   ;;  %v7791_v18 = vld [vmem:[#allocation8 + $0x460] ss:$16 sps:$4 sm:$0xff]   ;;  %v558_v61 = vld [vmem:[%s9723_s26 + $0x18] sm:$0xc0] }
 0x109   : > { %v7789_v17 = vld [vmem:[#allocation8 + $0x664] ss:$16 sps:$4 sm:$0xff]   ;;  %v7792_v19 = vld [vmem:[#allocation8 + $0x660] ss:$16 sps:$4 sm:$0xff]   ;;  %s572_s1 = scalar_select %p571_p11, 1, 0 }
 0x10a   : > { %1574 = vmatpush1.bf16.msra.mxu0 %v7779_v10  ;;  %v7793_v20 = vld [vmem:[#allocation8 + $0x444] ss:$16 sps:$4 sm:$0xff]   ;;  %v7797_v22 = vld [vmem:[#allocation8 + $0x440] ss:$16 sps:$4 sm:$0xff]   ;;  %s580_s25 = scalar_select %p579_p7, 1, 0 }
 0x10b   : > { %1617 = vmatpush1.bf16.msra.mxu1 %v7780_v11  ;;  %1575 = vmatprep.subr.bf16.mxu0 %v7781_v12  ;;  %v7795_v21 = vld [vmem:[#allocation8 + $0x644] ss:$16 sps:$4 sm:$0xff]   ;;  %v7798_v23 = vld [vmem:[#allocation8 + $0x640] ss:$16 sps:$4 sm:$0xff]   ;;  %v573_v42 = vstv %s572_s1  ;;  %v566_v62 = vld [vmem:[%s9730_s19 + $0x18] sm:$0x3] }
 0x10c   : > { %1618 = vmatprep.subr.bf16.mxu1 %v7783_v13  ;;  %v7799_v24 = vld [vmem:[#allocation8 + $0x424] ss:$16 sps:$4 sm:$0xff]   ;;  %v7803_v26 = vld [vmem:[#allocation8 + $0x420] ss:$16 sps:$4 sm:$0xff]   ;;  %v581_v45 = vstv %s580_s25  ;;  %vm9750_vm0 = vcmp.eq.s32.totalorder %v573_v42, 1  ;;  %v608_v63 = vrot.slane %v588_v57, 6 }
 0x10d   : > { %v7801_v25 = vld [vmem:[#allocation8 + $0x624] ss:$16 sps:$4 sm:$0xff]   ;;  %v7804_v27 = vld [vmem:[#allocation8 + $0x620] ss:$16 sps:$4 sm:$0xff]   ;;  %vm9755_vm2 = vcmp.eq.s32.totalorder %v581_v45, 1  ;;  %v562_v0 = vmax.f32 %v558_v61, 0.0 }
 0x10e   : > { %1576 = vmatpush1.bf16.msra.mxu0 %v7785_v14  ;;  %v7805_v28 = vld [vmem:[#allocation8 + $0x404] ss:$16 sps:$4 sm:$0xff]   ;;  %v7809_v30 = vld [vmem:[#allocation8 + $0x400] ss:$16 sps:$4 sm:$0xff]   ;;  %v570_v1 = vmax.f32 %v566_v62, 0.0  ;;  %v590_v2 = vmax.f32 %v554_v58, 0.0 }
 0x10f   : > { %1619 = vmatpush1.bf16.msra.mxu1 %v7786_v15  ;;  %1577 = vmatprep.subr.bf16.mxu0 %v7787_v16  ;;  %v7807_v29 = vld [vmem:[#allocation8 + $0x604] ss:$16 sps:$4 sm:$0xff]   ;;  %v7810_v31 = vld [vmem:[#allocation8 + $0x600] ss:$16 sps:$4 sm:$0xff]   ;;  %v576_v6 = vsel %vm9750_vm0, %v560_v59, 0.0  ;;  %v584_v7 = vsel %vm9755_vm2, %v568_v60, 0.0 }
 0x110   : > { %1620 = vmatprep.subr.bf16.mxu1 %v7789_v17  ;;  %v7811_v32 = vld [vmem:[#allocation8 + $0x5e4] ss:$16 sps:$4 sm:$0xff]   ;;  %v7815_v34 = vld [vmem:[#allocation8 + $0x5e0] ss:$16 sps:$4 sm:$0xff]   ;;  %v596_v11 = vrot.slane %v576_v6, 6  ;;  %v620_v12 = vrot.slane %v584_v7, 6 }
 0x111   : > { %v7813_v33 = vld [vmem:[#allocation8 + $0x7e4] ss:$16 sps:$4 sm:$0xff]   ;;  %v7816_v35 = vld [vmem:[#allocation8 + $0x7e0] ss:$16 sps:$4 sm:$0xff]   ;;  %v578_v13 = vsel %vm9750_vm0, %v562_v0, 0.0  ;;  %v586_v14 = vsel %vm9755_vm2, %v570_v1, 0.0 }
 0x112   : > { %1578 = vmatpush1.bf16.msra.mxu0 %v7791_v18  ;;  %v7817_v36 = vld [vmem:[#allocation8 + $0x5c4] ss:$16 sps:$4 sm:$0xff]   ;;  %v7821_v38 = vld [vmem:[#allocation8 + $0x5c0] ss:$16 sps:$4 sm:$0xff]   ;;  %v598_v16 = vrot.slane %v578_v13, 6  ;;  %v610_v17 = vrot.slane %v590_v2, 6 }
 0x113   : > { %1621 = vmatpush1.bf16.msra.mxu1 %v7792_v19  ;;  %1579 = vmatprep.subr.bf16.mxu0 %v7793_v20  ;;  %v7819_v37 = vld [vmem:[#allocation8 + $0x7c4] ss:$16 sps:$4 sm:$0xff]   ;;  %v7822_v39 = vld [vmem:[#allocation8 + $0x7c0] ss:$16 sps:$4 sm:$0xff]   ;;  %v622_v18 = vrot.slane %v586_v14, 6  ;;  %v629_v20 = vsel %vm627_vm1, %v596_v11, %v608_v63  ;;  %s7148_s12 = sshll.u32 %s10289_s23, 3 }
 0x114   : > { %1622 = vmatprep.subr.bf16.mxu1 %v7795_v21  ;;  %v7823_v40 = vld [vmem:[#allocation8 + $0x5a4] ss:$16 sps:$4 sm:$0xff]   ;;  %v7827_v43 = vld [vmem:[#allocation8 + $0x5a0] ss:$16 sps:$4 sm:$0xff]   ;;  %v633_v21 = vsel %vm627_vm1, %v608_v63, %v620_v12  ;;  %v7861_v7 = vld [vmem:[#allocation8 + $0x4ec] ss:$16 sps:$4 sm:$0xff]  }
 0x115   : > { %v7825_v41 = vld [vmem:[#allocation8 + $0x7a4] ss:$16 sps:$4 sm:$0xff]   ;;  %v7828_v44 = vld [vmem:[#allocation8 + $0x7a0] ss:$16 sps:$4 sm:$0xff]   ;;  %v7859_v13 = vld [vmem:[#allocation8 + $0x4e8] ss:$16 sps:$4 sm:$0xff]  }
 0x116   : > { %1580 = vmatpush1.bf16.msra.mxu0 %v7797_v22  ;;  %v7829_v46 = vld [vmem:[#allocation8 + $0x584] ss:$16 sps:$4 sm:$0xff]   ;;  %v7833_v49 = vld [vmem:[#allocation8 + $0x580] ss:$16 sps:$4 sm:$0xff]   ;;  %v7862_v14 = vld [vmem:[#allocation8 + $0x6e8] ss:$16 sps:$4 sm:$0xff]  }
 0x117   : > { %1623 = vmatpush1.bf16.msra.mxu1 %v7798_v23  ;;  %1581 = vmatprep.subr.bf16.mxu0 %v7799_v24  ;;  %v7831_v47 = vld [vmem:[#allocation8 + $0x784] ss:$16 sps:$4 sm:$0xff]   ;;  %v7834_v50 = vld [vmem:[#allocation8 + $0x780] ss:$16 sps:$4 sm:$0xff]   ;;  %s7149_s24 = sadd.s32 4294967295, %s7148_s12  ;;  %s10100_s14 = scalar_lea.vmem [#allocation17], %s6754_s10 }
 0x118   : > { %1624 = vmatprep.subr.bf16.mxu1 %v7801_v25  ;;  %v7835_v53 = vld [vmem:[#allocation8 + $0x564] ss:$16 sps:$4 sm:$0xff]   ;;  %v7839_v4 = vld [vmem:[#allocation8 + $0x560] ss:$16 sps:$4 sm:$0xff]   ;;  %s7559_s6 = sshll.u32 %s10289_s23, 2  ;;  %s7560_s29 = sshll.u32 %s10300_s9, 3 }
 0x119   : > { %v7837_v54 = vld [vmem:[#allocation8 + $0x764] ss:$16 sps:$4 sm:$0xff]   ;;  %v7840_v5 = vld [vmem:[#allocation8 + $0x760] ss:$16 sps:$4 sm:$0xff]   ;;  %s6531_s10 = sadd.s32 %s7560_s29, %s7559_s6  ;;  %s6535_s18 = sshll.u32 %s10100_s14, 4  ;;  %s6536_s18 = int_to_ptr.vmem [resolvable:$true] %s6535_s18 }
 0x11a   : > { %1582 = vmatpush1.bf16.msra.mxu0 %v7803_v26  ;;  %v551_v3 = vld [vmem:[%s9715_s28] sm:$0xff]  ;;  %v557_v24 = vld [vmem:[%s9723_s26 + $0x10] sm:$0xc0]  ;;  %s6519_s25 = scalar_lea.sflag [#allocation4], %s9709_s5  ;;  %s9159_s12 = scalar_lea.vmem %s6536_s18, 512 }
 0x11b   : > { %1625 = vmatpush1.bf16.msra.mxu1 %v7804_v27  ;;  %1583 = vmatprep.subr.bf16.mxu0 %v7805_v28  ;;  %v555_v8 = vld [vmem:[%s9723_s26] sm:$0xc0]  ;;  %v563_v9 = vld [vmem:[%s9730_s19] sm:$0x3]  ;;  %v587_v23 = vmax.f32 %v551_v3, 0.0  ;;  %v9778_v27 = vpack.c.bf16 %v633_v21, %v629_v20  ;;  %v631_v28 = vsel %vm627_vm1, %v598_v16, %v610_v17  ;;  %s7561_s26 = sshll.u32 %s6531_s10, 7  ;;  %p9160_p9 = scmp.ne.s32.totalorder %s6536_s18, %s9159_s12 }
 0x11c   : > { %1626 = vmatprep.subr.bf16.mxu1 %v7807_v29  ;;  %v7841_v10 = vld [vmem:[#allocation8 + $0x544] ss:$16 sps:$4 sm:$0xff]   ;;  %v559_v19 = vmax.f32 %v555_v8, 0.0  ;;  %v567_v22 = vmax.f32 %v563_v9, 0.0  ;;  %v7845_v25 = vld [vmem:[#allocation8 + $0x540] ss:$16 sps:$4 sm:$0xff]   ;;  %v635_v29 = vsel %vm627_vm1, %v610_v17, %v622_v18 }
 0x11d   : > { %v7843_v15 = vld [vmem:[#allocation8 + $0x744] ss:$16 sps:$4 sm:$0xff]   ;;  %v7846_v26 = vld [vmem:[#allocation8 + $0x740] ss:$16 sps:$4 sm:$0xff]   ;;  %v7867_v16 = vld [vmem:[#allocation8 + $0x4cc] ss:$16 sps:$4 sm:$0xff]  }
 0x11e   : > { %1584 = vmatpush1.bf16.msra.mxu0 %v7809_v30  ;;  %v575_v30 = vsel %vm9750_vm0, %v559_v19, 0.0  ;;  %v7849_v42 = vld [vmem:[#allocation8 + $0x724] ss:$16 sps:$4 sm:$0xff]   ;;  %v7852_v58 = vld [vmem:[#allocation8 + $0x720] ss:$16 sps:$4 sm:$0xff]   ;;  %p10303_p2 = scmp.ne.s32.totalorder %s10261_s2, 0 }
 0x11f   : > { %1627 = vmatpush1.bf16.msra.mxu1 %v7810_v31  ;;  %1585 = vmatprep.subr.bf16.mxu0 %v7811_v32  ;;  %v565_v31 = vld [vmem:[%s9730_s19 + $0x10] sm:$0x3]  ;;  %v9785_v32 = vpack.c.bf16 %v635_v29, %v631_v28  ;;  %v7853_v62 = vld [vmem:[#allocation8 + $0x504] ss:$16 sps:$4 sm:$0xff]   ;;  %v7870_v17 = vld [vmem:[#allocation8 + $0x6cc] ss:$16 sps:$4 sm:$0xff]  }
 0x120   : > { %1628 = vmatprep.subr.bf16.mxu1 %v7813_v33  ;;  %v583_v33 = vsel %vm9755_vm2, %v567_v22, 0.0  ;;  %v7855_v48 = vld [vmem:[#allocation8 + $0x704] ss:$16 sps:$4 sm:$0xff]   ;;  %v7857_v2 = vld [vmem:[#allocation8 + $0x500] ss:$16 sps:$4 sm:$0xff]   ;;  %s10301_s19 = sld [smem:[#allocation43_spill]]  ;;  %p9161_p13 = pnand %p9160_p9, %p10303_p2 }
 0x121   : > { %v7858_v6 = vld [vmem:[#allocation8 + $0x700] ss:$16 sps:$4 sm:$0xff]   ;;  %v7865_v18 = vld [vmem:[#allocation8 + $0x4c8] ss:$16 sps:$4 sm:$0xff]   ;;  %v7873_v20 = vld [vmem:[#allocation8 + $0x4ac] ss:$16 sps:$4 sm:$0xff]  }
 0x122   : > { %1586 = vmatpush2.bf16.msra.mxu0 %v7815_v34  ;;  %v595_v34 = vrot.slane %v575_v30, 6  ;;  %v7868_v19 = vld [vmem:[#allocation8 + $0x6c8] ss:$16 sps:$4 sm:$0xff]   ;;  %v7876_v21 = vld [vmem:[#allocation8 + $0x6ac] ss:$16 sps:$4 sm:$0xff]   ;;  %p9162_p0 = pneg %p9161_p13 }
 0x123   : > { %1629 = vmatpush2.bf16.msra.mxu1 %v7816_v35  ;;  %1587 = vmatprep.subr.bf16.mxu0 %v7817_v36  ;;  %v607_v35 = vrot.slane %v587_v23, 6  ;;  %v553_v36 = vld [vmem:[%s9715_s28 + $0x10] sm:$0xff]  ;;  %v7871_v22 = vld [vmem:[#allocation8 + $0x4a8] ss:$16 sps:$4 sm:$0xff]   ;;  %v7885_v29 = vld [vmem:[#allocation8 + $0x46c] ss:$16 sps:$4 sm:$0xff]  }
 0x124   : > { %1630 = vmatprep.subr.bf16.mxu1 %v7819_v37  ;;  %v7847_v37 = vld [vmem:[#allocation8 + $0x524] ss:$16 sps:$4 sm:$0xff]   ;;  %v589_v51 = vmax.f32 %v553_v36, 0.0  ;;  %v7874_v23 = vld [vmem:[#allocation8 + $0x6a8] ss:$16 sps:$4 sm:$0xff]  }
 0x125   : > { %v628_v45 = vsel %vm627_vm1, %v595_v34, %v607_v35  ;;  %v7880_v28 = vld [vmem:[#allocation8 + $0x688] ss:$16 sps:$4 sm:$0xff]   ;;  %v7888_v30 = vld [vmem:[#allocation8 + $0x66c] ss:$16 sps:$4 sm:$0xff]  }
 0x126   : > { %1588 = vmatpush2.bf16.msra.mxu0 %v7821_v38  ;;  %v905_v38 = vshrl.u32 %v9778_v27, 16  ;;  %v609_v60 = vrot.slane %v589_v51, 6  ;;  %v7891_v34 = vld [vmem:[#allocation8 + $0x44c] ss:$16 sps:$4 sm:$0xff]   ;;  %v7889_v36 = vld [vmem:[#allocation8 + $0x448] ss:$16 sps:$4 sm:$0xff]   ;;  %s10302_s23 = smov %s10301_s19  ;;  %s6533_s1 = scalar_lea.hbm %s10301_s19, %s7561_s26 }
 0x127   : > { %1631 = vmatpush2.bf16.msra.mxu1 %v7822_v39  ;;  %1589 = vmatprep.subr.bf16.mxu0 %v7823_v40  ;;  %v907_v39 = vshll.u32 %v9778_v27, 16  ;;  %v619_v40 = vrot.slane %v583_v33, 6  ;;  %v7886_v33 = vld [vmem:[#allocation8 + $0x668] ss:$16 sps:$4 sm:$0xff]   ;;  %v7915_v51 = vld [vmem:[#allocation8 + $0x5cc] ss:$16 sps:$4 sm:$0xff]  }
 0x128   : > { %1632 = vmatprep.subr.bf16.mxu1 %v7825_v41  ;;  %v561_v41 = vmax.f32 %v557_v24, 0.0  ;;  %v7879_v24 = vld [vmem:[#allocation8 + $0x48c] ss:$16 sps:$4 sm:$0xff]  }
 0x12a   : > { %1590 = vmatpush2.bf16.msra.mxu0 %v7827_v43  ;;  %v919_v43 = vshrl.u32 %v9785_v32, 16 }
 0x12b   : > { %1633 = vmatpush2.bf16.msra.mxu1 %v7828_v44  ;;  %1591 = vmatprep.subr.bf16.mxu0 %v7829_v46  ;;  %v921_v44 = vshll.u32 %v9785_v32, 16  ;;  %v569_v46 = vmax.f32 %v565_v31, 0.0  ;;  %v7883_v31 = vld [vmem:[#allocation8 + $0x468] ss:$16 sps:$4 sm:$0xff]  }
 0x12c   : > { %1634 = vmatprep.subr.bf16.mxu1 %v7831_v47  ;;  %v909_v47 = vrot.slane %v907_v39, 1  ;;  %v7900_v39 = vld [vmem:[#allocation8 + $0x62c] ss:$16 sps:$4 sm:$0xff]  }
 0x12d   : > { %v585_v56 = vsel %vm9755_vm2, %v569_v46, 0.0  ;;  %v7909_v46 = vld [vmem:[#allocation8 + $0x5ec] ss:$16 sps:$4 sm:$0xff]  }
 0x12e   : > { %1592 = vmatpush2.bf16.msra.mxu0 %v7833_v49  ;;  %v632_v49 = vsel %vm627_vm1, %v607_v35, %v619_v40  ;;  %v910_v59 = vor.u32 %v909_v47, %v905_v38  ;;  %v621_v61 = vrot.slane %v585_v56, 6  ;;  %v7894_v35 = vld [vmem:[#allocation8 + $0x64c] ss:$16 sps:$4 sm:$0xff]   ;;  %v7895_v40 = vld [vmem:[#allocation8 + $0x428] ss:$16 sps:$4 sm:$0xff]  }
 0x12f   : > { %1635 = vmatpush2.bf16.msra.mxu1 %v7834_v50  ;;  %1593 = vmatprep.subr.bf16.mxu0 %v7835_v53  ;;  %v577_v50 = vsel %vm9750_vm0, %v561_v41, 0.0  ;;  %v7851_v53 = vld [vmem:[#allocation8 + $0x520] ss:$16 sps:$4 sm:$0xff]   ;;  %v9798_v55 = vpack.c.bf16 %v632_v49, %v628_v45  ;;  %v7897_v38 = vld [vmem:[#allocation8 + $0x42c] ss:$16 sps:$4 sm:$0xff]  }
 0x130   : > { %1636 = vmatprep.subr.bf16.mxu1 %v7837_v54  ;;  %v923_v54 = vrot.slane %v921_v44, 1  ;;  %v597_v57 = vrot.slane %v577_v50, 6  ;;  %1601 = vmatprep.mubr.bf16.mxu0 %v910_v59  ;;  %v634_v52 = vsel %vm627_vm1, %v609_v60, %v621_v61  ;;  %v7898_v41 = vld [vmem:[#allocation8 + $0x628] ss:$16 sps:$4 sm:$0xff]   ;;  %v7912_v47 = vld [vmem:[#allocation8 + $0x7ec] ss:$16 sps:$4 sm:$0xff]  }
 0x131   : > { %v900_v0 = vshll.u32 %v9798_v55, 16  ;;  %v898_v3 = vshrl.u32 %v9798_v55, 16  ;;  %v7901_v44 = vld [vmem:[#allocation8 + $0x408] ss:$16 sps:$4 sm:$0xff]   ;;  %v7927_v61 = vld [vmem:[#allocation8 + $0x58c] ss:$16 sps:$4 sm:$0xff]  }
 0x132   : > { %1594 = vmatpush2.bf16.msra.mxu0 %v7839_v4  ;;  %v924_v63 = vor.u32 %v923_v54, %v919_v43  ;;  %v630_v1 = vsel %vm627_vm1, %v597_v57, %v609_v60  ;;  %v7906_v43 = vld [vmem:[#allocation8 + $0x60c] ss:$16 sps:$4 sm:$0xff]   ;;  %v7904_v45 = vld [vmem:[#allocation8 + $0x608] ss:$16 sps:$4 sm:$0xff]  }
 0x133   : > { %1637 = vmatpush2.bf16.msra.mxu1 %v7840_v5  ;;  %1595 = vmatprep.subr.bf16.mxu0 %v7841_v10  ;;  %v902_v4 = vrot.slane %v900_v0, 1  ;;  %v9806_v5 = vpack.c.bf16 %v634_v52, %v630_v1  ;;  %v7864_v10 = vld [vmem:[#allocation8 + $0x6ec] ss:$16 sps:$4 sm:$0xff]   ;;  %v7907_v49 = vld [vmem:[#allocation8 + $0x5e8] ss:$16 sps:$4 sm:$0xff]  }
 0x134   : > { %1638 = vmatprep.subr.bf16.mxu1 %v7843_v15  ;;  %1644 = vmatprep.mubr.bf16.mxu1 %v924_v63  ;;  %v7910_v50 = vld [vmem:[#allocation8 + $0x7e8] ss:$16 sps:$4 sm:$0xff]   ;;  %v7921_v57 = vld [vmem:[#allocation8 + $0x5ac] ss:$16 sps:$4 sm:$0xff]  }
 0x135   : > { %v912_v8 = vshrl.u32 %v9806_v5, 16  ;;  %v914_v9 = vshll.u32 %v9806_v5, 16  ;;  %v9810_v11 = vor.u32 %v902_v4, %v898_v3  ;;  %v7913_v54 = vld [vmem:[#allocation8 + $0x5c8] ss:$16 sps:$4 sm:$0xff]   ;;  %v7933_v0 = vld [vmem:[#allocation8 + $0x56c] ss:$16 sps:$4 sm:$0xff]  }
 0x136   : > { %1596 = vmatpush2.bf16.msra.mxu0 %v7845_v25  ;;  %v7882_v25 = vld [vmem:[#allocation8 + $0x68c] ss:$16 sps:$4 sm:$0xff]   ;;  %v7916_v56 = vld [vmem:[#allocation8 + $0x7c8] ss:$16 sps:$4 sm:$0xff]  }
 0x137   : > { %1639 = vmatpush2.bf16.msra.mxu1 %v7846_v26  ;;  %1597 = vmatprep.subr.bf16.mxu0 %v7847_v37  ;;  %v916_v12 = vrot.slane %v914_v9, 1  ;;  %v7877_v26 = vld [vmem:[#allocation8 + $0x488] ss:$16 sps:$4 sm:$0xff]   ;;  %v7936_v1 = vld [vmem:[#allocation8 + $0x76c] ss:$16 sps:$4 sm:$0xff]  }
 0x138   : > { %1640 = vmatprep.subr.bf16.mxu1 %v7849_v42  ;;  %v7892_v37 = vld [vmem:[#allocation8 + $0x648] ss:$16 sps:$4 sm:$0xff]   ;;  %v7903_v42 = vld [vmem:[#allocation8 + $0x40c] ss:$16 sps:$4 sm:$0xff]  }
 0x139   : > { %v9812_v15 = vor.u32 %v916_v12, %v912_v8  ;;  %v7922_v60 = vld [vmem:[#allocation8 + $0x7a8] ss:$16 sps:$4 sm:$0xff]   ;;  %v7939_v3 = vld [vmem:[#allocation8 + $0x54c] ss:$16 sps:$4 sm:$0xff]  }
 0x13a   : > { %1598 = vmatpush2.bf16.msra.mxu0 %v7851_v53  ;;  %v7918_v53 = vld [vmem:[#allocation8 + $0x7cc] ss:$16 sps:$4 sm:$0xff]   ;;  %v7931_v52 = vld [vmem:[#allocation8 + $0x568] ss:$16 sps:$4 sm:$0xff]  }
 0x13b   : > { %1641 = vmatpush2.bf16.msra.mxu1 %v7852_v58  ;;  %1599 = vmatprep.subr.bf16.mxu0 %v7853_v62  ;;  %v7924_v58 = vld [vmem:[#allocation8 + $0x7ac] ss:$16 sps:$4 sm:$0xff]   ;;  %v7946_v12 = vld [vmem:[#allocation8 + $0x728] ss:$16 sps:$4 sm:$0xff]  }
 0x13c   : > { %1642 = vmatprep.subr.bf16.mxu1 %v7855_v48  ;;  %v7930_v62 = vld [vmem:[#allocation8 + $0x78c] ss:$16 sps:$4 sm:$0xff]   ;;  %v7925_v48 = vld [vmem:[#allocation8 + $0x588] ss:$16 sps:$4 sm:$0xff]  }
 0x13d   : > { %v7942_v4 = vld [vmem:[#allocation8 + $0x74c] ss:$16 sps:$4 sm:$0xff]  }
 0x13e   : > { %1600 = vmatpush2.bf16.msra.mxu0 %v7857_v2  ;;  %v7934_v2 = vld [vmem:[#allocation8 + $0x768] ss:$16 sps:$4 sm:$0xff]   ;;  %v7945_v8 = vld [vmem:[#allocation8 + $0x52c] ss:$16 sps:$4 sm:$0xff]  }
 0x13f   : > { %1643 = vmatpush2.bf16.msra.mxu1 %v7858_v6  ;;  %1655 = vmatprep.subr.bf16.mxu0 %v7861_v7  ;;  %v7937_v6 = vld [vmem:[#allocation8 + $0x548] ss:$16 sps:$4 sm:$0xff]   ;;  %v7948_v9 = vld [vmem:[#allocation8 + $0x72c] ss:$16 sps:$4 sm:$0xff]  }
 0x140   : > { %1698 = vmatprep.subr.bf16.mxu1 %v7864_v10  ;;  %v7940_v7 = vld [vmem:[#allocation8 + $0x748] ss:$16 sps:$4 sm:$0xff]  }
 0x141   : > { %1602 = vmatmul.mubr.bf16.vlgmr.msra.gmra.mxu0 %v9810_v11  ;;  %v7943_v10 = vld [vmem:[#allocation8 + $0x528] ss:$16 sps:$4 sm:$0xff]  }
 0x142   : > { %1645 = vmatmul.mubr.bf16.vlgmr.msra.gmra.mxu1 %v9812_v15  ;;  %1656 = vmatpush1.bf16.msra.mxu0 %v7859_v13  ;;  %v7951_v13 = vld [vmem:[#allocation8 + $0x50c] ss:$16 sps:$4 sm:$0xff]  }
 0x143   : > { %1699 = vmatpush1.bf16.msra.mxu1 %v7862_v14  ;;  %1657 = vmatprep.subr.bf16.mxu0 %v7867_v16  ;;  %v7954_v14 = vld [vmem:[#allocation8 + $0x70c] ss:$16 sps:$4 sm:$0xff]   ;;  %v7949_v16 = vld [vmem:[#allocation8 + $0x508] ss:$16 sps:$4 sm:$0xff]  }
 0x144   : > { %1700 = vmatprep.subr.bf16.mxu1 %v7870_v17  ;;  %1687 = vmatprep.mubr.bf16.mxu0 %v910_v59  ;;  %v7919_v59 = vld [vmem:[#allocation8 + $0x5a8] ss:$16 sps:$4 sm:$0xff]  }
 0x145   : > { %1730 = vmatprep.mubr.bf16.mxu1 %v924_v63  ;;  %v7928_v63 = vld [vmem:[#allocation8 + $0x788] ss:$16 sps:$4 sm:$0xff]  }
 0x146   : > { %1658 = vmatpush1.bf16.msra.mxu0 %v7865_v18  ;;  %v7952_v17 = vld [vmem:[#allocation8 + $0x708] ss:$16 sps:$4 sm:$0xff]   ;;  %v7957_v18 = vld [vmem:[#allocation8 + $0xe4] ss:$16 sps:$4 sm:$0xff]  }
 0x147   : > { %1701 = vmatpush1.bf16.msra.mxu1 %v7868_v19  ;;  %1659 = vmatprep.subr.bf16.mxu0 %v7873_v20  ;;  %v7960_v19 = vld [vmem:[#allocation8 + $0x2e4] ss:$16 sps:$4 sm:$0xff]   ;;  %v7955_v20 = vld [vmem:[#allocation8 + $0xe0] ss:$16 sps:$4 sm:$0xff]  }
 0x148   : > { %1702 = vmatprep.subr.bf16.mxu1 %v7876_v21  ;;  %v7958_v21 = vld [vmem:[#allocation8 + $0x2e0] ss:$16 sps:$4 sm:$0xff]  }
 0x14a   : > { %1660 = vmatpush1.bf16.msra.mxu0 %v7871_v22  ;;  %v7963_v22 = vld [vmem:[#allocation8 + $0xc4] ss:$16 sps:$4 sm:$0xff]  }
 0x14b   : > { %1703 = vmatpush1.bf16.msra.mxu1 %v7874_v23  ;;  %1661 = vmatprep.subr.bf16.mxu0 %v7879_v24  ;;  %v7966_v23 = vld [vmem:[#allocation8 + $0x2c4] ss:$16 sps:$4 sm:$0xff]   ;;  %v7961_v24 = vld [vmem:[#allocation8 + $0xc0] ss:$16 sps:$4 sm:$0xff]  }
 0x14c   : > { %1704 = vmatprep.subr.bf16.mxu1 %v7882_v25  ;;  %v7964_v25 = vld [vmem:[#allocation8 + $0x2c0] ss:$16 sps:$4 sm:$0xff]  }
 0x14e   : > { %1662 = vmatpush1.bf16.msra.mxu0 %v7877_v26  ;;  %v7969_v26 = vld [vmem:[#allocation8 + $0xa4] ss:$16 sps:$4 sm:$0xff]  }
 0x14f   : > { %1705 = vmatpush1.bf16.msra.mxu1 %v7880_v28  ;;  %1663 = vmatprep.subr.bf16.mxu0 %v7885_v29  ;;  %v7972_v28 = vld [vmem:[#allocation8 + $0x2a4] ss:$16 sps:$4 sm:$0xff]   ;;  %v7967_v29 = vld [vmem:[#allocation8 + $0xa0] ss:$16 sps:$4 sm:$0xff]  }
 0x150   : > { %1706 = vmatprep.subr.bf16.mxu1 %v7888_v30  ;;  %v7970_v30 = vld [vmem:[#allocation8 + $0x2a0] ss:$16 sps:$4 sm:$0xff]  }
 0x152   : > { %1664 = vmatpush1.bf16.msra.mxu0 %v7883_v31  ;;  %v7973_v31 = vld [vmem:[#allocation8 + $0x80] ss:$16 sps:$4 sm:$0xff]  }
 0x153   : > { %1707 = vmatpush1.bf16.msra.mxu1 %v7886_v33  ;;  %1665 = vmatprep.subr.bf16.mxu0 %v7891_v34  ;;  %v7976_v33 = vld [vmem:[#allocation8 + $0x280] ss:$16 sps:$4 sm:$0xff]   ;;  %v7981_v34 = vld [vmem:[#allocation8 + $0x64] ss:$16 sps:$4 sm:$0xff]  }
 0x154   : > { %1708 = vmatprep.subr.bf16.mxu1 %v7894_v35  ;;  %v7984_v35 = vld [vmem:[#allocation8 + $0x264] ss:$16 sps:$4 sm:$0xff]  }
 0x156   : > { %1666 = vmatpush1.bf16.msra.mxu0 %v7889_v36  ;;  %v7979_v36 = vld [vmem:[#allocation8 + $0x60] ss:$16 sps:$4 sm:$0xff]  }
 0x157   : > { %1709 = vmatpush1.bf16.msra.mxu1 %v7892_v37  ;;  %1667 = vmatprep.subr.bf16.mxu0 %v7897_v38  ;;  %v7982_v37 = vld [vmem:[#allocation8 + $0x260] ss:$16 sps:$4 sm:$0xff]   ;;  %v7987_v38 = vld [vmem:[#allocation8 + $0x44] ss:$16 sps:$4 sm:$0xff]  }
 0x158   : > { %1710 = vmatprep.subr.bf16.mxu1 %v7900_v39  ;;  %v7990_v39 = vld [vmem:[#allocation8 + $0x244] ss:$16 sps:$4 sm:$0xff]  }
 0x15a   : > { %1668 = vmatpush1.bf16.msra.mxu0 %v7895_v40  ;;  %v7985_v40 = vld [vmem:[#allocation8 + $0x40] ss:$16 sps:$4 sm:$0xff]  }
 0x15b   : > { %1711 = vmatpush1.bf16.msra.mxu1 %v7898_v41  ;;  %1669 = vmatprep.subr.bf16.mxu0 %v7903_v42  ;;  %v7988_v41 = vld [vmem:[#allocation8 + $0x240] ss:$16 sps:$4 sm:$0xff]   ;;  %v7993_v42 = vld [vmem:[#allocation8 + $0x24] ss:$16 sps:$4 sm:$0xff]  }
 0x15c   : > { %1712 = vmatprep.subr.bf16.mxu1 %v7906_v43  ;;  %v7996_v43 = vld [vmem:[#allocation8 + $0x224] ss:$16 sps:$4 sm:$0xff]  }
 0x15e   : > { %1670 = vmatpush1.bf16.msra.mxu0 %v7901_v44  ;;  %v7991_v44 = vld [vmem:[#allocation8 + $0x20] ss:$16 sps:$4 sm:$0xff]  }
 0x15f   : > { %1713 = vmatpush1.bf16.msra.mxu1 %v7904_v45  ;;  %1671 = vmatprep.subr.bf16.mxu0 %v7909_v46  ;;  %v7994_v45 = vld [vmem:[#allocation8 + $0x220] ss:$16 sps:$4 sm:$0xff]   ;;  %v7999_v46 = vld [vmem:[#allocation8 + $0x4] ss:$16 sps:$4 sm:$0xff]  }
 0x160   : > { %1714 = vmatprep.subr.bf16.mxu1 %v7912_v47  ;;  %v8002_v47 = vld [vmem:[#allocation8 + $0x204] ss:$16 sps:$4 sm:$0xff]  }
 0x162   : > { %1672 = vmatpush2.bf16.msra.mxu0 %v7907_v49  ;;  %v7997_v49 = vld [vmem:[#allocation8] ss:$16 sps:$4 sm:$0xff]  }
 0x163   : > { %1715 = vmatpush2.bf16.msra.mxu1 %v7910_v50  ;;  %1673 = vmatprep.subr.bf16.mxu0 %v7915_v51  ;;  %v8000_v50 = vld [vmem:[#allocation8 + $0x200] ss:$16 sps:$4 sm:$0xff]   ;;  %v8005_v51 = vld [vmem:[#allocation8 + $0x1e4] ss:$16 sps:$4 sm:$0xff]  }
 0x164   : > { %1716 = vmatprep.subr.bf16.mxu1 %v7918_v53  ;;  %v8008_v53 = vld [vmem:[#allocation8 + $0x3e4] ss:$16 sps:$4 sm:$0xff]  }
 0x166   : > { %1674 = vmatpush2.bf16.msra.mxu0 %v7913_v54  ;;  %v8003_v54 = vld [vmem:[#allocation8 + $0x1e0] ss:$16 sps:$4 sm:$0xff]  }
 0x167   : > { %1717 = vmatpush2.bf16.msra.mxu1 %v7916_v56  ;;  %1675 = vmatprep.subr.bf16.mxu0 %v7921_v57  ;;  %v8006_v56 = vld [vmem:[#allocation8 + $0x3e0] ss:$16 sps:$4 sm:$0xff]   ;;  %v8011_v57 = vld [vmem:[#allocation8 + $0x1c4] ss:$16 sps:$4 sm:$0xff]  }
 0x168   : > { %1718 = vmatprep.subr.bf16.mxu1 %v7924_v58  ;;  %v8014_v58 = vld [vmem:[#allocation8 + $0x3c4] ss:$16 sps:$4 sm:$0xff]  }
 0x16a   : > { %1676 = vmatpush2.bf16.msra.mxu0 %v7919_v59  ;;  %v8009_v59 = vld [vmem:[#allocation8 + $0x1c0] ss:$16 sps:$4 sm:$0xff]  }
 0x16b   : > { %1719 = vmatpush2.bf16.msra.mxu1 %v7922_v60  ;;  %1677 = vmatprep.subr.bf16.mxu0 %v7927_v61  ;;  %v8012_v60 = vld [vmem:[#allocation8 + $0x3c0] ss:$16 sps:$4 sm:$0xff]   ;;  %v8017_v61 = vld [vmem:[#allocation8 + $0x1a4] ss:$16 sps:$4 sm:$0xff]  }
 0x16c   : > { %1720 = vmatprep.subr.bf16.mxu1 %v7930_v62  ;;  %v8020_v62 = vld [vmem:[#allocation8 + $0x3a4] ss:$16 sps:$4 sm:$0xff]  }
 0x16e   : > { %1678 = vmatpush2.bf16.msra.mxu0 %v7925_v48  ;;  %v8015_v48 = vld [vmem:[#allocation8 + $0x1a0] ss:$16 sps:$4 sm:$0xff]  }
 0x16f   : > { %1721 = vmatpush2.bf16.msra.mxu1 %v7928_v63  ;;  %1679 = vmatprep.subr.bf16.mxu0 %v7933_v0  ;;  %v8018_v63 = vld [vmem:[#allocation8 + $0x3a0] ss:$16 sps:$4 sm:$0xff]   ;;  %v8023_v0 = vld [vmem:[#allocation8 + $0x184] ss:$16 sps:$4 sm:$0xff]  }
 0x170   : > { %1722 = vmatprep.subr.bf16.mxu1 %v7936_v1  ;;  %v8026_v1 = vld [vmem:[#allocation8 + $0x384] ss:$16 sps:$4 sm:$0xff]  }
 0x172   : > { %1680 = vmatpush2.bf16.msra.mxu0 %v7931_v52  ;;  %v8021_v52 = vld [vmem:[#allocation8 + $0x180] ss:$16 sps:$4 sm:$0xff]  }
 0x173   : > { %1723 = vmatpush2.bf16.msra.mxu1 %v7934_v2  ;;  %1681 = vmatprep.subr.bf16.mxu0 %v7939_v3  ;;  %v8024_v2 = vld [vmem:[#allocation8 + $0x380] ss:$16 sps:$4 sm:$0xff]   ;;  %v8029_v3 = vld [vmem:[#allocation8 + $0x164] ss:$16 sps:$4 sm:$0xff]  }
 0x174   : > { %1724 = vmatprep.subr.bf16.mxu1 %v7942_v4  ;;  %v8032_v4 = vld [vmem:[#allocation8 + $0x364] ss:$16 sps:$4 sm:$0xff]  }
 0x176   : > { %1682 = vmatpush2.bf16.msra.mxu0 %v7937_v6  ;;  %v8027_v6 = vld [vmem:[#allocation8 + $0x160] ss:$16 sps:$4 sm:$0xff]  }
 0x177   : > { %1725 = vmatpush2.bf16.msra.mxu1 %v7940_v7  ;;  %1683 = vmatprep.subr.bf16.mxu0 %v7945_v8  ;;  %v8030_v7 = vld [vmem:[#allocation8 + $0x360] ss:$16 sps:$4 sm:$0xff]   ;;  %v8035_v8 = vld [vmem:[#allocation8 + $0x144] ss:$16 sps:$4 sm:$0xff]  }
 0x178   : > { %1726 = vmatprep.subr.bf16.mxu1 %v7948_v9  ;;  %v8038_v9 = vld [vmem:[#allocation8 + $0x344] ss:$16 sps:$4 sm:$0xff]  }
 0x17a   : > { %1684 = vmatpush2.bf16.msra.mxu0 %v7943_v10  ;;  %v8033_v10 = vld [vmem:[#allocation8 + $0x140] ss:$16 sps:$4 sm:$0xff]  }
 0x17b   : > { %1727 = vmatpush2.bf16.msra.mxu1 %v7946_v12  ;;  %1685 = vmatprep.subr.bf16.mxu0 %v7951_v13  ;;  %v8036_v12 = vld [vmem:[#allocation8 + $0x340] ss:$16 sps:$4 sm:$0xff]   ;;  %v8041_v13 = vld [vmem:[#allocation8 + $0x124] ss:$16 sps:$4 sm:$0xff]  }
 0x17c   : > { %1728 = vmatprep.subr.bf16.mxu1 %v7954_v14  ;;  %v8044_v14 = vld [vmem:[#allocation8 + $0x324] ss:$16 sps:$4 sm:$0xff]  }
 0x17e   : > { %1686 = vmatpush2.bf16.msra.mxu0 %v7949_v16  ;;  %v8039_v16 = vld [vmem:[#allocation8 + $0x120] ss:$16 sps:$4 sm:$0xff]  }
 0x17f   : > { %1729 = vmatpush2.bf16.msra.mxu1 %v7952_v17  ;;  %2381 = vmatprep.subr.bf16.mxu0 %v7957_v18  ;;  %v8042_v17 = vld [vmem:[#allocation8 + $0x320] ss:$16 sps:$4 sm:$0xff]   ;;  %v8047_v18 = vld [vmem:[#allocation8 + $0x104] ss:$16 sps:$4 sm:$0xff]  }
 0x180   : > { %2424 = vmatprep.subr.bf16.mxu1 %v7960_v19  ;;  %v8050_v19 = vld [vmem:[#allocation8 + $0x304] ss:$16 sps:$4 sm:$0xff]  }
 0x181   : > { %1688 = vmatmul.mubr.bf16.vlgmr.msra.gmra.mxu0 %v9810_v11  ;;  %v7975_v11 = vld [vmem:[#allocation8 + $0x84] ss:$16 sps:$4 sm:$0xff]  }
 0x182   : > { %1731 = vmatmul.mubr.bf16.vlgmr.msra.gmra.mxu1 %v9812_v15  ;;  %2382 = vmatpush1.bf16.msra.mxu0 %v7955_v20  ;;  %v7978_v15 = vld [vmem:[#allocation8 + $0x284] ss:$16 sps:$4 sm:$0xff]   ;;  %v8045_v20 = vld [vmem:[#allocation8 + $0x100] ss:$16 sps:$4 sm:$0xff]  }
 0x183   : > { %2425 = vmatpush1.bf16.msra.mxu1 %v7958_v21  ;;  %2383 = vmatprep.subr.bf16.mxu0 %v7963_v22  ;;  %v8048_v21 = vld [vmem:[#allocation8 + $0x300] ss:$16 sps:$4 sm:$0xff]   ;;  %v8053_v22 = vld [vmem:[#allocation8 + $0xec] ss:$16 sps:$4 sm:$0xff]  }
 0x184   : > { %2426 = vmatprep.subr.bf16.mxu1 %v7966_v23  ;;  %2413 = vmatprep.mubr.bf16.mxu0 %v9778_v27  ;;  %v8056_v23 = vld [vmem:[#allocation8 + $0x2ec] ss:$16 sps:$4 sm:$0xff]  }
 0x185   : > { %2456 = vmatprep.mubr.bf16.mxu1 %v9785_v32 }
 0x186   : > { %2384 = vmatpush1.bf16.msra.mxu0 %v7961_v24  ;;  %v8051_v24 = vld [vmem:[#allocation8 + $0xe8] ss:$16 sps:$4 sm:$0xff]  }
 0x187   : > { %2427 = vmatpush1.bf16.msra.mxu1 %v7964_v25  ;;  %2385 = vmatprep.subr.bf16.mxu0 %v7969_v26  ;;  %v8054_v25 = vld [vmem:[#allocation8 + $0x2e8] ss:$16 sps:$4 sm:$0xff]   ;;  %v8059_v26 = vld [vmem:[#allocation8 + $0xcc] ss:$16 sps:$4 sm:$0xff]  }
 0x188   : > { %2428 = vmatprep.subr.bf16.mxu1 %v7972_v28  ;;  %v8062_v28 = vld [vmem:[#allocation8 + $0x2cc] ss:$16 sps:$4 sm:$0xff]  }
 0x18a   : > { %2386 = vmatpush1.bf16.msra.mxu0 %v7967_v29  ;;  %v8057_v29 = vld [vmem:[#allocation8 + $0xc8] ss:$16 sps:$4 sm:$0xff]  }
 0x18b   : > { %2429 = vmatpush1.bf16.msra.mxu1 %v7970_v30  ;;  %2387 = vmatprep.subr.bf16.mxu0 %v7975_v11  ;;  %v8060_v30 = vld [vmem:[#allocation8 + $0x2c8] ss:$16 sps:$4 sm:$0xff]   ;;  %v8065_v11 = vld [vmem:[#allocation8 + $0xac] ss:$16 sps:$4 sm:$0xff]  }
 0x18c   : > { %2430 = vmatprep.subr.bf16.mxu1 %v7978_v15  ;;  %v8068_v15 = vld [vmem:[#allocation8 + $0x2ac] ss:$16 sps:$4 sm:$0xff]  }
 0x18e   : > { %2388 = vmatpush1.bf16.msra.mxu0 %v7973_v31  ;;  %v8063_v31 = vld [vmem:[#allocation8 + $0xa8] ss:$16 sps:$4 sm:$0xff]  }
 0x18f   : > { %2431 = vmatpush1.bf16.msra.mxu1 %v7976_v33  ;;  %2389 = vmatprep.subr.bf16.mxu0 %v7981_v34  ;;  %v8066_v33 = vld [vmem:[#allocation8 + $0x2a8] ss:$16 sps:$4 sm:$0xff]   ;;  %v8071_v34 = vld [vmem:[#allocation8 + $0x8c] ss:$16 sps:$4 sm:$0xff]  }
 0x190   : > { %2432 = vmatprep.subr.bf16.mxu1 %v7984_v35  ;;  %v8074_v35 = vld [vmem:[#allocation8 + $0x28c] ss:$16 sps:$4 sm:$0xff]  }
 0x192   : > { %2390 = vmatpush1.bf16.msra.mxu0 %v7979_v36  ;;  %v8069_v36 = vld [vmem:[#allocation8 + $0x88] ss:$16 sps:$4 sm:$0xff]  }
 0x193   : > { %2433 = vmatpush1.bf16.msra.mxu1 %v7982_v37  ;;  %2391 = vmatprep.subr.bf16.mxu0 %v7987_v38  ;;  %v8072_v37 = vld [vmem:[#allocation8 + $0x288] ss:$16 sps:$4 sm:$0xff]   ;;  %v8077_v38 = vld [vmem:[#allocation8 + $0x6c] ss:$16 sps:$4 sm:$0xff]  }
 0x194   : > { %2434 = vmatprep.subr.bf16.mxu1 %v7990_v39  ;;  %v8080_v39 = vld [vmem:[#allocation8 + $0x26c] ss:$16 sps:$4 sm:$0xff]  }
 0x196   : > { %2392 = vmatpush1.bf16.msra.mxu0 %v7985_v40  ;;  %v8075_v40 = vld [vmem:[#allocation8 + $0x68] ss:$16 sps:$4 sm:$0xff]  }
 0x197   : > { %2435 = vmatpush1.bf16.msra.mxu1 %v7988_v41  ;;  %2393 = vmatprep.subr.bf16.mxu0 %v7993_v42  ;;  %v8078_v41 = vld [vmem:[#allocation8 + $0x268] ss:$16 sps:$4 sm:$0xff]   ;;  %v8083_v42 = vld [vmem:[#allocation8 + $0x4c] ss:$16 sps:$4 sm:$0xff]  }
 0x198   : > { %2436 = vmatprep.subr.bf16.mxu1 %v7996_v43  ;;  %v8086_v43 = vld [vmem:[#allocation8 + $0x24c] ss:$16 sps:$4 sm:$0xff]  }
 0x19a   : > { %2394 = vmatpush1.bf16.msra.mxu0 %v7991_v44  ;;  %v8081_v44 = vld [vmem:[#allocation8 + $0x48] ss:$16 sps:$4 sm:$0xff]  }
 0x19b   : > { %2437 = vmatpush1.bf16.msra.mxu1 %v7994_v45  ;;  %2395 = vmatprep.subr.bf16.mxu0 %v7999_v46  ;;  %v8084_v45 = vld [vmem:[#allocation8 + $0x248] ss:$16 sps:$4 sm:$0xff]   ;;  %v8089_v46 = vld [vmem:[#allocation8 + $0x2c] ss:$16 sps:$4 sm:$0xff]  }
 0x19c   : > { %2438 = vmatprep.subr.bf16.mxu1 %v8002_v47  ;;  %v8092_v47 = vld [vmem:[#allocation8 + $0x22c] ss:$16 sps:$4 sm:$0xff]  }
 0x19e   : > { %2396 = vmatpush1.bf16.msra.mxu0 %v7997_v49  ;;  %v8087_v49 = vld [vmem:[#allocation8 + $0x28] ss:$16 sps:$4 sm:$0xff]  }
 0x19f   : > { %2439 = vmatpush1.bf16.msra.mxu1 %v8000_v50  ;;  %2397 = vmatprep.subr.bf16.mxu0 %v8005_v51  ;;  %v8090_v50 = vld [vmem:[#allocation8 + $0x228] ss:$16 sps:$4 sm:$0xff]   ;;  %v8095_v51 = vld [vmem:[#allocation8 + $0xc] ss:$16 sps:$4 sm:$0xff]  }
 0x1a0   : > { %2440 = vmatprep.subr.bf16.mxu1 %v8008_v53  ;;  %v8098_v53 = vld [vmem:[#allocation8 + $0x20c] ss:$16 sps:$4 sm:$0xff]  }
 0x1a2   : > { %2398 = vmatpush2.bf16.msra.mxu0 %v8003_v54  ;;  %v8093_v54 = vld [vmem:[#allocation8 + $0x8] ss:$16 sps:$4 sm:$0xff]  }
 0x1a3   : > { %2441 = vmatpush2.bf16.msra.mxu1 %v8006_v56  ;;  %2399 = vmatprep.subr.bf16.mxu0 %v8011_v57  ;;  %v8096_v56 = vld [vmem:[#allocation8 + $0x208] ss:$16 sps:$4 sm:$0xff]   ;;  %v8101_v57 = vld [vmem:[#allocation8 + $0x1ec] ss:$16 sps:$4 sm:$0xff]  }
 0x1a4   : > { %2442 = vmatprep.subr.bf16.mxu1 %v8014_v58  ;;  %v8104_v58 = vld [vmem:[#allocation8 + $0x3ec] ss:$16 sps:$4 sm:$0xff]  }
 0x1a6   : > { %2400 = vmatpush2.bf16.msra.mxu0 %v8009_v59  ;;  %v8099_v59 = vld [vmem:[#allocation8 + $0x1e8] ss:$16 sps:$4 sm:$0xff]  }
 0x1a7   : > { %2443 = vmatpush2.bf16.msra.mxu1 %v8012_v60  ;;  %2401 = vmatprep.subr.bf16.mxu0 %v8017_v61  ;;  %v8102_v60 = vld [vmem:[#allocation8 + $0x3e8] ss:$16 sps:$4 sm:$0xff]   ;;  %v8107_v61 = vld [vmem:[#allocation8 + $0x1cc] ss:$16 sps:$4 sm:$0xff]  }
 0x1a8   : > { %2444 = vmatprep.subr.bf16.mxu1 %v8020_v62  ;;  %v8110_v62 = vld [vmem:[#allocation8 + $0x3cc] ss:$16 sps:$4 sm:$0xff]  }
 0x1aa   : > { %2402 = vmatpush2.bf16.msra.mxu0 %v8015_v48  ;;  %v8105_v48 = vld [vmem:[#allocation8 + $0x1c8] ss:$16 sps:$4 sm:$0xff]  }
 0x1ab   : > { %2445 = vmatpush2.bf16.msra.mxu1 %v8018_v63  ;;  %2403 = vmatprep.subr.bf16.mxu0 %v8023_v0  ;;  %v8108_v63 = vld [vmem:[#allocation8 + $0x3c8] ss:$16 sps:$4 sm:$0xff]   ;;  %v8113_v0 = vld [vmem:[#allocation8 + $0x1ac] ss:$16 sps:$4 sm:$0xff]  }
 0x1ac   : > { %2446 = vmatprep.subr.bf16.mxu1 %v8026_v1  ;;  %v8116_v1 = vld [vmem:[#allocation8 + $0x3ac] ss:$16 sps:$4 sm:$0xff]  }
 0x1ae   : > { %2404 = vmatpush2.bf16.msra.mxu0 %v8021_v52  ;;  %v8111_v52 = vld [vmem:[#allocation8 + $0x1a8] ss:$16 sps:$4 sm:$0xff]  }
 0x1af   : > { %2447 = vmatpush2.bf16.msra.mxu1 %v8024_v2  ;;  %2405 = vmatprep.subr.bf16.mxu0 %v8029_v3  ;;  %v8114_v2 = vld [vmem:[#allocation8 + $0x3a8] ss:$16 sps:$4 sm:$0xff]   ;;  %v8119_v3 = vld [vmem:[#allocation8 + $0x18c] ss:$16 sps:$4 sm:$0xff]  }
 0x1b0   : > { %2448 = vmatprep.subr.bf16.mxu1 %v8032_v4  ;;  %v8122_v4 = vld [vmem:[#allocation8 + $0x38c] ss:$16 sps:$4 sm:$0xff]  }
 0x1b2   : > { %2406 = vmatpush2.bf16.msra.mxu0 %v8027_v6  ;;  %v8117_v6 = vld [vmem:[#allocation8 + $0x188] ss:$16 sps:$4 sm:$0xff]  }
 0x1b3   : > { %2449 = vmatpush2.bf16.msra.mxu1 %v8030_v7  ;;  %2407 = vmatprep.subr.bf16.mxu0 %v8035_v8  ;;  %v8120_v7 = vld [vmem:[#allocation8 + $0x388] ss:$16 sps:$4 sm:$0xff]   ;;  %v8125_v8 = vld [vmem:[#allocation8 + $0x16c] ss:$16 sps:$4 sm:$0xff]  }
 0x1b4   : > { %2450 = vmatprep.subr.bf16.mxu1 %v8038_v9  ;;  %v8128_v9 = vld [vmem:[#allocation8 + $0x36c] ss:$16 sps:$4 sm:$0xff]  }
 0x1b6   : > { %2408 = vmatpush2.bf16.msra.mxu0 %v8033_v10  ;;  %v8123_v10 = vld [vmem:[#allocation8 + $0x168] ss:$16 sps:$4 sm:$0xff]  }
 0x1b7   : > { %2451 = vmatpush2.bf16.msra.mxu1 %v8036_v12  ;;  %2409 = vmatprep.subr.bf16.mxu0 %v8041_v13  ;;  %v8126_v12 = vld [vmem:[#allocation8 + $0x368] ss:$16 sps:$4 sm:$0xff]   ;;  %v8131_v13 = vld [vmem:[#allocation8 + $0x14c] ss:$16 sps:$4 sm:$0xff]  }
 0x1b8   : > { %2452 = vmatprep.subr.bf16.mxu1 %v8044_v14  ;;  %v8134_v14 = vld [vmem:[#allocation8 + $0x34c] ss:$16 sps:$4 sm:$0xff]  }
 0x1ba   : > { %2410 = vmatpush2.bf16.msra.mxu0 %v8039_v16  ;;  %v8129_v16 = vld [vmem:[#allocation8 + $0x148] ss:$16 sps:$4 sm:$0xff]  }
 0x1bb   : > { %2453 = vmatpush2.bf16.msra.mxu1 %v8042_v17  ;;  %2411 = vmatprep.subr.bf16.mxu0 %v8047_v18  ;;  %v8132_v17 = vld [vmem:[#allocation8 + $0x348] ss:$16 sps:$4 sm:$0xff]   ;;  %v8137_v18 = vld [vmem:[#allocation8 + $0x12c] ss:$16 sps:$4 sm:$0xff]  }
 0x1bc   : > { %2454 = vmatprep.subr.bf16.mxu1 %v8050_v19  ;;  %v8140_v19 = vld [vmem:[#allocation8 + $0x32c] ss:$16 sps:$4 sm:$0xff]  }
 0x1be   : > { %2412 = vmatpush2.bf16.msra.mxu0 %v8045_v20  ;;  %v8135_v20 = vld [vmem:[#allocation8 + $0x128] ss:$16 sps:$4 sm:$0xff]  }
 0x1bf   : > { %2455 = vmatpush2.bf16.msra.mxu1 %v8048_v21  ;;  %2467 = vmatprep.subr.bf16.mxu0 %v8053_v22  ;;  %v8138_v21 = vld [vmem:[#allocation8 + $0x328] ss:$16 sps:$4 sm:$0xff]   ;;  %v8143_v22 = vld [vmem:[#allocation8 + $0x10c] ss:$16 sps:$4 sm:$0xff]  }
 0x1c0   : > { %2510 = vmatprep.subr.bf16.mxu1 %v8056_v23  ;;  %v8146_v23 = vld [vmem:[#allocation8 + $0x30c] ss:$16 sps:$4 sm:$0xff]  }
 0x1c1   : > { %2414 = vmatmul.mubr.bf16.vlgmr.msra.gmra.mxu0 %v9798_v55 }
 0x1c2   : > { %2457 = vmatmul.mubr.bf16.vlgmr.msra.gmra.mxu1 %v9806_v5  ;;  %2468 = vmatpush1.bf16.msra.mxu0 %v8051_v24  ;;  %v8141_v24 = vld [vmem:[#allocation8 + $0x108] ss:$16 sps:$4 sm:$0xff]  }
 0x1c3   : > { %2511 = vmatpush1.bf16.msra.mxu1 %v8054_v25  ;;  %2469 = vmatprep.subr.bf16.mxu0 %v8059_v26  ;;  %v8144_v25 = vld [vmem:[#allocation8 + $0x308] ss:$16 sps:$4 sm:$0xff]   ;;  %v8149_v26 = vld [vmem:[#allocation8 + $0x8e4] ss:$16 sps:$4 sm:$0xff]  }
 0x1c4   : > { %2512 = vmatprep.subr.bf16.mxu1 %v8062_v28  ;;  %2499 = vmatprep.mubr.bf16.mxu0 %v9778_v27  ;;  %v8152_v28 = vld [vmem:[#allocation8 + $0xae4] ss:$16 sps:$4 sm:$0xff]  }
 0x1c5   : > { %2542 = vmatprep.mubr.bf16.mxu1 %v9785_v32 }
 0x1c6   : > { %2470 = vmatpush1.bf16.msra.mxu0 %v8057_v29  ;;  %v8147_v29 = vld [vmem:[#allocation8 + $0x8e0] ss:$16 sps:$4 sm:$0xff]  }
 0x1c7   : > { %2513 = vmatpush1.bf16.msra.mxu1 %v8060_v30  ;;  %2471 = vmatprep.subr.bf16.mxu0 %v8065_v11  ;;  %v8150_v30 = vld [vmem:[#allocation8 + $0xae0] ss:$16 sps:$4 sm:$0xff]   ;;  %v8155_v11 = vld [vmem:[#allocation8 + $0x8c4] ss:$16 sps:$4 sm:$0xff]  }
 0x1c8   : > { %2514 = vmatprep.subr.bf16.mxu1 %v8068_v15  ;;  %v8158_v15 = vld [vmem:[#allocation8 + $0xac4] ss:$16 sps:$4 sm:$0xff]  }
 0x1ca   : > { %2472 = vmatpush1.bf16.msra.mxu0 %v8063_v31  ;;  %v2687_v31 = vrot.slane %v9778_v27, 1  ;;  %v8261_v27 = vld [vmem:[#allocation8 + $0x888] ss:$16 sps:$4 sm:$0xff]  }
 0x1cb   : > { %2515 = vmatpush1.bf16.msra.mxu1 %v8066_v33  ;;  %2473 = vmatprep.subr.bf16.mxu0 %v8071_v34  ;;  %v2689_v33 = vrot.slane %v9785_v32, 1  ;;  %v8153_v34 = vld [vmem:[#allocation8 + $0x8c0] ss:$16 sps:$4 sm:$0xff]   ;;  %v8269_v32 = vld [vmem:[#allocation8 + $0x86c] ss:$16 sps:$4 sm:$0xff]  }
 0x1cc   : > { %2516 = vmatprep.subr.bf16.mxu1 %v8074_v35  ;;  %v8156_v35 = vld [vmem:[#allocation8 + $0xac0] ss:$16 sps:$4 sm:$0xff]  }
 0x1ce   : > { %2474 = vmatpush1.bf16.msra.mxu0 %v8069_v36  ;;  %v8161_v36 = vld [vmem:[#allocation8 + $0x8a4] ss:$16 sps:$4 sm:$0xff]  }
 0x1cf   : > { %2517 = vmatpush1.bf16.msra.mxu1 %v8072_v37  ;;  %2475 = vmatprep.subr.bf16.mxu0 %v8077_v38  ;;  %v8164_v37 = vld [vmem:[#allocation8 + $0xaa4] ss:$16 sps:$4 sm:$0xff]   ;;  %v8159_v38 = vld [vmem:[#allocation8 + $0x8a0] ss:$16 sps:$4 sm:$0xff]  }
 0x1d0   : > { %2518 = vmatprep.subr.bf16.mxu1 %v8080_v39  ;;  %v8162_v39 = vld [vmem:[#allocation8 + $0xaa0] ss:$16 sps:$4 sm:$0xff]  }
 0x1d2   : > { %2476 = vmatpush1.bf16.msra.mxu0 %v8075_v40  ;;  %v8167_v40 = vld [vmem:[#allocation8 + $0x884] ss:$16 sps:$4 sm:$0xff]  }
 0x1d3   : > { %2519 = vmatpush1.bf16.msra.mxu1 %v8078_v41  ;;  %2477 = vmatprep.subr.bf16.mxu0 %v8083_v42  ;;  %v8170_v41 = vld [vmem:[#allocation8 + $0xa84] ss:$16 sps:$4 sm:$0xff]   ;;  %v8165_v42 = vld [vmem:[#allocation8 + $0x880] ss:$16 sps:$4 sm:$0xff]  }
 0x1d4   : > { %2520 = vmatprep.subr.bf16.mxu1 %v8086_v43  ;;  %v8168_v43 = vld [vmem:[#allocation8 + $0xa80] ss:$16 sps:$4 sm:$0xff]  }
 0x1d6   : > { %2478 = vmatpush1.bf16.msra.mxu0 %v8081_v44  ;;  %v8173_v44 = vld [vmem:[#allocation8 + $0x864] ss:$16 sps:$4 sm:$0xff]  }
 0x1d7   : > { %2521 = vmatpush1.bf16.msra.mxu1 %v8084_v45  ;;  %2479 = vmatprep.subr.bf16.mxu0 %v8089_v46  ;;  %v8176_v45 = vld [vmem:[#allocation8 + $0xa64] ss:$16 sps:$4 sm:$0xff]   ;;  %v8171_v46 = vld [vmem:[#allocation8 + $0x860] ss:$16 sps:$4 sm:$0xff]  }
 0x1d8   : > { %2522 = vmatprep.subr.bf16.mxu1 %v8092_v47  ;;  %v8174_v47 = vld [vmem:[#allocation8 + $0xa60] ss:$16 sps:$4 sm:$0xff]  }
 0x1da   : > { %2480 = vmatpush1.bf16.msra.mxu0 %v8087_v49  ;;  %v8179_v49 = vld [vmem:[#allocation8 + $0x844] ss:$16 sps:$4 sm:$0xff]  }
 0x1db   : > { %2523 = vmatpush1.bf16.msra.mxu1 %v8090_v50  ;;  %2481 = vmatprep.subr.bf16.mxu0 %v8095_v51  ;;  %v8182_v50 = vld [vmem:[#allocation8 + $0xa44] ss:$16 sps:$4 sm:$0xff]   ;;  %v8177_v51 = vld [vmem:[#allocation8 + $0x840] ss:$16 sps:$4 sm:$0xff]  }
 0x1dc   : > { %2524 = vmatprep.subr.bf16.mxu1 %v8098_v53  ;;  %v8180_v53 = vld [vmem:[#allocation8 + $0xa40] ss:$16 sps:$4 sm:$0xff]  }
 0x1de   : > { %2482 = vmatpush1.bf16.msra.mxu0 %v8093_v54  ;;  %v8185_v54 = vld [vmem:[#allocation8 + $0x824] ss:$16 sps:$4 sm:$0xff]  }
 0x1df   : > { %2525 = vmatpush1.bf16.msra.mxu1 %v8096_v56  ;;  %2483 = vmatprep.subr.bf16.mxu0 %v8101_v57  ;;  %v8188_v56 = vld [vmem:[#allocation8 + $0xa24] ss:$16 sps:$4 sm:$0xff]   ;;  %v8183_v57 = vld [vmem:[#allocation8 + $0x820] ss:$16 sps:$4 sm:$0xff]  }
 0x1e0   : > { %2526 = vmatprep.subr.bf16.mxu1 %v8104_v58  ;;  %v8186_v58 = vld [vmem:[#allocation8 + $0xa20] ss:$16 sps:$4 sm:$0xff]  }
 0x1e2   : > { %2484 = vmatpush2.bf16.msra.mxu0 %v8099_v59  ;;  %v8191_v59 = vld [vmem:[#allocation8 + $0x804] ss:$16 sps:$4 sm:$0xff]  }
 0x1e3   : > { %2527 = vmatpush2.bf16.msra.mxu1 %v8102_v60  ;;  %2485 = vmatprep.subr.bf16.mxu0 %v8107_v61  ;;  %v8194_v60 = vld [vmem:[#allocation8 + $0xa04] ss:$16 sps:$4 sm:$0xff]   ;;  %v8189_v61 = vld [vmem:[#allocation8 + $0x800] ss:$16 sps:$4 sm:$0xff]  }
 0x1e4   : > { %2528 = vmatprep.subr.bf16.mxu1 %v8110_v62  ;;  %v8192_v62 = vld [vmem:[#allocation8 + $0xa00] ss:$16 sps:$4 sm:$0xff]  }
 0x1e6   : > { %2486 = vmatpush2.bf16.msra.mxu0 %v8105_v48  ;;  %v8197_v48 = vld [vmem:[#allocation8 + $0x9e4] ss:$16 sps:$4 sm:$0xff]  }
 0x1e7   : > { %2529 = vmatpush2.bf16.msra.mxu1 %v8108_v63  ;;  %2487 = vmatprep.subr.bf16.mxu0 %v8113_v0  ;;  %v8200_v63 = vld [vmem:[#allocation8 + $0xbe4] ss:$16 sps:$4 sm:$0xff]   ;;  %v8195_v0 = vld [vmem:[#allocation8 + $0x9e0] ss:$16 sps:$4 sm:$0xff]  }
 0x1e8   : > { %2530 = vmatprep.subr.bf16.mxu1 %v8116_v1  ;;  %v8198_v1 = vld [vmem:[#allocation8 + $0xbe0] ss:$16 sps:$4 sm:$0xff]  }
 0x1ea   : > { %2488 = vmatpush2.bf16.msra.mxu0 %v8111_v52  ;;  %v8203_v52 = vld [vmem:[#allocation8 + $0x9c4] ss:$16 sps:$4 sm:$0xff]  }
 0x1eb   : > { %2531 = vmatpush2.bf16.msra.mxu1 %v8114_v2  ;;  %2489 = vmatprep.subr.bf16.mxu0 %v8119_v3  ;;  %v8206_v2 = vld [vmem:[#allocation8 + $0xbc4] ss:$16 sps:$4 sm:$0xff]   ;;  %v8201_v3 = vld [vmem:[#allocation8 + $0x9c0] ss:$16 sps:$4 sm:$0xff]  }
 0x1ec   : > { %2532 = vmatprep.subr.bf16.mxu1 %v8122_v4  ;;  %v8204_v4 = vld [vmem:[#allocation8 + $0xbc0] ss:$16 sps:$4 sm:$0xff]  }
 0x1ee   : > { %2490 = vmatpush2.bf16.msra.mxu0 %v8117_v6  ;;  %v8209_v6 = vld [vmem:[#allocation8 + $0x9a4] ss:$16 sps:$4 sm:$0xff]  }
 0x1ef   : > { %2533 = vmatpush2.bf16.msra.mxu1 %v8120_v7  ;;  %2491 = vmatprep.subr.bf16.mxu0 %v8125_v8  ;;  %v8212_v7 = vld [vmem:[#allocation8 + $0xba4] ss:$16 sps:$4 sm:$0xff]   ;;  %v8207_v8 = vld [vmem:[#allocation8 + $0x9a0] ss:$16 sps:$4 sm:$0xff]  }
 0x1f0   : > { %2534 = vmatprep.subr.bf16.mxu1 %v8128_v9  ;;  %v8210_v9 = vld [vmem:[#allocation8 + $0xba0] ss:$16 sps:$4 sm:$0xff]  }
 0x1f2   : > { %2492 = vmatpush2.bf16.msra.mxu0 %v8123_v10  ;;  %v8215_v10 = vld [vmem:[#allocation8 + $0x984] ss:$16 sps:$4 sm:$0xff]  }
 0x1f3   : > { %2535 = vmatpush2.bf16.msra.mxu1 %v8126_v12  ;;  %2493 = vmatprep.subr.bf16.mxu0 %v8131_v13  ;;  %v8218_v12 = vld [vmem:[#allocation8 + $0xb84] ss:$16 sps:$4 sm:$0xff]   ;;  %v8213_v13 = vld [vmem:[#allocation8 + $0x980] ss:$16 sps:$4 sm:$0xff]  }
 0x1f4   : > { %2536 = vmatprep.subr.bf16.mxu1 %v8134_v14  ;;  %v8216_v14 = vld [vmem:[#allocation8 + $0xb80] ss:$16 sps:$4 sm:$0xff]  }
 0x1f6   : > { %2494 = vmatpush2.bf16.msra.mxu0 %v8129_v16  ;;  %v8221_v16 = vld [vmem:[#allocation8 + $0x964] ss:$16 sps:$4 sm:$0xff]  }
 0x1f7   : > { %2537 = vmatpush2.bf16.msra.mxu1 %v8132_v17  ;;  %2495 = vmatprep.subr.bf16.mxu0 %v8137_v18  ;;  %v8224_v17 = vld [vmem:[#allocation8 + $0xb64] ss:$16 sps:$4 sm:$0xff]   ;;  %v8219_v18 = vld [vmem:[#allocation8 + $0x960] ss:$16 sps:$4 sm:$0xff]  }
 0x1f8   : > { %2538 = vmatprep.subr.bf16.mxu1 %v8140_v19  ;;  %v8222_v19 = vld [vmem:[#allocation8 + $0xb60] ss:$16 sps:$4 sm:$0xff]  }
 0x1fa   : > { %2496 = vmatpush2.bf16.msra.mxu0 %v8135_v20  ;;  %v8227_v20 = vld [vmem:[#allocation8 + $0x944] ss:$16 sps:$4 sm:$0xff]  }
 0x1fb   : > { %2539 = vmatpush2.bf16.msra.mxu1 %v8138_v21  ;;  %2497 = vmatprep.subr.bf16.mxu0 %v8143_v22  ;;  %v8230_v21 = vld [vmem:[#allocation8 + $0xb44] ss:$16 sps:$4 sm:$0xff]   ;;  %v8225_v22 = vld [vmem:[#allocation8 + $0x940] ss:$16 sps:$4 sm:$0xff]  }
 0x1fc   : > { %2540 = vmatprep.subr.bf16.mxu1 %v8146_v23  ;;  %v8228_v23 = vld [vmem:[#allocation8 + $0xb40] ss:$16 sps:$4 sm:$0xff]  }
 0x1fe   : > { %2498 = vmatpush2.bf16.msra.mxu0 %v8141_v24  ;;  %v8233_v24 = vld [vmem:[#allocation8 + $0x924] ss:$16 sps:$4 sm:$0xff]  }
 0x1ff   : > { %2541 = vmatpush2.bf16.msra.mxu1 %v8144_v25  ;;  %3334 = vmatprep.subr.bf16.mxu0 %v8149_v26  ;;  %v8236_v25 = vld [vmem:[#allocation8 + $0xb24] ss:$16 sps:$4 sm:$0xff]  }
 0x200   : > { %3377 = vmatprep.subr.bf16.mxu1 %v8152_v28 }
 0x201   : > { %2500 = vmatmul.mubr.bf16.vlgmr.msra.gmra.mxu0 %v9798_v55  ;;  %v9832_v26 = vpop.f32.mrf.mxu0 }
 0x202   : > { %2543 = vmatmul.mubr.bf16.vlgmr.msra.gmra.mxu1 %v9806_v5  ;;  %3335 = vmatpush1.bf16.msra.mxu0 %v8147_v29  ;;  %v9834_v28 = vpop.f32.mrf.mxu1  ;;  %v8231_v29 = vld [vmem:[#allocation8 + $0x920] ss:$16 sps:$4 sm:$0xff]  }
 0x203   : > { %3378 = vmatpush1.bf16.msra.mxu1 %v8150_v30  ;;  %3336 = vmatprep.subr.bf16.mxu0 %v8155_v11  ;;  %v8234_v30 = vld [vmem:[#allocation8 + $0xb20] ss:$16 sps:$4 sm:$0xff]   ;;  %v8239_v11 = vld [vmem:[#allocation8 + $0x904] ss:$16 sps:$4 sm:$0xff]  }
 0x204   : > { %3379 = vmatprep.subr.bf16.mxu1 %v8158_v15  ;;  %3366 = vmatprep.mubr.bf16.mxu0 %v2687_v31  ;;  %v8242_v15 = vld [vmem:[#allocation8 + $0xb04] ss:$16 sps:$4 sm:$0xff]  }
 0x205   : > { %3409 = vmatprep.mubr.bf16.mxu1 %v2689_v33 }
 0x206   : > { %3337 = vmatpush1.bf16.msra.mxu0 %v8153_v34  ;;  %v9836_v34 = vpop.f32.mrf.mxu0 }
 0x207   : > { %3380 = vmatpush1.bf16.msra.mxu1 %v8156_v35  ;;  %3338 = vmatprep.subr.bf16.mxu0 %v8161_v36  ;;  %v9838_v35 = vpop.f32.mrf.mxu1  ;;  %v8237_v36 = vld [vmem:[#allocation8 + $0x900] ss:$16 sps:$4 sm:$0xff]  }
 0x208   : > { %3381 = vmatprep.subr.bf16.mxu1 %v8164_v37  ;;  %v8240_v37 = vld [vmem:[#allocation8 + $0xb00] ss:$16 sps:$4 sm:$0xff]  }
 0x20a   : > { %3339 = vmatpush1.bf16.msra.mxu0 %v8159_v38  ;;  %v8245_v38 = vld [vmem:[#allocation8 + $0x8ec] ss:$16 sps:$4 sm:$0xff]  }
 0x20b   : > { %3382 = vmatpush1.bf16.msra.mxu1 %v8162_v39  ;;  %3340 = vmatprep.subr.bf16.mxu0 %v8167_v40  ;;  %v8248_v39 = vld [vmem:[#allocation8 + $0xaec] ss:$16 sps:$4 sm:$0xff]   ;;  %v9840_v40 = vpop.f32.mrf.mxu0 }
 0x20c   : > { %3383 = vmatprep.subr.bf16.mxu1 %v8170_v41  ;;  %v9842_v41 = vpop.f32.mrf.mxu1 }
 0x20e   : > { %3341 = vmatpush1.bf16.msra.mxu0 %v8165_v42  ;;  %v8243_v42 = vld [vmem:[#allocation8 + $0x8e8] ss:$16 sps:$4 sm:$0xff]  }
 0x20f   : > { %3384 = vmatpush1.bf16.msra.mxu1 %v8168_v43  ;;  %3342 = vmatprep.subr.bf16.mxu0 %v8173_v44  ;;  %v8246_v43 = vld [vmem:[#allocation8 + $0xae8] ss:$16 sps:$4 sm:$0xff]   ;;  %v2686_v44 = vrot.slane %v9798_v55, 1  ;;  %v8356_v55 = vld [vmem:[#allocation13 + $0x444] ss:$16 sps:$4 sm:$0xff]  }
 0x210   : > { %3385 = vmatprep.subr.bf16.mxu1 %v8176_v45  ;;  %v2688_v45 = vrot.slane %v9806_v5, 1  ;;  %v8359_v5 = vld [vmem:[#allocation13 + $0x424] ss:$16 sps:$4 sm:$0xff]  }
 0x212   : > { %3343 = vmatpush1.bf16.msra.mxu0 %v8171_v46  ;;  %v8251_v46 = vld [vmem:[#allocation8 + $0x8cc] ss:$16 sps:$4 sm:$0xff]  }
 0x213   : > { %3386 = vmatpush1.bf16.msra.mxu1 %v8174_v47  ;;  %3344 = vmatprep.subr.bf16.mxu0 %v8179_v49  ;;  %v8254_v47 = vld [vmem:[#allocation8 + $0xacc] ss:$16 sps:$4 sm:$0xff]   ;;  %v9846_v49 = vpop.f32.mrf.mxu0 }
 0x214   : > { %3387 = vmatprep.subr.bf16.mxu1 %v8182_v50  ;;  %v9848_v50 = vpop.f32.mrf.mxu1 }
 0x216   : > { %3345 = vmatpush1.bf16.msra.mxu0 %v8177_v51  ;;  %v8249_v51 = vld [vmem:[#allocation8 + $0x8c8] ss:$16 sps:$4 sm:$0xff]  }
 0x217   : > { %3388 = vmatpush1.bf16.msra.mxu1 %v8180_v53  ;;  %3346 = vmatprep.subr.bf16.mxu0 %v8185_v54  ;;  %v8252_v53 = vld [vmem:[#allocation8 + $0xac8] ss:$16 sps:$4 sm:$0xff]  }
 0x218   : > { %3389 = vmatprep.subr.bf16.mxu1 %v8188_v56 }
 0x21a   : > { %3347 = vmatpush1.bf16.msra.mxu0 %v8183_v57  ;;  %v8257_v57 = vld [vmem:[#allocation8 + $0x8ac] ss:$16 sps:$4 sm:$0xff]  }
 0x21b   : > { %3390 = vmatpush1.bf16.msra.mxu1 %v8186_v58  ;;  %3348 = vmatprep.subr.bf16.mxu0 %v8191_v59  ;;  %v8260_v58 = vld [vmem:[#allocation8 + $0xaac] ss:$16 sps:$4 sm:$0xff]  }
 0x21c   : > { %3391 = vmatprep.subr.bf16.mxu1 %v8194_v60 }
 0x21e   : > { %3349 = vmatpush1.bf16.msra.mxu0 %v8189_v61 }
 0x21f   : > { %3392 = vmatpush1.bf16.msra.mxu1 %v8192_v62  ;;  %3350 = vmatprep.subr.bf16.mxu0 %v8197_v48  ;;  %v8255_v48 = vld [vmem:[#allocation8 + $0x8a8] ss:$16 sps:$4 sm:$0xff]  }
 0x220   : > { %3393 = vmatprep.subr.bf16.mxu1 %v8200_v63  ;;  %v8258_v63 = vld [vmem:[#allocation8 + $0xaa8] ss:$16 sps:$4 sm:$0xff]  }
 0x222   : > { %3351 = vmatpush2.bf16.msra.mxu0 %v8195_v0 }
 0x223   : > { %3394 = vmatpush2.bf16.msra.mxu1 %v8198_v1  ;;  %3352 = vmatprep.subr.bf16.mxu0 %v8203_v52  ;;  %v8263_v52 = vld [vmem:[#allocation8 + $0x88c] ss:$16 sps:$4 sm:$0xff]  }
 0x224   : > { %3395 = vmatprep.subr.bf16.mxu1 %v8206_v2  ;;  %v8266_v2 = vld [vmem:[#allocation8 + $0xa8c] ss:$16 sps:$4 sm:$0xff]  }
 0x226   : > { %3353 = vmatpush2.bf16.msra.mxu0 %v8201_v3 }
 0x227   : > { %3396 = vmatpush2.bf16.msra.mxu1 %v8204_v4  ;;  %3354 = vmatprep.subr.bf16.mxu0 %v8209_v6 }
 0x228   : > { %3397 = vmatprep.subr.bf16.mxu1 %v8212_v7 }
 0x22a   : > { %3355 = vmatpush2.bf16.msra.mxu0 %v8207_v8  ;;  %v8267_v8 = vld [vmem:[#allocation8 + $0x868] ss:$16 sps:$4 sm:$0xff]  }
 0x22b   : > { %3398 = vmatpush2.bf16.msra.mxu1 %v8210_v9  ;;  %3356 = vmatprep.subr.bf16.mxu0 %v8215_v10  ;;  %v8270_v9 = vld [vmem:[#allocation8 + $0xa68] ss:$16 sps:$4 sm:$0xff]   ;;  %v8275_v10 = vld [vmem:[#allocation8 + $0x84c] ss:$16 sps:$4 sm:$0xff]  }
 0x22c   : > { %3399 = vmatprep.subr.bf16.mxu1 %v8218_v12  ;;  %v8278_v12 = vld [vmem:[#allocation8 + $0xa4c] ss:$16 sps:$4 sm:$0xff]  }
 0x22e   : > { %3357 = vmatpush2.bf16.msra.mxu0 %v8213_v13  ;;  %v8273_v13 = vld [vmem:[#allocation8 + $0x848] ss:$16 sps:$4 sm:$0xff]  }
 0x22f   : > { %3400 = vmatpush2.bf16.msra.mxu1 %v8216_v14  ;;  %3358 = vmatprep.subr.bf16.mxu0 %v8221_v16  ;;  %v8276_v14 = vld [vmem:[#allocation8 + $0xa48] ss:$16 sps:$4 sm:$0xff]   ;;  %v8281_v16 = vld [vmem:[#allocation8 + $0x82c] ss:$16 sps:$4 sm:$0xff]  }
 0x230   : > { %3401 = vmatprep.subr.bf16.mxu1 %v8224_v17  ;;  %v8284_v17 = vld [vmem:[#allocation8 + $0xa2c] ss:$16 sps:$4 sm:$0xff]  }
 0x232   : > { %3359 = vmatpush2.bf16.msra.mxu0 %v8219_v18  ;;  %v8279_v18 = vld [vmem:[#allocation8 + $0x828] ss:$16 sps:$4 sm:$0xff]  }
 0x233   : > { %3402 = vmatpush2.bf16.msra.mxu1 %v8222_v19  ;;  %3360 = vmatprep.subr.bf16.mxu0 %v8227_v20  ;;  %v8282_v19 = vld [vmem:[#allocation8 + $0xa28] ss:$16 sps:$4 sm:$0xff]   ;;  %v8287_v20 = vld [vmem:[#allocation8 + $0x80c] ss:$16 sps:$4 sm:$0xff]  }
 0x234   : > { %3403 = vmatprep.subr.bf16.mxu1 %v8230_v21  ;;  %v8290_v21 = vld [vmem:[#allocation8 + $0xa0c] ss:$16 sps:$4 sm:$0xff]  }
 0x236   : > { %3361 = vmatpush2.bf16.msra.mxu0 %v8225_v22  ;;  %v8285_v22 = vld [vmem:[#allocation8 + $0x808] ss:$16 sps:$4 sm:$0xff]  }
 0x237   : > { %3404 = vmatpush2.bf16.msra.mxu1 %v8228_v23  ;;  %3362 = vmatprep.subr.bf16.mxu0 %v8233_v24  ;;  %v8288_v23 = vld [vmem:[#allocation8 + $0xa08] ss:$16 sps:$4 sm:$0xff]   ;;  %v8293_v24 = vld [vmem:[#allocation8 + $0x9ec] ss:$16 sps:$4 sm:$0xff]  }
 0x238   : > { %3405 = vmatprep.subr.bf16.mxu1 %v8236_v25  ;;  %v8296_v25 = vld [vmem:[#allocation8 + $0xbec] ss:$16 sps:$4 sm:$0xff]  }
 0x23a   : > { %3363 = vmatpush2.bf16.msra.mxu0 %v8231_v29  ;;  %v8291_v29 = vld [vmem:[#allocation8 + $0x9e8] ss:$16 sps:$4 sm:$0xff]  }
 0x23b   : > { %3406 = vmatpush2.bf16.msra.mxu1 %v8234_v30  ;;  %3364 = vmatprep.subr.bf16.mxu0 %v8239_v11  ;;  %v8294_v30 = vld [vmem:[#allocation8 + $0xbe8] ss:$16 sps:$4 sm:$0xff]   ;;  %v8299_v11 = vld [vmem:[#allocation8 + $0x9cc] ss:$16 sps:$4 sm:$0xff]  }
 0x23c   : > { %3407 = vmatprep.subr.bf16.mxu1 %v8242_v15  ;;  %v8302_v15 = vld [vmem:[#allocation8 + $0xbcc] ss:$16 sps:$4 sm:$0xff]  }
 0x23e   : > { %3365 = vmatpush2.bf16.msra.mxu0 %v8237_v36  ;;  %v8297_v36 = vld [vmem:[#allocation8 + $0x9c8] ss:$16 sps:$4 sm:$0xff]  }
 0x23f   : > { %3408 = vmatpush2.bf16.msra.mxu1 %v8240_v37  ;;  %3420 = vmatprep.subr.bf16.mxu0 %v8245_v38  ;;  %v8300_v37 = vld [vmem:[#allocation8 + $0xbc8] ss:$16 sps:$4 sm:$0xff]   ;;  %v8305_v38 = vld [vmem:[#allocation8 + $0x9ac] ss:$16 sps:$4 sm:$0xff]  }
 0x240   : > { %3463 = vmatprep.subr.bf16.mxu1 %v8248_v39  ;;  %v8308_v39 = vld [vmem:[#allocation8 + $0xbac] ss:$16 sps:$4 sm:$0xff]  }
 0x241   : > { %v1689_v54 = vpop.f32.mrf.mxu0  ;;  %3367 = vmatmul.mubr.bf16.vlgmr.msra.gmra.mxu0 %v2686_v44 }
 0x242   : > { %v1732_v56 = vpop.f32.mrf.mxu1  ;;  %3410 = vmatmul.mubr.bf16.vlgmr.msra.gmra.mxu1 %v2688_v45  ;;  %3421 = vmatpush1.bf16.msra.mxu0 %v8243_v42  ;;  %v8303_v42 = vld [vmem:[#allocation8 + $0x9a8] ss:$16 sps:$4 sm:$0xff]  }
 0x243   : > { %v9854_v59 = vadd.f32 %v1732_v56, %v1689_v54  ;;  %3464 = vmatpush1.bf16.msra.mxu1 %v8246_v43  ;;  %v1691_v60 = vpop.f32.mrf.mxu0  ;;  %3422 = vmatprep.subr.bf16.mxu0 %v8251_v46  ;;  %v8306_v43 = vld [vmem:[#allocation8 + $0xba8] ss:$16 sps:$4 sm:$0xff]   ;;  %v8311_v46 = vld [vmem:[#allocation8 + $0x98c] ss:$16 sps:$4 sm:$0xff]  }
 0x244   : > { %v1734_v61 = vpop.f32.mrf.mxu1  ;;  %3465 = vmatprep.subr.bf16.mxu1 %v8254_v47  ;;  %3452 = vmatprep.mubr.bf16.mxu0 %v2687_v31  ;;  %v8264_v31 = vld [vmem:[#allocation8 + $0xa88] ss:$16 sps:$4 sm:$0xff]   ;;  %v8314_v47 = vld [vmem:[#allocation8 + $0xb8c] ss:$16 sps:$4 sm:$0xff]  }
 0x245   : > { %v9856_v62 = vadd.f32 %v1734_v61, %v1691_v60  ;;  %3495 = vmatprep.mubr.bf16.mxu1 %v2689_v33  ;;  %v1693_v0 = vpop.f32.mrf.mxu0  ;;  %v8272_v33 = vld [vmem:[#allocation8 + $0xa6c] ss:$16 sps:$4 sm:$0xff]  }
 0x246   : > { %v1736_v1 = vpop.f32.mrf.mxu1  ;;  %3423 = vmatpush1.bf16.msra.mxu0 %v8249_v51  ;;  %v8309_v51 = vld [vmem:[#allocation8 + $0x988] ss:$16 sps:$4 sm:$0xff]   ;;  %v8317_v54 = vld [vmem:[#allocation8 + $0x96c] ss:$16 sps:$4 sm:$0xff]  }
 0x247   : > { %v9862_v3 = vadd.f32 %v1736_v1, %v1693_v0  ;;  %3466 = vmatpush1.bf16.msra.mxu1 %v8252_v53  ;;  %v1695_v4 = vpop.f32.mrf.mxu0  ;;  %3424 = vmatprep.subr.bf16.mxu0 %v8257_v57  ;;  %v8312_v53 = vld [vmem:[#allocation8 + $0xb88] ss:$16 sps:$4 sm:$0xff]   ;;  %v8320_v56 = vld [vmem:[#allocation8 + $0xb6c] ss:$16 sps:$4 sm:$0xff]  }
 0x248   : > { %v1738_v6 = vpop.f32.mrf.mxu1  ;;  %3467 = vmatprep.subr.bf16.mxu1 %v8260_v58  ;;  %v8315_v57 = vld [vmem:[#allocation8 + $0x968] ss:$16 sps:$4 sm:$0xff]   ;;  %v8323_v60 = vld [vmem:[#allocation8 + $0x94c] ss:$16 sps:$4 sm:$0xff]  }
 0x249   : > { %v9864_v7 = vadd.f32 %v1738_v6, %v1695_v4  ;;  %v8318_v58 = vld [vmem:[#allocation8 + $0xb68] ss:$16 sps:$4 sm:$0xff]   ;;  %v8326_v61 = vld [vmem:[#allocation8 + $0xb4c] ss:$16 sps:$4 sm:$0xff]  }
 0x24a   : > { %3425 = vmatpush1.bf16.msra.mxu0 %v8255_v48  ;;  %v8321_v48 = vld [vmem:[#allocation8 + $0x948] ss:$16 sps:$4 sm:$0xff]   ;;  %v8329_v0 = vld [vmem:[#allocation8 + $0x92c] ss:$16 sps:$4 sm:$0xff]  }
 0x24b   : > { %3468 = vmatpush1.bf16.msra.mxu1 %v8258_v63  ;;  %3426 = vmatprep.subr.bf16.mxu0 %v8263_v52  ;;  %v8324_v63 = vld [vmem:[#allocation8 + $0xb48] ss:$16 sps:$4 sm:$0xff]   ;;  %v8332_v1 = vld [vmem:[#allocation8 + $0xb2c] ss:$16 sps:$4 sm:$0xff]  }
 0x24c   : > { %3469 = vmatprep.subr.bf16.mxu1 %v8266_v2  ;;  %v8327_v52 = vld [vmem:[#allocation8 + $0x928] ss:$16 sps:$4 sm:$0xff]   ;;  %v8335_v4 = vld [vmem:[#allocation8 + $0x90c] ss:$16 sps:$4 sm:$0xff]  }
 0x24d   : > { %v8330_v2 = vld [vmem:[#allocation8 + $0xb28] ss:$16 sps:$4 sm:$0xff]   ;;  %v8338_v6 = vld [vmem:[#allocation8 + $0xb0c] ss:$16 sps:$4 sm:$0xff]  }
 0x24e   : > { %3427 = vmatpush1.bf16.msra.mxu0 %v8261_v27  ;;  %v8333_v27 = vld [vmem:[#allocation8 + $0x908] ss:$16 sps:$4 sm:$0xff]  }
 0x24f   : > { %3470 = vmatpush1.bf16.msra.mxu1 %v8264_v31  ;;  %3428 = vmatprep.subr.bf16.mxu0 %v8269_v32  ;;  %v8336_v31 = vld [vmem:[#allocation8 + $0xb08] ss:$16 sps:$4 sm:$0xff]   ;;  %v8341_v32 = vld [vmem:[#allocation13 + $0x4e4] ss:$16 sps:$4 sm:$0xff]  }
 0x250   : > { %3471 = vmatprep.subr.bf16.mxu1 %v8272_v33  ;;  %v8339_v33 = vld [vmem:[#allocation13 + $0x4e0] ss:$16 sps:$4 sm:$0xff]  }
 0x252   : > { %3429 = vmatpush1.bf16.msra.mxu0 %v8267_v8  ;;  %v8344_v8 = vld [vmem:[#allocation13 + $0x4c4] ss:$16 sps:$4 sm:$0xff]  }
 0x253   : > { %3472 = vmatpush1.bf16.msra.mxu1 %v8270_v9  ;;  %3430 = vmatprep.subr.bf16.mxu0 %v8275_v10  ;;  %v8342_v9 = vld [vmem:[#allocation13 + $0x4c0] ss:$16 sps:$4 sm:$0xff]   ;;  %v8347_v10 = vld [vmem:[#allocation13 + $0x4a4] ss:$16 sps:$4 sm:$0xff]  }
 0x254   : > { %3473 = vmatprep.subr.bf16.mxu1 %v8278_v12  ;;  %v8345_v12 = vld [vmem:[#allocation13 + $0x4a0] ss:$16 sps:$4 sm:$0xff]  }
 0x256   : > { %3431 = vmatpush1.bf16.msra.mxu0 %v8273_v13  ;;  %v8350_v13 = vld [vmem:[#allocation13 + $0x484] ss:$16 sps:$4 sm:$0xff]  }
 0x257   : > { %3474 = vmatpush1.bf16.msra.mxu1 %v8276_v14  ;;  %3432 = vmatprep.subr.bf16.mxu0 %v8281_v16  ;;  %v8348_v14 = vld [vmem:[#allocation13 + $0x480] ss:$16 sps:$4 sm:$0xff]   ;;  %v8353_v16 = vld [vmem:[#allocation13 + $0x464] ss:$16 sps:$4 sm:$0xff]  }
 0x258   : > { %3475 = vmatprep.subr.bf16.mxu1 %v8284_v17  ;;  %v8351_v17 = vld [vmem:[#allocation13 + $0x460] ss:$16 sps:$4 sm:$0xff]  }
 0x25a   : > { %3433 = vmatpush1.bf16.msra.mxu0 %v8279_v18  ;;  %v8362_v18 = vld [vmem:[#allocation13 + $0x404] ss:$16 sps:$4 sm:$0xff]  }
 0x25b   : > { %3476 = vmatpush1.bf16.msra.mxu1 %v8282_v19  ;;  %3434 = vmatprep.subr.bf16.mxu0 %v8287_v20  ;;  %v8389_v19 = vld [vmem:[#allocation13 + $0x6e4] ss:$16 sps:$4 sm:$0xff]   ;;  %v8360_v20 = vld [vmem:[#allocation13 + $0x400] ss:$16 sps:$4 sm:$0xff]  }
 0x25c   : > { %3477 = vmatprep.subr.bf16.mxu1 %v8290_v21  ;;  %v8387_v21 = vld [vmem:[#allocation13 + $0x6e0] ss:$16 sps:$4 sm:$0xff]  }
 0x25e   : > { %3435 = vmatpush1.bf16.msra.mxu0 %v8285_v22  ;;  %v8365_v22 = vld [vmem:[#allocation13 + $0x5e4] ss:$16 sps:$4 sm:$0xff]  }
 0x25f   : > { %3478 = vmatpush1.bf16.msra.mxu1 %v8288_v23  ;;  %3436 = vmatprep.subr.bf16.mxu0 %v8293_v24  ;;  %v8393_v23 = vld [vmem:[#allocation13 + $0x6c0] ss:$16 sps:$4 sm:$0xff]   ;;  %v8395_v24 = vld [vmem:[#allocation13 + $0x6c4] ss:$16 sps:$4 sm:$0xff]  }
 0x260   : > { %3479 = vmatprep.subr.bf16.mxu1 %v8296_v25  ;;  %v8363_v25 = vld [vmem:[#allocation13 + $0x5e0] ss:$16 sps:$4 sm:$0xff]  }
 0x262   : > { %3437 = vmatpush2.bf16.msra.mxu0 %v8291_v29  ;;  %v8368_v29 = vld [vmem:[#allocation13 + $0x5c4] ss:$16 sps:$4 sm:$0xff]  }
 0x263   : > { %3480 = vmatpush2.bf16.msra.mxu1 %v8294_v30  ;;  %3438 = vmatprep.subr.bf16.mxu0 %v8299_v11  ;;  %v8399_v30 = vld [vmem:[#allocation13 + $0x6a0] ss:$16 sps:$4 sm:$0xff]   ;;  %v8401_v11 = vld [vmem:[#allocation13 + $0x6a4] ss:$16 sps:$4 sm:$0xff]  }
 0x264   : > { %3481 = vmatprep.subr.bf16.mxu1 %v8302_v15  ;;  %v8366_v15 = vld [vmem:[#allocation13 + $0x5c0] ss:$16 sps:$4 sm:$0xff]  }
 0x266   : > { %3439 = vmatpush2.bf16.msra.mxu0 %v8297_v36  ;;  %v8371_v36 = vld [vmem:[#allocation13 + $0x5a4] ss:$16 sps:$4 sm:$0xff]  }
 0x267   : > { %3482 = vmatpush2.bf16.msra.mxu1 %v8300_v37  ;;  %3440 = vmatprep.subr.bf16.mxu0 %v8305_v38  ;;  %v8405_v37 = vld [vmem:[#allocation13 + $0x680] ss:$16 sps:$4 sm:$0xff]   ;;  %v8407_v38 = vld [vmem:[#allocation13 + $0x684] ss:$16 sps:$4 sm:$0xff]  }
 0x268   : > { %3483 = vmatprep.subr.bf16.mxu1 %v8308_v39  ;;  %v8369_v39 = vld [vmem:[#allocation13 + $0x5a0] ss:$16 sps:$4 sm:$0xff]  }
 0x26a   : > { %3441 = vmatpush2.bf16.msra.mxu0 %v8303_v42  ;;  %v8374_v42 = vld [vmem:[#allocation13 + $0x584] ss:$16 sps:$4 sm:$0xff]  }
 0x26b   : > { %3484 = vmatpush2.bf16.msra.mxu1 %v8306_v43  ;;  %3442 = vmatprep.subr.bf16.mxu0 %v8311_v46  ;;  %v8411_v43 = vld [vmem:[#allocation13 + $0x660] ss:$16 sps:$4 sm:$0xff]   ;;  %v8413_v46 = vld [vmem:[#allocation13 + $0x664] ss:$16 sps:$4 sm:$0xff]  }
 0x26c   : > { %3485 = vmatprep.subr.bf16.mxu1 %v8314_v47  ;;  %v8372_v47 = vld [vmem:[#allocation13 + $0x580] ss:$16 sps:$4 sm:$0xff]  }
 0x26e   : > { %3443 = vmatpush2.bf16.msra.mxu0 %v8309_v51  ;;  %v8377_v51 = vld [vmem:[#allocation13 + $0x564] ss:$16 sps:$4 sm:$0xff]  }
 0x26f   : > { %3486 = vmatpush2.bf16.msra.mxu1 %v8312_v53  ;;  %3444 = vmatprep.subr.bf16.mxu0 %v8317_v54  ;;  %v8417_v53 = vld [vmem:[#allocation13 + $0x640] ss:$16 sps:$4 sm:$0xff]   ;;  %v8419_v54 = vld [vmem:[#allocation13 + $0x644] ss:$16 sps:$4 sm:$0xff]  }
 0x270   : > { %3487 = vmatprep.subr.bf16.mxu1 %v8320_v56  ;;  %v8375_v56 = vld [vmem:[#allocation13 + $0x560] ss:$16 sps:$4 sm:$0xff]  }
 0x272   : > { %3445 = vmatpush2.bf16.msra.mxu0 %v8315_v57  ;;  %v8380_v57 = vld [vmem:[#allocation13 + $0x544] ss:$16 sps:$4 sm:$0xff]  }
 0x273   : > { %3488 = vmatpush2.bf16.msra.mxu1 %v8318_v58  ;;  %3446 = vmatprep.subr.bf16.mxu0 %v8323_v60  ;;  %v8423_v58 = vld [vmem:[#allocation13 + $0x620] ss:$16 sps:$4 sm:$0xff]   ;;  %v8425_v60 = vld [vmem:[#allocation13 + $0x624] ss:$16 sps:$4 sm:$0xff]  }
 0x274   : > { %3489 = vmatprep.subr.bf16.mxu1 %v8326_v61  ;;  %v8378_v61 = vld [vmem:[#allocation13 + $0x540] ss:$16 sps:$4 sm:$0xff]  }
 0x276   : > { %3447 = vmatpush2.bf16.msra.mxu0 %v8321_v48 }
 0x277   : > { %3490 = vmatpush2.bf16.msra.mxu1 %v8324_v63  ;;  %3448 = vmatprep.subr.bf16.mxu0 %v8329_v0  ;;  %v8383_v0 = vld [vmem:[#allocation13 + $0x524] ss:$16 sps:$4 sm:$0xff]  }
 0x278   : > { %3491 = vmatprep.subr.bf16.mxu1 %v8332_v1  ;;  %v8429_v1 = vld [vmem:[#allocation13 + $0x600] ss:$16 sps:$4 sm:$0xff]  }
 0x27a   : > { %3449 = vmatpush2.bf16.msra.mxu0 %v8327_v52  ;;  %v8431_v52 = vld [vmem:[#allocation13 + $0x604] ss:$16 sps:$4 sm:$0xff]  }
 0x27b   : > { %3492 = vmatpush2.bf16.msra.mxu1 %v8330_v2  ;;  %3450 = vmatprep.subr.bf16.mxu0 %v8335_v4  ;;  %v8381_v2 = vld [vmem:[#allocation13 + $0x520] ss:$16 sps:$4 sm:$0xff]  }
 0x27c   : > { %3493 = vmatprep.subr.bf16.mxu1 %v8338_v6 }
 0x27e   : > { %3451 = vmatpush2.bf16.msra.mxu0 %v8333_v27  ;;  %v8386_v27 = vld [vmem:[#allocation13 + $0x504] ss:$16 sps:$4 sm:$0xff]  }
 0x27f   : > { %3494 = vmatpush2.bf16.msra.mxu1 %v8336_v31  ;;  %4541 = vmatprep.subr.bf16.mxu0 %v8341_v32  ;;  %v8435_v31 = vld [vmem:[#allocation13 + $0x7e0] ss:$16 sps:$4 sm:$0xff]   ;;  %v8437_v32 = vld [vmem:[#allocation13 + $0x7e4] ss:$16 sps:$4 sm:$0xff]  }
 0x280   : > { %4582 = vmatprep.subr.bf16.mxu1 %v8389_v19  ;;  %v8447_v19 = vld [vmem:[#allocation13 + $0x7a0] ss:$16 sps:$4 sm:$0xff]  }
 0x281   : > { %3453 = vmatmul.mubr.bf16.vlgmr.msra.gmra.mxu0 %v2686_v44  ;;  %v8354_v44 = vld [vmem:[#allocation13 + $0x440] ss:$16 sps:$4 sm:$0xff]   ;;  %v9870_v48 = vpop.f32.mrf.mxu0 }
 0x282   : > { %3496 = vmatmul.mubr.bf16.vlgmr.msra.gmra.mxu1 %v2688_v45  ;;  %4542 = vmatpush1.bf16.msra.mxu0 %v8339_v33  ;;  %v8357_v45 = vld [vmem:[#allocation13 + $0x420] ss:$16 sps:$4 sm:$0xff]   ;;  %v9872_v63 = vpop.f32.mrf.mxu1 }
 0x283   : > { %4543 = vmatprep.subr.bf16.mxu0 %v8344_v8  ;;  %4583 = vmatpush1.bf16.msra.mxu1 %v8387_v21  ;;  %v9874_v4 = vpop.f32.mrf.mxu0  ;;  %v8384_v33 = vld [vmem:[#allocation13 + $0x500] ss:$16 sps:$4 sm:$0xff]  }
 0x284   : > { %4584 = vmatprep.subr.bf16.mxu1 %v8395_v24  ;;  %v9876_v6 = vpop.f32.mrf.mxu1 }
 0x285   : > { %v9878_v8 = vpop.f32.mrf.mxu0 }
 0x286   : > { %4544 = vmatpush1.bf16.msra.mxu0 %v8342_v9  ;;  %v9880_v9 = vpop.f32.mrf.mxu1 }
 0x287   : > { %4545 = vmatprep.subr.bf16.mxu0 %v8347_v10  ;;  %4585 = vmatpush1.bf16.msra.mxu1 %v8393_v23  ;;  %v8392_v10 = vld [vmem:[#allocation13 + $0x4ec] ss:$16 sps:$4 sm:$0xff]  }
 0x288   : > { %4586 = vmatprep.subr.bf16.mxu1 %v8401_v11  ;;  %v8453_v11 = vld [vmem:[#allocation13 + $0x780] ss:$16 sps:$4 sm:$0xff]  }
 0x28a   : > { %4546 = vmatpush1.bf16.msra.mxu0 %v8345_v12  ;;  %v8441_v12 = vld [vmem:[#allocation13 + $0x7c0] ss:$16 sps:$4 sm:$0xff]  }
 0x28b   : > { %4547 = vmatprep.subr.bf16.mxu0 %v8350_v13  ;;  %4587 = vmatpush1.bf16.msra.mxu1 %v8399_v30  ;;  %v8443_v13 = vld [vmem:[#allocation13 + $0x7c4] ss:$16 sps:$4 sm:$0xff]  }
 0x28c   : > { %4588 = vmatprep.subr.bf16.mxu1 %v8407_v38  ;;  %v8459_v38 = vld [vmem:[#allocation13 + $0x760] ss:$16 sps:$4 sm:$0xff]  }
 0x28e   : > { %4548 = vmatpush1.bf16.msra.mxu0 %v8348_v14  ;;  %v9882_v14 = vpop.f32.mrf.mxu0 }
 0x28f   : > { %4549 = vmatprep.subr.bf16.mxu0 %v8353_v16  ;;  %4589 = vmatpush1.bf16.msra.mxu1 %v8405_v37  ;;  %v9884_v16 = vpop.f32.mrf.mxu1 }
 0x290   : > { %4590 = vmatprep.subr.bf16.mxu1 %v8413_v46  ;;  %v8477_v46 = vld [vmem:[#allocation13 + $0x700] ss:$16 sps:$4 sm:$0xff]  }
 0x292   : > { %4550 = vmatpush1.bf16.msra.mxu0 %v8351_v17 }
 0x293   : > { %4551 = vmatprep.subr.bf16.mxu0 %v8356_v55  ;;  %4591 = vmatpush1.bf16.msra.mxu1 %v8411_v43  ;;  %v8471_v43 = vld [vmem:[#allocation13 + $0x720] ss:$16 sps:$4 sm:$0xff]  }
 0x294   : > { %4592 = vmatprep.subr.bf16.mxu1 %v8419_v54  ;;  %v1647_v54 = vadd.f32 %v9834_v28, %v9832_v26  ;;  %v1653_v26 = vadd.f32 %v9848_v50, %v9846_v49 }
 0x296   : > { %4552 = vmatpush1.bf16.msra.mxu0 %v8354_v44 }
 0x297   : > { %4553 = vmatprep.subr.bf16.mxu0 %v8359_v5  ;;  %4593 = vmatpush1.bf16.msra.mxu1 %v8417_v53  ;;  %v8449_v5 = vld [vmem:[#allocation13 + $0x7a4] ss:$16 sps:$4 sm:$0xff]  }
 0x298   : > { %4594 = vmatprep.subr.bf16.mxu1 %v8425_v60  ;;  %v1651_v60 = vadd.f32 %v9842_v41, %v9840_v40 }
 0x29a   : > { %4554 = vmatpush1.bf16.msra.mxu0 %v8357_v45  ;;  %v2420_v28 = vadd.f32 %v9878_v8, %v1651_v60 }
 0x29b   : > { %4555 = vmatprep.subr.bf16.mxu0 %v8362_v18  ;;  %4595 = vmatpush1.bf16.msra.mxu1 %v8423_v58 }
 0x29c   : > { %4596 = vmatprep.subr.bf16.mxu1 %v8431_v52 }
 0x29e   : > { %4556 = vmatpush1.bf16.msra.mxu0 %v8360_v20 }
 0x29f   : > { %4557 = vmatprep.subr.bf16.mxu0 %v8365_v22  ;;  %4597 = vmatpush1.bf16.msra.mxu1 %v8429_v1 }
 0x2a0   : > { %4598 = vmatprep.subr.bf16.mxu1 %v8437_v32 }
 0x2a2   : > { %4558 = vmatpush2.bf16.msra.mxu0 %v8363_v25 }
 0x2a3   : > { %4559 = vmatprep.subr.bf16.mxu0 %v8368_v29  ;;  %4599 = vmatpush2.bf16.msra.mxu1 %v8435_v31  ;;  %v8455_v29 = vld [vmem:[#allocation13 + $0x784] ss:$16 sps:$4 sm:$0xff]   ;;  %v2422_v31 = vadd.f32 %v9882_v14, %v1653_v26 }
 0x2a4   : > { %4600 = vmatprep.subr.bf16.mxu1 %v8443_v13 }
 0x2a6   : > { %4560 = vmatpush2.bf16.msra.mxu0 %v8366_v15 }
 0x2a7   : > { %4561 = vmatprep.subr.bf16.mxu0 %v8371_v36  ;;  %4601 = vmatpush2.bf16.msra.mxu1 %v8441_v12 }
 0x2a8   : > { %4602 = vmatprep.subr.bf16.mxu1 %v8449_v5 }
 0x2aa   : > { %4562 = vmatpush2.bf16.msra.mxu0 %v8369_v39  ;;  %v8467_v39 = vld [vmem:[#allocation13 + $0x744] ss:$16 sps:$4 sm:$0xff]  }
 0x2ab   : > { %4563 = vmatprep.subr.bf16.mxu0 %v8374_v42  ;;  %4603 = vmatpush2.bf16.msra.mxu1 %v8447_v19  ;;  %v8465_v42 = vld [vmem:[#allocation13 + $0x740] ss:$16 sps:$4 sm:$0xff]  }
 0x2ac   : > { %4604 = vmatprep.subr.bf16.mxu1 %v8455_v29 }
 0x2ae   : > { %4564 = vmatpush2.bf16.msra.mxu0 %v8372_v47  ;;  %v8485_v47 = vld [vmem:[#allocation13 + $0x6ec] ss:$16 sps:$4 sm:$0xff]  }
 0x2af   : > { %4565 = vmatprep.subr.bf16.mxu0 %v8377_v51  ;;  %4605 = vmatpush2.bf16.msra.mxu1 %v8453_v11  ;;  %v3516_v51 = vlaneseq }
 0x2b1   : > { %v9898_v53 = vshrl.u32 %v3516_v51, 7 }
 0x2b2   : > { %4566 = vmatpush2.bf16.msra.mxu0 %v8375_v56  ;;  %v1649_v56 = vadd.f32 %v9838_v35, %v9836_v34 }
 0x2b3   : > { %4567 = vmatprep.subr.bf16.mxu0 %v8380_v57  ;;  %v2416_v57 = vadd.f32 %v9870_v48, %v1647_v54  ;;  %v9907_v58 = vsub.s32 0, %v9898_v53  ;;  %v9915_v1 = vsub.s32 1, %v9898_v53  ;;  %v9920_v48 = vld [vmem:[#allocation11] sm:$0xf]  ;;  %v3586_v52 = vadd.s32 8, %v9898_v53 }
 0x2b5   : > { %v2459_v40 = vadd.f32 %v9872_v63, %v2416_v57  ;;  %v2463_v63 = vadd.f32 %v9880_v9, %v2420_v28  ;;  %v3553_v14 = vrot.slane %v9920_v48, %v9915_v1 }
 0x2b6   : > { %4568 = vmatpush2.bf16.msra.mxu0 %v8378_v61  ;;  %v2418_v61 = vadd.f32 %v9874_v4, %v1649_v56  ;;  %v3587_v4 = vstv %s7149_s24  ;;  %s9340_s24 = smov [#allocation17]  }
 0x2b7   : > { %4569 = vmatprep.subr.bf16.mxu0 %v8383_v0  ;;  %v9912_v0 = vld [vmem:[#allocation10] sm:$0xf]  ;;  %v3588_v12 = vadd.s32 %v3587_v4, %v9898_v53  ;;  %s9163_s9 = sshll.u32 %s9340_s24, 4  ;;  %s9164_s9 = int_to_ptr.vmem [resolvable:$false] %s9163_s9 }
 0x2b8   : > { %s9165_s6 = scalar_lea.vmem %s9164_s9, 1024  ;;  %p9166_p6 = scmp.lt.s32.totalorder %s6536_s18, %s9164_s9 }
 0x2b9   : > { %vm3590_vm3 = vcmp.ge.s32.totalorder %v3588_v12, 0  ;;  %vm3592_vm4 = vcmp.lt.s32.totalorder %v3588_v12, 16  ;;  %v8426_v12 = vld [vmem:[#allocation13 + $0x428] ss:$16 sps:$4 sm:$0xff]   ;;  %p9167_p8 = scmp.lt.s32.totalorder %s9165_s6, %s9159_s12 }
 0x2ba   : > { %4570 = vmatpush2.bf16.msra.mxu0 %v8381_v2  ;;  %v3519_v2 = vrot.slane %v9912_v0, %v9907_v58  ;;  %vm9937_vm7 = vmand %vm3590_vm3, %vm3592_vm4 }
 0x2bb   : > { %4571 = vmatprep.subr.bf16.mxu0 %v8386_v27  ;;  %v2461_v27 = vadd.f32 %v9876_v6, %v2418_v61  ;;  %p9168_p12 = por %p9167_p8, %p9166_p6 }
 0x2bd   : > { %p9169_p1 = pnand %p9168_p12, %p9162_p0 }
 0x2be   : > { %4572 = vmatpush2.bf16.msra.mxu0 %v8384_v33  ;;  %v3549_v33 = vrot.slane %v9920_v48, %v9907_v58 }
 0x2bf   : > { %4623 = vmatprep.subr.bf16.mxu0 %v8392_v10  ;;  %v3523_v10 = vrot.slane %v9912_v0, %v9915_v1 }
 0x2c1   : > { %v2501_v17 = vpop.f32.mrf.mxu0 }
 0x2c2   : > { %v2544_v55 = vpop.f32.mrf.mxu1  ;;  %v2502_v44 = vadd.f32 %v2501_v17, %v9854_v59 }
 0x2c3   : > { %v2503_v45 = vpop.f32.mrf.mxu0 }
 0x2c4   : > { %v2546_v18 = vpop.f32.mrf.mxu1  ;;  %v9887_v20 = vadd.f32 %v2544_v55, %v2502_v44  ;;  %v2504_v21 = vadd.f32 %v2503_v45, %v9856_v62  ;;  %v8461_v62 = vld [vmem:[#allocation13 + $0x764] ss:$16 sps:$4 sm:$0xff]   ;;  %v3589_v55 = vadd.s32 %v3587_v4, %v3586_v52  ;;  %v2465_v45 = vadd.f32 %v9884_v16, %v2422_v31  ;;  %v8396_v4 = vld [vmem:[#allocation13 + $0x4c8] ss:$16 sps:$4 sm:$0xff]  }
 0x2c5   : > { %v2505_v22 = vpop.f32.mrf.mxu0  ;;  %4606 = vmatprep.subr.bf16.mxu1 %v8461_v62  ;;  %v8402_v31 = vld [vmem:[#allocation13 + $0x4a8] ss:$16 sps:$4 sm:$0xff]   ;;  %v8500_v62 = vld [vmem:[#allocation13 + $0xa4] ss:$16 sps:$4 sm:$0xff]  }
 0x2c6   : > { %v2548_v23 = vpop.f32.mrf.mxu1  ;;  %v9890_v24 = vadd.f32 %v2546_v18, %v2504_v21  ;;  %v2506_v25 = vadd.f32 %v2505_v22, %v9862_v3  ;;  %4607 = vmatpush2.bf16.msra.mxu1 %v8459_v38  ;;  %v8473_v3 = vld [vmem:[#allocation13 + $0x724] ss:$16 sps:$4 sm:$0xff]   ;;  %vm3591_vm5 = vcmp.ge.s32.totalorder %v3589_v55, 0  ;;  %vm3593_vm6 = vcmp.lt.s32.totalorder %v3589_v55, 16  ;;  %v8440_v55 = vld [vmem:[#allocation13 + $0x5ec] ss:$16 sps:$4 sm:$0xff]  }
 0x2c7   : > { %v2507_v30 = vpop.f32.mrf.mxu0  ;;  %4608 = vmatprep.subr.bf16.mxu1 %v8467_v39  ;;  %vm9941_vm8 = vmand %vm3591_vm5, %vm3593_vm6 }
 0x2c8   : > { %v9893_v59 = vadd.f32 %v2548_v23, %v2506_v25  ;;  %v2508_v15 = vadd.f32 %v2507_v30, %v9864_v7  ;;  %v2550_v36 = vpop.f32.mrf.mxu1  ;;  %v8479_v7 = vld [vmem:[#allocation13 + $0x704] ss:$16 sps:$4 sm:$0xff]   ;;  %vm10012_vm9 = vmpackc.low %vm9941_vm8, %vm9937_vm7 }
 0x2ca   : > { %v9896_v37 = vadd.f32 %v2550_v36, %v2508_v15  ;;  %4609 = vmatpush2.bf16.msra.mxu1 %v8465_v42  ;;  %v8497_v15 = vld [vmem:[#allocation13 + $0x6ac] ss:$16 sps:$4 sm:$0xff]  }
 0x2cb   : > { %4610 = vmatprep.subr.bf16.mxu1 %v8473_v3 }
 0x2ce   : > { %4611 = vmatpush2.bf16.msra.mxu1 %v8471_v43 }
 0x2cf   : > { %4612 = vmatprep.subr.bf16.mxu1 %v8479_v7 }
 0x2d2   : > { %4613 = vmatpush2.bf16.msra.mxu1 %v8477_v46 }
 0x2d3   : > { %4664 = vmatprep.subr.bf16.mxu1 %v8485_v47 }
 0x301   : > { %v3368_v34 = vpop.f32.mrf.mxu0 }
 0x302   : > { %v3411_v35 = vpop.f32.mrf.mxu1 }
 0x303   : > { %v3412_v41 = vadd.f32 %v3411_v35, %v3368_v34  ;;  %v3370_v49 = vpop.f32.mrf.mxu0 }
 0x304   : > { %v3413_v50 = vpop.f32.mrf.mxu1 }
 0x305   : > { %v3506_v32 = vadd.f32 %v3412_v41, %v2459_v40  ;;  %v3414_v8 = vadd.f32 %v3413_v50, %v3370_v49  ;;  %v3372_v13 = vpop.f32.mrf.mxu0  ;;  %v8390_v40 = vld [vmem:[#allocation13 + $0x4e8] ss:$16 sps:$4 sm:$0xff]   ;;  %v8410_v49 = vld [vmem:[#allocation13 + $0x48c] ss:$16 sps:$4 sm:$0xff]  }
 0x306   : > { %v3415_v17 = vpop.f32.mrf.mxu1  ;;  %v8408_v50 = vld [vmem:[#allocation13 + $0x488] ss:$16 sps:$4 sm:$0xff]  }
 0x307   : > { %v3536_v6 = vmul.f32 %v3519_v2, %v3506_v32  ;;  %v3507_v44 = vadd.f32 %v3414_v8, %v2461_v27  ;;  %v3416_v5 = vadd.f32 %v3415_v17, %v3372_v13  ;;  %v3374_v18 = vpop.f32.mrf.mxu0  ;;  %v8404_v27 = vld [vmem:[#allocation13 + $0x4ac] ss:$16 sps:$4 sm:$0xff]   ;;  %v8432_v17 = vld [vmem:[#allocation13 + $0x408] ss:$16 sps:$4 sm:$0xff]  }
 0x308   : > { %v3417_v19 = vpop.f32.mrf.mxu1  ;;  %v8416_v32 = vld [vmem:[#allocation13 + $0x46c] ss:$16 sps:$4 sm:$0xff]  }
 0x309   : > { %v3566_v21 = vadd.f32 %v3549_v33, %v3536_v6  ;;  %v3537_v22 = vmul.f32 %v3523_v10, %v3507_v44  ;;  %v3510_v23 = vadd.f32 %v3416_v5, %v2463_v63  ;;  %v3418_v25 = vadd.f32 %v3417_v19, %v3374_v18  ;;  %v8422_v8 = vld [vmem:[#allocation13 + $0x44c] ss:$16 sps:$4 sm:$0xff]   ;;  %v8438_v6 = vld [vmem:[#allocation13 + $0x5e8] ss:$16 sps:$4 sm:$0xff]  }
 0x30a   : > { %v8428_v63 = vld [vmem:[#allocation13 + $0x42c] ss:$16 sps:$4 sm:$0xff]   ;;  %v9969_v5 = vsub.s32 2, %v9898_v53  ;;  %v9972_v18 = vsub.s32 3, %v9898_v53 }
 0x30b   : > { %v3567_v9 = vadd.f32 %v3553_v14, %v3537_v22  ;;  %v3540_v29 = vmul.f32 %v3519_v2, %v3510_v23  ;;  %v3511_v30 = vadd.f32 %v3418_v25, %v2465_v45  ;;  %v3574_v11 = vmax.f32 %v3566_v21, 0.0  ;;  %v8398_v2 = vld [vmem:[#allocation13 + $0x4cc] ss:$16 sps:$4 sm:$0xff]   ;;  %v8450_v22 = vld [vmem:[#allocation13 + $0x5a8] ss:$16 sps:$4 sm:$0xff]  }
 0x30c   : > { %v8434_v13 = vld [vmem:[#allocation13 + $0x40c] ss:$16 sps:$4 sm:$0xff]   ;;  %v3527_v25 = vrot.slane %v9912_v0, %v9969_v5  ;;  %v3531_v53 = vrot.slane %v9912_v0, %v9972_v18 }
 0x30d   : > { %v3570_v36 = vadd.f32 %v3549_v33, %v3540_v29  ;;  %v3541_v16 = vmul.f32 %v3523_v10, %v3511_v30  ;;  %v3575_v38 = vmax.f32 %v3567_v9, 0.0  ;;  %v3600_v3 = vsel %vm9937_vm7, %v3574_v11, 0.0  ;;  %v8414_v33 = vld [vmem:[#allocation13 + $0x468] ss:$16 sps:$4 sm:$0xff]   ;;  %v8446_v44 = vld [vmem:[#allocation13 + $0x5cc] ss:$16 sps:$4 sm:$0xff]  }
 0x30e   : > { %v8420_v10 = vld [vmem:[#allocation13 + $0x448] ss:$16 sps:$4 sm:$0xff]   ;;  %v8452_v45 = vld [vmem:[#allocation13 + $0x5ac] ss:$16 sps:$4 sm:$0xff]  }
 0x30f   : > { %v3578_v39 = vmax.f32 %v3570_v36, 0.0  ;;  %v3571_v42 = vadd.f32 %v3553_v14, %v3541_v16  ;;  %v3601_v51 = vsel %vm9937_vm7, %v3575_v38, 0.0  ;;  %v8444_v14 = vld [vmem:[#allocation13 + $0x5c8] ss:$16 sps:$4 sm:$0xff]   ;;  %v8458_v9 = vld [vmem:[#allocation13 + $0x58c] ss:$16 sps:$4 sm:$0xff]   ;;  %v3557_v36 = vrot.slane %v9920_v48, %v9969_v5 }
 0x311   : > { %v3604_v43 = vsel %vm9941_vm8, %v3578_v39, 0.0  ;;  %v9949_v46 = vpack.c.bf16 %v3578_v39, %v3574_v11  ;;  %v3579_v7 = vmax.f32 %v3571_v42, 0.0  ;;  %v8456_v42 = vld [vmem:[#allocation13 + $0x588] ss:$16 sps:$4 sm:$0xff]  }
 0x312   : > { %v9951_v47 = vpack.c.bf16 %v3604_v43, %v3600_v3 }
 0x313   : > { %v3605_v54 = vsel %vm9941_vm8, %v3579_v7, 0.0  ;;  %v9957_v56 = vpack.c.bf16 %v3579_v7, %v3575_v38  ;;  %v3561_v7 = vrot.slane %v9920_v48, %v9972_v18 }
 0x314   : > { %v9959_v57 = vpack.c.bf16 %v3605_v54, %v3601_v51  ;;  %v3872_v60 = vshll.u32 %v9951_v47, 16  ;;  %v3870_v35 = vshrl.u32 %v9951_v47, 16 }
 0x316   : > { %v3879_v61 = vshll.u32 %v9959_v57, 16  ;;  %v3874_v26 = vrot.slane %v3872_v60, 1  ;;  %v3877_v28 = vshrl.u32 %v9959_v57, 16 }
 0x318   : > { %v3881_v34 = vrot.slane %v3879_v61, 1  ;;  %v9965_v41 = vor.u32 %v3874_v26, %v3870_v35 }
 0x31a   : > { %v3882_v52 = vor.u32 %v3881_v34, %v3877_v28  ;;  %v8462_v34 = vld [vmem:[#allocation13 + $0x568] ss:$16 sps:$4 sm:$0xff]  }
 0x31c   : > { %4573 = vmatprep.mubr.bf16.mxu0 %v3882_v52 }
 0x31d   : > { %4574 = vmatmul.mubr.bf16.vlgmr.msra.gmra.mxu0 %v9965_v41 }
 0x31e   : > { %4624 = vmatpush1.bf16.msra.mxu0 %v8390_v40  ;;  %4655 = vmatprep.mubr.bf16.mxu0 %v3882_v52 }
 0x31f   : > { %4625 = vmatprep.subr.bf16.mxu0 %v8398_v2 }
 0x322   : > { %4626 = vmatpush1.bf16.msra.mxu0 %v8396_v4 }
 0x323   : > { %4627 = vmatprep.subr.bf16.mxu0 %v8404_v27  ;;  %v8468_v27 = vld [vmem:[#allocation13 + $0x548] ss:$16 sps:$4 sm:$0xff]  }
 0x326   : > { %4628 = vmatpush1.bf16.msra.mxu0 %v8402_v31 }
 0x327   : > { %4629 = vmatprep.subr.bf16.mxu0 %v8410_v49 }
 0x32a   : > { %4630 = vmatpush1.bf16.msra.mxu0 %v8408_v50 }
 0x32b   : > { %4631 = vmatprep.subr.bf16.mxu0 %v8416_v32  ;;  %v8476_v32 = vld [vmem:[#allocation13 + $0x52c] ss:$16 sps:$4 sm:$0xff]  }
 0x32e   : > { %4632 = vmatpush1.bf16.msra.mxu0 %v8414_v33 }
 0x32f   : > { %4633 = vmatprep.subr.bf16.mxu0 %v8422_v8 }
 0x332   : > { %4634 = vmatpush1.bf16.msra.mxu0 %v8420_v10 }
 0x333   : > { %4635 = vmatprep.subr.bf16.mxu0 %v8428_v63  ;;  %v8474_v63 = vld [vmem:[#allocation13 + $0x528] ss:$16 sps:$4 sm:$0xff]  }
 0x336   : > { %4636 = vmatpush1.bf16.msra.mxu0 %v8426_v12 }
 0x337   : > { %4637 = vmatprep.subr.bf16.mxu0 %v8434_v13 }
 0x33a   : > { %4638 = vmatpush1.bf16.msra.mxu0 %v8432_v17  ;;  %v8482_v17 = vld [vmem:[#allocation13 + $0x50c] ss:$16 sps:$4 sm:$0xff]  }
 0x33b   : > { %4639 = vmatprep.subr.bf16.mxu0 %v8440_v55 }
 0x33e   : > { %4640 = vmatpush2.bf16.msra.mxu0 %v8438_v6 }
 0x33f   : > { %4641 = vmatprep.subr.bf16.mxu0 %v8446_v44 }
 0x341   : > { %v3454_v19 = vpop.f32.mrf.mxu0 }
 0x342   : > { %4642 = vmatpush2.bf16.msra.mxu0 %v8444_v14  ;;  %v3497_v21 = vpop.f32.mrf.mxu1  ;;  %v8480_v14 = vld [vmem:[#allocation13 + $0x508] ss:$16 sps:$4 sm:$0xff]  }
 0x343   : > { %v3498_v23 = vadd.f32 %v3497_v21, %v3454_v19  ;;  %4643 = vmatprep.subr.bf16.mxu0 %v8452_v45  ;;  %v3456_v29 = vpop.f32.mrf.mxu0  ;;  %v8488_v19 = vld [vmem:[#allocation13 + $0xe4] ss:$16 sps:$4 sm:$0xff]  }
 0x344   : > { %v3499_v30 = vpop.f32.mrf.mxu1 }
 0x345   : > { %v3508_v11 = vadd.f32 %v3498_v23, %v9887_v20  ;;  %v3500_v16 = vadd.f32 %v3499_v30, %v3456_v29  ;;  %v3458_v38 = vpop.f32.mrf.mxu0  ;;  %v8464_v20 = vld [vmem:[#allocation13 + $0x56c] ss:$16 sps:$4 sm:$0xff]   ;;  %v8483_v29 = vld [vmem:[#allocation13 + $0x6e8] ss:$16 sps:$4 sm:$0xff]   ;;  %v8486_v30 = vld [vmem:[#allocation13 + $0xe0] ss:$16 sps:$4 sm:$0xff]  }
 0x346   : > { %4644 = vmatpush2.bf16.msra.mxu0 %v8450_v22  ;;  %v3501_v39 = vpop.f32.mrf.mxu1 }
 0x347   : > { %v3538_v3 = vmul.f32 %v3527_v25, %v3508_v11  ;;  %v3509_v43 = vadd.f32 %v3500_v16, %v9890_v24  ;;  %v3502_v51 = vadd.f32 %v3501_v39, %v3458_v38  ;;  %4645 = vmatprep.subr.bf16.mxu0 %v8458_v9  ;;  %v3460_v54 = vpop.f32.mrf.mxu0  ;;  %v8470_v24 = vld [vmem:[#allocation13 + $0x54c] ss:$16 sps:$4 sm:$0xff]   ;;  %v8489_v38 = vld [vmem:[#allocation13 + $0x6c8] ss:$16 sps:$4 sm:$0xff]   ;;  %v8492_v39 = vld [vmem:[#allocation13 + $0xc0] ss:$16 sps:$4 sm:$0xff]  }
 0x348   : > { %v3503_v60 = vpop.f32.mrf.mxu1  ;;  %v8491_v16 = vld [vmem:[#allocation13 + $0x6cc] ss:$16 sps:$4 sm:$0xff]  }
 0x349   : > { %v3568_v61 = vadd.f32 %v3557_v36, %v3538_v3  ;;  %v3539_v26 = vmul.f32 %v3531_v53, %v3509_v43  ;;  %v3512_v28 = vadd.f32 %v3502_v51, %v9893_v59  ;;  %v3504_v0 = vadd.f32 %v3503_v60, %v3460_v54  ;;  %v8498_v3 = vld [vmem:[#allocation13 + $0xa0] ss:$16 sps:$4 sm:$0xff]   ;;  %v8506_v43 = vld [vmem:[#allocation13 + $0x84] ss:$16 sps:$4 sm:$0xff]   ;;  %v8507_v60 = vld [vmem:[#allocation13 + $0x668] ss:$16 sps:$4 sm:$0xff]  }
 0x34a   : > { %4646 = vmatpush2.bf16.msra.mxu0 %v8456_v42  ;;  %v8495_v42 = vld [vmem:[#allocation13 + $0x6a8] ss:$16 sps:$4 sm:$0xff]   ;;  %v8504_v51 = vld [vmem:[#allocation13 + $0x80] ss:$16 sps:$4 sm:$0xff]   ;;  %v8512_v54 = vld [vmem:[#allocation13 + $0x64] ss:$16 sps:$4 sm:$0xff]  }
 0x34b   : > { %v3569_v35 = vadd.f32 %v3561_v7, %v3539_v26  ;;  %v3542_v52 = vmul.f32 %v3527_v25, %v3512_v28  ;;  %v3513_v40 = vadd.f32 %v3504_v0, %v9896_v37  ;;  %4647 = vmatprep.subr.bf16.mxu0 %v8464_v20  ;;  %v3576_v2 = vmax.f32 %v3568_v61, 0.0  ;;  %v8509_v20 = vld [vmem:[#allocation13 + $0x66c] ss:$16 sps:$4 sm:$0xff]   ;;  %v8510_v61 = vld [vmem:[#allocation13 + $0x60] ss:$16 sps:$4 sm:$0xff]  }
 0x34c   : > { %v8515_v26 = vld [vmem:[#allocation13 + $0x64c] ss:$16 sps:$4 sm:$0xff]   ;;  %v8518_v28 = vld [vmem:[#allocation13 + $0x44] ss:$16 sps:$4 sm:$0xff]   ;;  %v8513_v0 = vld [vmem:[#allocation13 + $0x648] ss:$16 sps:$4 sm:$0xff]  }
 0x34d   : > { %v3572_v48 = vadd.f32 %v3557_v36, %v3542_v52  ;;  %v3543_v4 = vmul.f32 %v3531_v53, %v3513_v40  ;;  %v3577_v31 = vmax.f32 %v3569_v35, 0.0  ;;  %v3602_v59 = vsel %vm9937_vm7, %v3576_v2, 0.0  ;;  %v8494_v53 = vld [vmem:[#allocation13 + $0xc4] ss:$16 sps:$4 sm:$0xff]   ;;  %v8521_v35 = vld [vmem:[#allocation13 + $0x62c] ss:$16 sps:$4 sm:$0xff]  }
 0x34e   : > { %4648 = vmatpush2.bf16.msra.mxu0 %v8462_v34  ;;  %v8516_v34 = vld [vmem:[#allocation13 + $0x40] ss:$16 sps:$4 sm:$0xff]   ;;  %v8524_v52 = vld [vmem:[#allocation13 + $0x24] ss:$16 sps:$4 sm:$0xff]   ;;  %v8519_v40 = vld [vmem:[#allocation13 + $0x628] ss:$16 sps:$4 sm:$0xff]  }
 0x34f   : > { %v3580_v49 = vmax.f32 %v3572_v48, 0.0  ;;  %v3573_v50 = vadd.f32 %v3561_v7, %v3543_v4  ;;  %4649 = vmatprep.subr.bf16.mxu0 %v8470_v24  ;;  %v3603_v12 = vsel %vm9937_vm7, %v3577_v31, 0.0  ;;  %v8501_v7 = vld [vmem:[#allocation13 + $0x688] ss:$16 sps:$4 sm:$0xff]   ;;  %v8522_v24 = vld [vmem:[#allocation13 + $0x20] ss:$16 sps:$4 sm:$0xff]  }
 0x350   : > { %v8530_v48 = vld [vmem:[#allocation13 + $0x4] ss:$16 sps:$4 sm:$0xff]   ;;  %v8525_v4 = vld [vmem:[#allocation13 + $0x608] ss:$16 sps:$4 sm:$0xff]  }
 0x351   : > { %v3606_v33 = vsel %vm9941_vm8, %v3580_v49, 0.0  ;;  %v9990_v8 = vpack.c.bf16 %v3580_v49, %v3576_v2  ;;  %v3581_v37 = vmax.f32 %v3573_v50, 0.0  ;;  %v8527_v2 = vld [vmem:[#allocation13 + $0x60c] ss:$16 sps:$4 sm:$0xff]   ;;  %v8536_v49 = vld [vmem:[#allocation13 + $0x1e4] ss:$16 sps:$4 sm:$0xff]  }
 0x352   : > { %v9992_v10 = vpack.c.bf16 %v3606_v33, %v3602_v59  ;;  %4650 = vmatpush2.bf16.msra.mxu0 %v8468_v27  ;;  %v8528_v27 = vld [vmem:[#allocation13] ss:$16 sps:$4 sm:$0xff]   ;;  %v8531_v50 = vld [vmem:[#allocation13 + $0x7e8] ss:$16 sps:$4 sm:$0xff]   ;;  %v8539_v59 = vld [vmem:[#allocation13 + $0x7cc] ss:$16 sps:$4 sm:$0xff]  }
 0x353   : > { %v3607_v13 = vsel %vm9941_vm8, %v3581_v37, 0.0  ;;  %4651 = vmatprep.subr.bf16.mxu0 %v8476_v32  ;;  %v9998_v55 = vpack.c.bf16 %v3581_v37, %v3577_v31  ;;  %v8533_v31 = vld [vmem:[#allocation13 + $0x7ec] ss:$16 sps:$4 sm:$0xff]   ;;  %v8534_v32 = vld [vmem:[#allocation13 + $0x1e0] ss:$16 sps:$4 sm:$0xff]  }
 0x354   : > { %v10000_v6 = vpack.c.bf16 %v3607_v13, %v3603_v12  ;;  %v3886_v44 = vshll.u32 %v9992_v10, 16  ;;  %v3884_v25 = vshrl.u32 %v9992_v10, 16  ;;  %v8542_v33 = vld [vmem:[#allocation13 + $0x1c4] ss:$16 sps:$4 sm:$0xff]   ;;  %v8537_v37 = vld [vmem:[#allocation13 + $0x7c8] ss:$16 sps:$4 sm:$0xff]  }
 0x355   : > { %v8545_v12 = vld [vmem:[#allocation13 + $0x7ac] ss:$16 sps:$4 sm:$0xff]   ;;  %v8548_v13 = vld [vmem:[#allocation13 + $0x1a4] ss:$16 sps:$4 sm:$0xff]  }
 0x356   : > { %4652 = vmatpush2.bf16.msra.mxu0 %v8474_v63  ;;  %v3893_v45 = vshll.u32 %v10000_v6, 16  ;;  %v3888_v21 = vrot.slane %v3886_v44, 1  ;;  %v3891_v22 = vshrl.u32 %v10000_v6, 16  ;;  %v8540_v63 = vld [vmem:[#allocation13 + $0x1c0] ss:$16 sps:$4 sm:$0xff]  }
 0x357   : > { %4653 = vmatprep.subr.bf16.mxu0 %v8482_v17  ;;  %v8543_v17 = vld [vmem:[#allocation13 + $0x7a8] ss:$16 sps:$4 sm:$0xff]   ;;  %v8546_v44 = vld [vmem:[#allocation13 + $0x1a0] ss:$16 sps:$4 sm:$0xff]  }
 0x358   : > { %v3895_v23 = vrot.slane %v3893_v45, 1  ;;  %v10006_v11 = vor.u32 %v3888_v21, %v3884_v25  ;;  %v8554_v45 = vld [vmem:[#allocation13 + $0x184] ss:$16 sps:$4 sm:$0xff]   ;;  %v8552_v21 = vld [vmem:[#allocation13 + $0x180] ss:$16 sps:$4 sm:$0xff]  }
 0x359   : > { %v8555_v25 = vld [vmem:[#allocation13 + $0x768] ss:$16 sps:$4 sm:$0xff]  }
 0x35a   : > { %4654 = vmatpush2.bf16.msra.mxu0 %v8480_v14  ;;  %v3896_v9 = vor.u32 %v3895_v23, %v3891_v22  ;;  %v8551_v14 = vld [vmem:[#allocation13 + $0x78c] ss:$16 sps:$4 sm:$0xff]   ;;  %v8560_v23 = vld [vmem:[#allocation13 + $0x164] ss:$16 sps:$4 sm:$0xff]  }
 0x35b   : > { %5345 = vmatprep.subr.bf16.mxu0 %v8488_v19  ;;  %v8549_v19 = vld [vmem:[#allocation13 + $0x788] ss:$16 sps:$4 sm:$0xff]   ;;  %v8557_v22 = vld [vmem:[#allocation13 + $0x76c] ss:$16 sps:$4 sm:$0xff]  }
 0x35c   : > { %4614 = vmatprep.mubr.bf16.mxu1 %v3896_v9 }
 0x35d   : > { %4656 = vmatmul.mubr.bf16.vlgmr.msra.gmra.mxu0 %v9965_v41  ;;  %4615 = vmatmul.mubr.bf16.vlgmr.msra.gmra.mxu1 %v10006_v11  ;;  %v8503_v41 = vld [vmem:[#allocation13 + $0x68c] ss:$16 sps:$4 sm:$0xff]  }
 0x35e   : > { %4665 = vmatpush1.bf16.msra.mxu1 %v8483_v29  ;;  %5346 = vmatpush1.bf16.msra.mxu0 %v8486_v30  ;;  %v8563_v29 = vld [vmem:[#allocation13 + $0x74c] ss:$16 sps:$4 sm:$0xff]   ;;  %v8566_v30 = vld [vmem:[#allocation13 + $0x144] ss:$16 sps:$4 sm:$0xff]  }
 0x35f   : > { %7408 = vmatprep.mubr.msk.bf16.mxu0 %vm10012_vm9, %v9957_v56  ;;  %4696 = vmatprep.mubr.bf16.mxu1 %v3896_v9  ;;  %v8558_v9 = vld [vmem:[#allocation13 + $0x160] ss:$16 sps:$4 sm:$0xff]  }
 0x360   : > { %4666 = vmatprep.subr.bf16.mxu1 %v8491_v16  ;;  %5347 = vmatprep.subr.bf16.mxu0 %v8494_v53  ;;  %v8561_v16 = vld [vmem:[#allocation13 + $0x748] ss:$16 sps:$4 sm:$0xff]   ;;  %v8564_v53 = vld [vmem:[#allocation13 + $0x140] ss:$16 sps:$4 sm:$0xff]  }
 0x362   : > { %4667 = vmatpush1.bf16.msra.mxu1 %v8489_v38  ;;  %5348 = vmatpush1.bf16.msra.mxu0 %v8492_v39  ;;  %v8569_v38 = vld [vmem:[#allocation13 + $0x72c] ss:$16 sps:$4 sm:$0xff]   ;;  %v8572_v39 = vld [vmem:[#allocation13 + $0x124] ss:$16 sps:$4 sm:$0xff]  }
 0x363   : > { %4668 = vmatprep.subr.bf16.mxu1 %v8497_v15  ;;  %5349 = vmatprep.subr.bf16.mxu0 %v8500_v62  ;;  %v8567_v15 = vld [vmem:[#allocation13 + $0x728] ss:$16 sps:$4 sm:$0xff]   ;;  %v8570_v62 = vld [vmem:[#allocation13 + $0x120] ss:$16 sps:$4 sm:$0xff]  }
 0x366   : > { %4669 = vmatpush1.bf16.msra.mxu1 %v8495_v42  ;;  %5350 = vmatpush1.bf16.msra.mxu0 %v8498_v3  ;;  %v8575_v42 = vld [vmem:[#allocation13 + $0x70c] ss:$16 sps:$4 sm:$0xff]   ;;  %v8578_v3 = vld [vmem:[#allocation13 + $0x104] ss:$16 sps:$4 sm:$0xff]  }
 0x367   : > { %4670 = vmatprep.subr.bf16.mxu1 %v8503_v41  ;;  %5351 = vmatprep.subr.bf16.mxu0 %v8506_v43  ;;  %v8573_v41 = vld [vmem:[#allocation13 + $0x708] ss:$16 sps:$4 sm:$0xff]   ;;  %v8576_v43 = vld [vmem:[#allocation13 + $0x100] ss:$16 sps:$4 sm:$0xff]  }
 0x36a   : > { %4671 = vmatpush1.bf16.msra.mxu1 %v8501_v7  ;;  %5352 = vmatpush1.bf16.msra.mxu0 %v8504_v51  ;;  %v8581_v7 = vld [vmem:[#allocation13 + $0x2e4] ss:$16 sps:$4 sm:$0xff]   ;;  %v8584_v51 = vld [vmem:[#allocation13 + $0xec] ss:$16 sps:$4 sm:$0xff]  }
 0x36b   : > { %4672 = vmatprep.subr.bf16.mxu1 %v8509_v20  ;;  %5353 = vmatprep.subr.bf16.mxu0 %v8512_v54  ;;  %v8579_v20 = vld [vmem:[#allocation13 + $0x2e0] ss:$16 sps:$4 sm:$0xff]   ;;  %v8582_v54 = vld [vmem:[#allocation13 + $0xe8] ss:$16 sps:$4 sm:$0xff]  }
 0x36e   : > { %4673 = vmatpush1.bf16.msra.mxu1 %v8507_v60  ;;  %5354 = vmatpush1.bf16.msra.mxu0 %v8510_v61  ;;  %v8587_v60 = vld [vmem:[#allocation13 + $0x2c4] ss:$16 sps:$4 sm:$0xff]   ;;  %v8590_v61 = vld [vmem:[#allocation13 + $0xcc] ss:$16 sps:$4 sm:$0xff]  }
 0x36f   : > { %4674 = vmatprep.subr.bf16.mxu1 %v8515_v26  ;;  %5355 = vmatprep.subr.bf16.mxu0 %v8518_v28  ;;  %v8585_v26 = vld [vmem:[#allocation13 + $0x2c0] ss:$16 sps:$4 sm:$0xff]   ;;  %v8588_v28 = vld [vmem:[#allocation13 + $0xc8] ss:$16 sps:$4 sm:$0xff]  }
 0x372   : > { %4675 = vmatpush1.bf16.msra.mxu1 %v8513_v0  ;;  %5356 = vmatpush1.bf16.msra.mxu0 %v8516_v34  ;;  %v8593_v0 = vld [vmem:[#allocation13 + $0x2a4] ss:$16 sps:$4 sm:$0xff]   ;;  %v8591_v34 = vld [vmem:[#allocation13 + $0x2a0] ss:$16 sps:$4 sm:$0xff]  }
 0x373   : > { %4676 = vmatprep.subr.bf16.mxu1 %v8521_v35  ;;  %5357 = vmatprep.subr.bf16.mxu0 %v8524_v52  ;;  %v8594_v35 = vld [vmem:[#allocation13 + $0xa8] ss:$16 sps:$4 sm:$0xff]   ;;  %v8599_v52 = vld [vmem:[#allocation13 + $0x284] ss:$16 sps:$4 sm:$0xff]  }
 0x376   : > { %4677 = vmatpush1.bf16.msra.mxu1 %v8519_v40  ;;  %5358 = vmatpush1.bf16.msra.mxu0 %v8522_v24  ;;  %v8602_v40 = vld [vmem:[#allocation13 + $0x8c] ss:$16 sps:$4 sm:$0xff]   ;;  %v8597_v24 = vld [vmem:[#allocation13 + $0x280] ss:$16 sps:$4 sm:$0xff]  }
 0x377   : > { %4678 = vmatprep.subr.bf16.mxu1 %v8527_v2  ;;  %5359 = vmatprep.subr.bf16.mxu0 %v8530_v48  ;;  %v8600_v2 = vld [vmem:[#allocation13 + $0x88] ss:$16 sps:$4 sm:$0xff]   ;;  %v8605_v48 = vld [vmem:[#allocation13 + $0x264] ss:$16 sps:$4 sm:$0xff]  }
 0x37a   : > { %4679 = vmatpush1.bf16.msra.mxu1 %v8525_v4  ;;  %5360 = vmatpush1.bf16.msra.mxu0 %v8528_v27  ;;  %v8603_v4 = vld [vmem:[#allocation13 + $0x260] ss:$16 sps:$4 sm:$0xff]   ;;  %v8606_v27 = vld [vmem:[#allocation13 + $0x68] ss:$16 sps:$4 sm:$0xff]  }
 0x37b   : > { %4680 = vmatprep.subr.bf16.mxu1 %v8533_v31  ;;  %5361 = vmatprep.subr.bf16.mxu0 %v8536_v49  ;;  %v8611_v31 = vld [vmem:[#allocation13 + $0x244] ss:$16 sps:$4 sm:$0xff]   ;;  %v8614_v49 = vld [vmem:[#allocation13 + $0x4c] ss:$16 sps:$4 sm:$0xff]  }
 0x37e   : > { %4681 = vmatpush2.bf16.msra.mxu1 %v8531_v50  ;;  %5362 = vmatpush2.bf16.msra.mxu0 %v8534_v32  ;;  %v8609_v50 = vld [vmem:[#allocation13 + $0x240] ss:$16 sps:$4 sm:$0xff]   ;;  %v8612_v32 = vld [vmem:[#allocation13 + $0x48] ss:$16 sps:$4 sm:$0xff]  }
 0x37f   : > { %4682 = vmatprep.subr.bf16.mxu1 %v8539_v59  ;;  %5363 = vmatprep.subr.bf16.mxu0 %v8542_v33  ;;  %v8617_v59 = vld [vmem:[#allocation13 + $0x224] ss:$16 sps:$4 sm:$0xff]   ;;  %v8620_v33 = vld [vmem:[#allocation13 + $0x2c] ss:$16 sps:$4 sm:$0xff]  }
 0x382   : > { %4683 = vmatpush2.bf16.msra.mxu1 %v8537_v37  ;;  %5364 = vmatpush2.bf16.msra.mxu0 %v8540_v63  ;;  %v8615_v37 = vld [vmem:[#allocation13 + $0x220] ss:$16 sps:$4 sm:$0xff]   ;;  %v8618_v63 = vld [vmem:[#allocation13 + $0x28] ss:$16 sps:$4 sm:$0xff]  }
 0x383   : > { %4684 = vmatprep.subr.bf16.mxu1 %v8545_v12  ;;  %5365 = vmatprep.subr.bf16.mxu0 %v8548_v13  ;;  %v8623_v12 = vld [vmem:[#allocation13 + $0x204] ss:$16 sps:$4 sm:$0xff]   ;;  %v8626_v13 = vld [vmem:[#allocation13 + $0xc] ss:$16 sps:$4 sm:$0xff]  }
 0x386   : > { %4685 = vmatpush2.bf16.msra.mxu1 %v8543_v17  ;;  %5366 = vmatpush2.bf16.msra.mxu0 %v8546_v44  ;;  %v8621_v17 = vld [vmem:[#allocation13 + $0x200] ss:$16 sps:$4 sm:$0xff]   ;;  %v8624_v44 = vld [vmem:[#allocation13 + $0x8] ss:$16 sps:$4 sm:$0xff]  }
 0x387   : > { %4686 = vmatprep.subr.bf16.mxu1 %v8551_v14  ;;  %5367 = vmatprep.subr.bf16.mxu0 %v8554_v45  ;;  %v8629_v14 = vld [vmem:[#allocation13 + $0x3e4] ss:$16 sps:$4 sm:$0xff]   ;;  %v8632_v45 = vld [vmem:[#allocation13 + $0x1ec] ss:$16 sps:$4 sm:$0xff]  }
 0x38a   : > { %4687 = vmatpush2.bf16.msra.mxu1 %v8549_v19  ;;  %5368 = vmatpush2.bf16.msra.mxu0 %v8552_v21  ;;  %v8627_v19 = vld [vmem:[#allocation13 + $0x3e0] ss:$16 sps:$4 sm:$0xff]   ;;  %v8630_v21 = vld [vmem:[#allocation13 + $0x1e8] ss:$16 sps:$4 sm:$0xff]  }
 0x38b   : > { %4688 = vmatprep.subr.bf16.mxu1 %v8557_v22  ;;  %5369 = vmatprep.subr.bf16.mxu0 %v8560_v23  ;;  %v8635_v22 = vld [vmem:[#allocation13 + $0x3c4] ss:$16 sps:$4 sm:$0xff]   ;;  %v8638_v23 = vld [vmem:[#allocation13 + $0x1cc] ss:$16 sps:$4 sm:$0xff]  }
 0x38e   : > { %4689 = vmatpush2.bf16.msra.mxu1 %v8555_v25  ;;  %5370 = vmatpush2.bf16.msra.mxu0 %v8558_v9  ;;  %v8633_v25 = vld [vmem:[#allocation13 + $0x3c0] ss:$16 sps:$4 sm:$0xff]   ;;  %v8636_v9 = vld [vmem:[#allocation13 + $0x1c8] ss:$16 sps:$4 sm:$0xff]  }
 0x38f   : > { %4690 = vmatprep.subr.bf16.mxu1 %v8563_v29  ;;  %5371 = vmatprep.subr.bf16.mxu0 %v8566_v30  ;;  %v8641_v29 = vld [vmem:[#allocation13 + $0x3a4] ss:$16 sps:$4 sm:$0xff]   ;;  %v8644_v30 = vld [vmem:[#allocation13 + $0x1ac] ss:$16 sps:$4 sm:$0xff]  }
 0x392   : > { %4691 = vmatpush2.bf16.msra.mxu1 %v8561_v16  ;;  %5372 = vmatpush2.bf16.msra.mxu0 %v8564_v53  ;;  %v8639_v16 = vld [vmem:[#allocation13 + $0x3a0] ss:$16 sps:$4 sm:$0xff]   ;;  %v8642_v53 = vld [vmem:[#allocation13 + $0x1a8] ss:$16 sps:$4 sm:$0xff]  }
 0x393   : > { %4692 = vmatprep.subr.bf16.mxu1 %v8569_v38  ;;  %5373 = vmatprep.subr.bf16.mxu0 %v8572_v39  ;;  %v8647_v38 = vld [vmem:[#allocation13 + $0x384] ss:$16 sps:$4 sm:$0xff]   ;;  %v8650_v39 = vld [vmem:[#allocation13 + $0x18c] ss:$16 sps:$4 sm:$0xff]  }
 0x396   : > { %4693 = vmatpush2.bf16.msra.mxu1 %v8567_v15  ;;  %5374 = vmatpush2.bf16.msra.mxu0 %v8570_v62  ;;  %v8645_v15 = vld [vmem:[#allocation13 + $0x380] ss:$16 sps:$4 sm:$0xff]   ;;  %v8648_v62 = vld [vmem:[#allocation13 + $0x188] ss:$16 sps:$4 sm:$0xff]  }
 0x397   : > { %4694 = vmatprep.subr.bf16.mxu1 %v8575_v42  ;;  %5375 = vmatprep.subr.bf16.mxu0 %v8578_v3  ;;  %v8653_v42 = vld [vmem:[#allocation13 + $0x364] ss:$16 sps:$4 sm:$0xff]   ;;  %v8656_v3 = vld [vmem:[#allocation13 + $0x16c] ss:$16 sps:$4 sm:$0xff]  }
 0x39a   : > { %4695 = vmatpush2.bf16.msra.mxu1 %v8573_v41  ;;  %5376 = vmatpush2.bf16.msra.mxu0 %v8576_v43  ;;  %v8651_v41 = vld [vmem:[#allocation13 + $0x360] ss:$16 sps:$4 sm:$0xff]   ;;  %v8654_v43 = vld [vmem:[#allocation13 + $0x168] ss:$16 sps:$4 sm:$0xff]  }
 0x39b   : > { %5386 = vmatprep.subr.bf16.mxu1 %v8581_v7  ;;  %5427 = vmatprep.subr.bf16.mxu0 %v8584_v51  ;;  %v8659_v7 = vld [vmem:[#allocation13 + $0x344] ss:$16 sps:$4 sm:$0xff]   ;;  %v8662_v51 = vld [vmem:[#allocation13 + $0x14c] ss:$16 sps:$4 sm:$0xff]  }
 0x39d   : > { %4697 = vmatmul.mubr.bf16.vlgmr.msra.gmra.mxu1 %v10006_v11  ;;  %7411 = vmatmul.mubr.msk.bf16.vlgmr.msra.gmra.mxu0 %vm10012_vm9, %v9949_v46  ;;  %v8596_v11 = vld [vmem:[#allocation13 + $0xac] ss:$16 sps:$4 sm:$0xff]  }
 0x39e   : > { %5387 = vmatpush1.bf16.msra.mxu1 %v8579_v20  ;;  %7414 = vmatprep.mubr.msk.bf16.mxu1 %vm10012_vm9, %v9998_v55  ;;  %v8657_v20 = vld [vmem:[#allocation13 + $0x340] ss:$16 sps:$4 sm:$0xff]  }
 0x39f   : > { %5428 = vmatpush1.bf16.msra.mxu0 %v8582_v54  ;;  %7420 = vmatprep.mubr.msk.bf16.mxu0 %vm10012_vm9, %v9957_v56  ;;  %v8608_v56 = vld [vmem:[#allocation13 + $0x6c] ss:$16 sps:$4 sm:$0xff]   ;;  %v8660_v54 = vld [vmem:[#allocation13 + $0x148] ss:$16 sps:$4 sm:$0xff]  }
 0x3a0   : > { %5388 = vmatprep.subr.bf16.mxu1 %v8587_v60  ;;  %5429 = vmatprep.subr.bf16.mxu0 %v8590_v61  ;;  %v8665_v60 = vld [vmem:[#allocation13 + $0x324] ss:$16 sps:$4 sm:$0xff]   ;;  %v8668_v61 = vld [vmem:[#allocation13 + $0x12c] ss:$16 sps:$4 sm:$0xff]  }
 0x3a2   : > { %5389 = vmatpush1.bf16.msra.mxu1 %v8585_v26  ;;  %v8663_v26 = vld [vmem:[#allocation13 + $0x320] ss:$16 sps:$4 sm:$0xff]  }
 0x3a3   : > { %5430 = vmatpush1.bf16.msra.mxu0 %v8588_v28  ;;  %5390 = vmatprep.subr.bf16.mxu1 %v8593_v0  ;;  %v8666_v28 = vld [vmem:[#allocation13 + $0x128] ss:$16 sps:$4 sm:$0xff]   ;;  %v8671_v0 = vld [vmem:[#allocation13 + $0x304] ss:$16 sps:$4 sm:$0xff]  }
 0x3a4   : > { %5431 = vmatprep.subr.bf16.mxu0 %v8596_v11  ;;  %v8674_v11 = vld [vmem:[#allocation13 + $0x10c] ss:$16 sps:$4 sm:$0xff]  }
 0x3a6   : > { %5391 = vmatpush1.bf16.msra.mxu1 %v8591_v34  ;;  %v8669_v34 = vld [vmem:[#allocation13 + $0x300] ss:$16 sps:$4 sm:$0xff]  }
 0x3a7   : > { %5432 = vmatpush1.bf16.msra.mxu0 %v8594_v35  ;;  %5392 = vmatprep.subr.bf16.mxu1 %v8599_v52  ;;  %v8672_v35 = vld [vmem:[#allocation13 + $0x108] ss:$16 sps:$4 sm:$0xff]   ;;  %v8677_v52 = vld [vmem:[#allocation13 + $0x2ec] ss:$16 sps:$4 sm:$0xff]  }
 0x3a8   : > { %5433 = vmatprep.subr.bf16.mxu0 %v8602_v40  ;;  %v8680_v40 = vld [vmem:[#allocation13 + $0x8e4] ss:$16 sps:$4 sm:$0xff]  }
 0x3aa   : > { %5393 = vmatpush1.bf16.msra.mxu1 %v8597_v24  ;;  %v8675_v24 = vld [vmem:[#allocation13 + $0x2e8] ss:$16 sps:$4 sm:$0xff]  }
 0x3ab   : > { %5434 = vmatpush1.bf16.msra.mxu0 %v8600_v2  ;;  %5394 = vmatprep.subr.bf16.mxu1 %v8605_v48  ;;  %v8678_v2 = vld [vmem:[#allocation13 + $0x8e0] ss:$16 sps:$4 sm:$0xff]   ;;  %v8683_v48 = vld [vmem:[#allocation13 + $0x2cc] ss:$16 sps:$4 sm:$0xff]  }
 0x3ac   : > { %5435 = vmatprep.subr.bf16.mxu0 %v8608_v56 }
 0x3ae   : > { %5395 = vmatpush1.bf16.msra.mxu1 %v8603_v4  ;;  %v8686_v4 = vld [vmem:[#allocation13 + $0x8c4] ss:$16 sps:$4 sm:$0xff]  }
 0x3af   : > { %5436 = vmatpush1.bf16.msra.mxu0 %v8606_v27  ;;  %5396 = vmatprep.subr.bf16.mxu1 %v8611_v31  ;;  %v5643_v27 = vrot.slane %v9959_v57, 1  ;;  %v8681_v31 = vld [vmem:[#allocation13 + $0x2c8] ss:$16 sps:$4 sm:$0xff]   ;;  %v8789_v57 = vld [vmem:[#allocation13 + $0xa80] ss:$16 sps:$4 sm:$0xff]  }
 0x3b0   : > { %5437 = vmatprep.subr.bf16.mxu0 %v8614_v49 }
 0x3b2   : > { %5397 = vmatpush1.bf16.msra.mxu1 %v8609_v50  ;;  %v8684_v50 = vld [vmem:[#allocation13 + $0x8c0] ss:$16 sps:$4 sm:$0xff]  }
 0x3b3   : > { %5438 = vmatpush1.bf16.msra.mxu0 %v8612_v32  ;;  %5398 = vmatprep.subr.bf16.mxu1 %v8617_v59  ;;  %v8689_v32 = vld [vmem:[#allocation13 + $0x2ac] ss:$16 sps:$4 sm:$0xff]   ;;  %v8692_v59 = vld [vmem:[#allocation13 + $0x8a4] ss:$16 sps:$4 sm:$0xff]  }
 0x3b4   : > { %5439 = vmatprep.subr.bf16.mxu0 %v8620_v33  ;;  %v8687_v33 = vld [vmem:[#allocation13 + $0x2a8] ss:$16 sps:$4 sm:$0xff]  }
 0x3b6   : > { %5399 = vmatpush1.bf16.msra.mxu1 %v8615_v37 }
 0x3b7   : > { %5440 = vmatpush1.bf16.msra.mxu0 %v8618_v63  ;;  %5400 = vmatprep.subr.bf16.mxu1 %v8623_v12  ;;  %v8690_v63 = vld [vmem:[#allocation13 + $0x8a0] ss:$16 sps:$4 sm:$0xff]   ;;  %v8695_v12 = vld [vmem:[#allocation13 + $0x28c] ss:$16 sps:$4 sm:$0xff]  }
 0x3b8   : > { %5441 = vmatprep.subr.bf16.mxu0 %v8626_v13  ;;  %v8693_v13 = vld [vmem:[#allocation13 + $0x288] ss:$16 sps:$4 sm:$0xff]  }
 0x3ba   : > { %5401 = vmatpush1.bf16.msra.mxu1 %v8621_v17  ;;  %v8696_v17 = vld [vmem:[#allocation13 + $0x880] ss:$16 sps:$4 sm:$0xff]  }
 0x3bb   : > { %5442 = vmatpush1.bf16.msra.mxu0 %v8624_v44  ;;  %5402 = vmatprep.subr.bf16.mxu1 %v8629_v14  ;;  %v8701_v44 = vld [vmem:[#allocation13 + $0x26c] ss:$16 sps:$4 sm:$0xff]   ;;  %v8704_v14 = vld [vmem:[#allocation13 + $0x864] ss:$16 sps:$4 sm:$0xff]  }
 0x3bc   : > { %5443 = vmatprep.subr.bf16.mxu0 %v8632_v45  ;;  %v8699_v45 = vld [vmem:[#allocation13 + $0x268] ss:$16 sps:$4 sm:$0xff]  }
 0x3be   : > { %5403 = vmatpush2.bf16.msra.mxu1 %v8627_v19  ;;  %v8702_v19 = vld [vmem:[#allocation13 + $0x860] ss:$16 sps:$4 sm:$0xff]  }
 0x3bf   : > { %5444 = vmatpush2.bf16.msra.mxu0 %v8630_v21  ;;  %5404 = vmatprep.subr.bf16.mxu1 %v8635_v22  ;;  %v8707_v21 = vld [vmem:[#allocation13 + $0x24c] ss:$16 sps:$4 sm:$0xff]   ;;  %v8710_v22 = vld [vmem:[#allocation13 + $0x844] ss:$16 sps:$4 sm:$0xff]  }
 0x3c0   : > { %5445 = vmatprep.subr.bf16.mxu0 %v8638_v23  ;;  %v8705_v23 = vld [vmem:[#allocation13 + $0x248] ss:$16 sps:$4 sm:$0xff]  }
 0x3c2   : > { %5405 = vmatpush2.bf16.msra.mxu1 %v8633_v25  ;;  %v8708_v25 = vld [vmem:[#allocation13 + $0x840] ss:$16 sps:$4 sm:$0xff]  }
 0x3c3   : > { %5446 = vmatpush2.bf16.msra.mxu0 %v8636_v9  ;;  %5406 = vmatprep.subr.bf16.mxu1 %v8641_v29  ;;  %v8713_v9 = vld [vmem:[#allocation13 + $0x22c] ss:$16 sps:$4 sm:$0xff]   ;;  %v8716_v29 = vld [vmem:[#allocation13 + $0x824] ss:$16 sps:$4 sm:$0xff]  }
 0x3c4   : > { %5447 = vmatprep.subr.bf16.mxu0 %v8644_v30  ;;  %v8711_v30 = vld [vmem:[#allocation13 + $0x228] ss:$16 sps:$4 sm:$0xff]  }
 0x3c6   : > { %5407 = vmatpush2.bf16.msra.mxu1 %v8639_v16  ;;  %v8714_v16 = vld [vmem:[#allocation13 + $0x820] ss:$16 sps:$4 sm:$0xff]  }
 0x3c7   : > { %5448 = vmatpush2.bf16.msra.mxu0 %v8642_v53  ;;  %5408 = vmatprep.subr.bf16.mxu1 %v8647_v38  ;;  %v8719_v53 = vld [vmem:[#allocation13 + $0x20c] ss:$16 sps:$4 sm:$0xff]   ;;  %v8722_v38 = vld [vmem:[#allocation13 + $0x804] ss:$16 sps:$4 sm:$0xff]  }
 0x3c8   : > { %5449 = vmatprep.subr.bf16.mxu0 %v8650_v39  ;;  %v8717_v39 = vld [vmem:[#allocation13 + $0x208] ss:$16 sps:$4 sm:$0xff]  }
 0x3ca   : > { %5409 = vmatpush2.bf16.msra.mxu1 %v8645_v15  ;;  %v8720_v15 = vld [vmem:[#allocation13 + $0x800] ss:$16 sps:$4 sm:$0xff]  }
 0x3cb   : > { %5450 = vmatpush2.bf16.msra.mxu0 %v8648_v62  ;;  %5410 = vmatprep.subr.bf16.mxu1 %v8653_v42  ;;  %v8725_v62 = vld [vmem:[#allocation13 + $0x3ec] ss:$16 sps:$4 sm:$0xff]   ;;  %v8728_v42 = vld [vmem:[#allocation13 + $0x9e4] ss:$16 sps:$4 sm:$0xff]  }
 0x3cc   : > { %5451 = vmatprep.subr.bf16.mxu0 %v8656_v3  ;;  %v8723_v3 = vld [vmem:[#allocation13 + $0x3e8] ss:$16 sps:$4 sm:$0xff]  }
 0x3ce   : > { %5411 = vmatpush2.bf16.msra.mxu1 %v8651_v41  ;;  %v8726_v41 = vld [vmem:[#allocation13 + $0x9e0] ss:$16 sps:$4 sm:$0xff]  }
 0x3cf   : > { %5452 = vmatpush2.bf16.msra.mxu0 %v8654_v43  ;;  %5412 = vmatprep.subr.bf16.mxu1 %v8659_v7  ;;  %v8731_v43 = vld [vmem:[#allocation13 + $0x3cc] ss:$16 sps:$4 sm:$0xff]   ;;  %v8734_v7 = vld [vmem:[#allocation13 + $0x9c4] ss:$16 sps:$4 sm:$0xff]  }
 0x3d0   : > { %5453 = vmatprep.subr.bf16.mxu0 %v8662_v51  ;;  %v8729_v51 = vld [vmem:[#allocation13 + $0x3c8] ss:$16 sps:$4 sm:$0xff]  }
 0x3d2   : > { %5413 = vmatpush2.bf16.msra.mxu1 %v8657_v20  ;;  %v8732_v20 = vld [vmem:[#allocation13 + $0x9c0] ss:$16 sps:$4 sm:$0xff]  }
 0x3d3   : > { %5454 = vmatpush2.bf16.msra.mxu0 %v8660_v54  ;;  %5414 = vmatprep.subr.bf16.mxu1 %v8665_v60  ;;  %v8737_v54 = vld [vmem:[#allocation13 + $0x3ac] ss:$16 sps:$4 sm:$0xff]   ;;  %v8740_v60 = vld [vmem:[#allocation13 + $0x9a4] ss:$16 sps:$4 sm:$0xff]  }
 0x3d4   : > { %5455 = vmatprep.subr.bf16.mxu0 %v8668_v61  ;;  %v8735_v61 = vld [vmem:[#allocation13 + $0x3a8] ss:$16 sps:$4 sm:$0xff]  }
 0x3d6   : > { %5415 = vmatpush2.bf16.msra.mxu1 %v8663_v26  ;;  %v8738_v26 = vld [vmem:[#allocation13 + $0x9a0] ss:$16 sps:$4 sm:$0xff]  }
 0x3d7   : > { %5456 = vmatpush2.bf16.msra.mxu0 %v8666_v28  ;;  %5416 = vmatprep.subr.bf16.mxu1 %v8671_v0  ;;  %v8743_v28 = vld [vmem:[#allocation13 + $0x38c] ss:$16 sps:$4 sm:$0xff]   ;;  %v8746_v0 = vld [vmem:[#allocation13 + $0x984] ss:$16 sps:$4 sm:$0xff]  }
 0x3d8   : > { %5457 = vmatprep.subr.bf16.mxu0 %v8674_v11  ;;  %v8741_v11 = vld [vmem:[#allocation13 + $0x388] ss:$16 sps:$4 sm:$0xff]  }
 0x3da   : > { %5417 = vmatpush2.bf16.msra.mxu1 %v8669_v34  ;;  %v8744_v34 = vld [vmem:[#allocation13 + $0x980] ss:$16 sps:$4 sm:$0xff]  }
 0x3db   : > { %5458 = vmatpush2.bf16.msra.mxu0 %v8672_v35  ;;  %5468 = vmatprep.subr.bf16.mxu1 %v8677_v52  ;;  %v8749_v35 = vld [vmem:[#allocation13 + $0x36c] ss:$16 sps:$4 sm:$0xff]   ;;  %v8752_v52 = vld [vmem:[#allocation13 + $0x964] ss:$16 sps:$4 sm:$0xff]  }
 0x3dc   : > { %6290 = vmatprep.subr.bf16.mxu0 %v8680_v40  ;;  %v8747_v40 = vld [vmem:[#allocation13 + $0x368] ss:$16 sps:$4 sm:$0xff]  }
 0x3dd   : > { %7417 = vmatmul.mubr.msk.bf16.vlgmr.msra.gmra.mxu1 %vm10012_vm9, %v9990_v8  ;;  %v10034_v56 = vpop.f32.mrf.mxu0 }
 0x3de   : > { %7423 = vmatmul.mubr.msk.bf16.vlgmr.msra.gmra.mxu0 %vm10012_vm9, %v9949_v46  ;;  %5469 = vmatpush1.bf16.msra.mxu1 %v8675_v24  ;;  %v8750_v24 = vld [vmem:[#allocation13 + $0x960] ss:$16 sps:$4 sm:$0xff]  }
 0x3df   : > { %7426 = vmatprep.mubr.msk.bf16.mxu1 %vm10012_vm9, %v9998_v55  ;;  %6291 = vmatpush1.bf16.msra.mxu0 %v8678_v2  ;;  %v10043_v49 = vpop.f32.mrf.mxu0  ;;  %v8698_v55 = vld [vmem:[#allocation13 + $0x884] ss:$16 sps:$4 sm:$0xff]   ;;  %v8755_v2 = vld [vmem:[#allocation13 + $0x34c] ss:$16 sps:$4 sm:$0xff]  }
 0x3e0   : > { %6322 = vmatprep.mubr.bf16.mxu0 %v5643_v27  ;;  %5470 = vmatprep.subr.bf16.mxu1 %v8683_v48  ;;  %v8758_v48 = vld [vmem:[#allocation13 + $0x944] ss:$16 sps:$4 sm:$0xff]  }
 0x3e1   : > { %6292 = vmatprep.subr.bf16.mxu0 %v8686_v4  ;;  %v4579_v46 = vpop.f32.mrf.mxu0  ;;  %v8753_v4 = vld [vmem:[#allocation13 + $0x348] ss:$16 sps:$4 sm:$0xff]  }
 0x3e2   : > { %5471 = vmatpush1.bf16.msra.mxu1 %v8681_v31  ;;  %v8756_v31 = vld [vmem:[#allocation13 + $0x940] ss:$16 sps:$4 sm:$0xff]  }
 0x3e3   : > { %6293 = vmatpush1.bf16.msra.mxu0 %v8684_v50  ;;  %v4580_v37 = vpop.f32.mrf.mxu0  ;;  %5472 = vmatprep.subr.bf16.mxu1 %v8689_v32  ;;  %v8761_v50 = vld [vmem:[#allocation13 + $0x32c] ss:$16 sps:$4 sm:$0xff]   ;;  %v8764_v32 = vld [vmem:[#allocation13 + $0x924] ss:$16 sps:$4 sm:$0xff]   ;;  %v8762_v46 = vld [vmem:[#allocation13 + $0x920] ss:$16 sps:$4 sm:$0xff]  }
 0x3e4   : > { %6294 = vmatprep.subr.bf16.mxu0 %v8692_v59  ;;  %v8759_v59 = vld [vmem:[#allocation13 + $0x328] ss:$16 sps:$4 sm:$0xff]   ;;  %v8770_v37 = vld [vmem:[#allocation13 + $0x904] ss:$16 sps:$4 sm:$0xff]  }
 0x3e6   : > { %5473 = vmatpush1.bf16.msra.mxu1 %v8687_v33  ;;  %v8767_v33 = vld [vmem:[#allocation13 + $0x30c] ss:$16 sps:$4 sm:$0xff]  }
 0x3e7   : > { %6295 = vmatpush1.bf16.msra.mxu0 %v8690_v63  ;;  %5474 = vmatprep.subr.bf16.mxu1 %v8695_v12  ;;  %v8765_v63 = vld [vmem:[#allocation13 + $0x308] ss:$16 sps:$4 sm:$0xff]   ;;  %v8768_v12 = vld [vmem:[#allocation13 + $0x900] ss:$16 sps:$4 sm:$0xff]  }
 0x3e8   : > { %6296 = vmatprep.subr.bf16.mxu0 %v8698_v55  ;;  %v8773_v55 = vld [vmem:[#allocation13 + $0xae4] ss:$16 sps:$4 sm:$0xff]  }
 0x3ea   : > { %5475 = vmatpush1.bf16.msra.mxu1 %v8693_v13  ;;  %v8776_v13 = vld [vmem:[#allocation13 + $0x8ec] ss:$16 sps:$4 sm:$0xff]  }
 0x3eb   : > { %6297 = vmatpush1.bf16.msra.mxu0 %v8696_v17  ;;  %5476 = vmatprep.subr.bf16.mxu1 %v8701_v44  ;;  %v8771_v17 = vld [vmem:[#allocation13 + $0xae0] ss:$16 sps:$4 sm:$0xff]   ;;  %v8774_v44 = vld [vmem:[#allocation13 + $0x8e8] ss:$16 sps:$4 sm:$0xff]  }
 0x3ec   : > { %6298 = vmatprep.subr.bf16.mxu0 %v8704_v14  ;;  %v5642_v14 = vrot.slane %v9951_v47, 1  ;;  %v8873_v47 = vld [vmem:[#allocation13 + $0xaa8] ss:$16 sps:$4 sm:$0xff]  }
 0x3ee   : > { %5477 = vmatpush1.bf16.msra.mxu1 %v8699_v45  ;;  %v8779_v45 = vld [vmem:[#allocation13 + $0xac4] ss:$16 sps:$4 sm:$0xff]  }
 0x3ef   : > { %6299 = vmatpush1.bf16.msra.mxu0 %v8702_v19  ;;  %5478 = vmatprep.subr.bf16.mxu1 %v8707_v21 }
 0x3f0   : > { %6300 = vmatprep.subr.bf16.mxu0 %v8710_v22  ;;  %v5645_v22 = vrot.slane %v10000_v6, 1  ;;  %v8876_v6 = vld [vmem:[#allocation13 + $0xa88] ss:$16 sps:$4 sm:$0xff]  }
 0x3f2   : > { %5479 = vmatpush1.bf16.msra.mxu1 %v8705_v23  ;;  %v8782_v23 = vld [vmem:[#allocation13 + $0x8cc] ss:$16 sps:$4 sm:$0xff]  }
 0x3f3   : > { %6301 = vmatpush1.bf16.msra.mxu0 %v8708_v25  ;;  %5480 = vmatprep.subr.bf16.mxu1 %v8713_v9  ;;  %v8777_v9 = vld [vmem:[#allocation13 + $0xac0] ss:$16 sps:$4 sm:$0xff]  }
 0x3f4   : > { %6302 = vmatprep.subr.bf16.mxu0 %v8716_v29 }
 0x3f6   : > { %5481 = vmatpush1.bf16.msra.mxu1 %v8711_v30  ;;  %v8785_v30 = vld [vmem:[#allocation13 + $0xaa4] ss:$16 sps:$4 sm:$0xff]  }
 0x3f7   : > { %6303 = vmatpush1.bf16.msra.mxu0 %v8714_v16  ;;  %5482 = vmatprep.subr.bf16.mxu1 %v8719_v53 }
 0x3f8   : > { %6304 = vmatprep.subr.bf16.mxu0 %v8722_v38 }
 0x3fa   : > { %5483 = vmatpush1.bf16.msra.mxu1 %v8717_v39  ;;  %v8783_v39 = vld [vmem:[#allocation13 + $0xaa0] ss:$16 sps:$4 sm:$0xff]  }
 0x3fb   : > { %6305 = vmatpush1.bf16.msra.mxu0 %v8720_v15  ;;  %5484 = vmatprep.subr.bf16.mxu1 %v8725_v62 }
 0x3fc   : > { %6306 = vmatprep.subr.bf16.mxu0 %v8728_v42  ;;  %v8786_v42 = vld [vmem:[#allocation13 + $0x8a8] ss:$16 sps:$4 sm:$0xff]  }
 0x3fe   : > { %5485 = vmatpush2.bf16.msra.mxu1 %v8723_v3  ;;  %v8791_v3 = vld [vmem:[#allocation13 + $0xa84] ss:$16 sps:$4 sm:$0xff]  }
 0x3ff   : > { %6307 = vmatpush2.bf16.msra.mxu0 %v8726_v41  ;;  %5486 = vmatprep.subr.bf16.mxu1 %v8731_v43  ;;  %v8794_v41 = vld [vmem:[#allocation13 + $0x88c] ss:$16 sps:$4 sm:$0xff]  }
 0x400   : > { %6308 = vmatprep.subr.bf16.mxu0 %v8734_v7  ;;  %v8800_v43 = vld [vmem:[#allocation13 + $0x86c] ss:$16 sps:$4 sm:$0xff]   ;;  %v8795_v7 = vld [vmem:[#allocation13 + $0xa60] ss:$16 sps:$4 sm:$0xff]  }
 0x402   : > { %5487 = vmatpush2.bf16.msra.mxu1 %v8729_v51  ;;  %v8798_v51 = vld [vmem:[#allocation13 + $0x868] ss:$16 sps:$4 sm:$0xff]  }
 0x403   : > { %6309 = vmatpush2.bf16.msra.mxu0 %v8732_v20  ;;  %5488 = vmatprep.subr.bf16.mxu1 %v8737_v54  ;;  %v8803_v20 = vld [vmem:[#allocation13 + $0xa44] ss:$16 sps:$4 sm:$0xff]   ;;  %v8806_v54 = vld [vmem:[#allocation13 + $0x84c] ss:$16 sps:$4 sm:$0xff]  }
 0x404   : > { %6310 = vmatprep.subr.bf16.mxu0 %v8740_v60  ;;  %v8801_v60 = vld [vmem:[#allocation13 + $0xa40] ss:$16 sps:$4 sm:$0xff]  }
 0x406   : > { %5489 = vmatpush2.bf16.msra.mxu1 %v8735_v61  ;;  %v8804_v61 = vld [vmem:[#allocation13 + $0x848] ss:$16 sps:$4 sm:$0xff]  }
 0x407   : > { %6311 = vmatpush2.bf16.msra.mxu0 %v8738_v26  ;;  %5490 = vmatprep.subr.bf16.mxu1 %v8743_v28  ;;  %v8809_v26 = vld [vmem:[#allocation13 + $0xa24] ss:$16 sps:$4 sm:$0xff]   ;;  %v8812_v28 = vld [vmem:[#allocation13 + $0x82c] ss:$16 sps:$4 sm:$0xff]  }
 0x408   : > { %6312 = vmatprep.subr.bf16.mxu0 %v8746_v0  ;;  %v8807_v0 = vld [vmem:[#allocation13 + $0xa20] ss:$16 sps:$4 sm:$0xff]  }
 0x40a   : > { %5491 = vmatpush2.bf16.msra.mxu1 %v8741_v11  ;;  %v8810_v11 = vld [vmem:[#allocation13 + $0x828] ss:$16 sps:$4 sm:$0xff]  }
 0x40b   : > { %6313 = vmatpush2.bf16.msra.mxu0 %v8744_v34  ;;  %5492 = vmatprep.subr.bf16.mxu1 %v8749_v35  ;;  %v8815_v34 = vld [vmem:[#allocation13 + $0xa04] ss:$16 sps:$4 sm:$0xff]   ;;  %v8818_v35 = vld [vmem:[#allocation13 + $0x80c] ss:$16 sps:$4 sm:$0xff]  }
 0x40c   : > { %6314 = vmatprep.subr.bf16.mxu0 %v8752_v52  ;;  %v8813_v52 = vld [vmem:[#allocation13 + $0xa00] ss:$16 sps:$4 sm:$0xff]  }
 0x40e   : > { %5493 = vmatpush2.bf16.msra.mxu1 %v8747_v40  ;;  %v8816_v40 = vld [vmem:[#allocation13 + $0x808] ss:$16 sps:$4 sm:$0xff]  }
 0x40f   : > { %6315 = vmatpush2.bf16.msra.mxu0 %v8750_v24  ;;  %5494 = vmatprep.subr.bf16.mxu1 %v8755_v2  ;;  %v8821_v24 = vld [vmem:[#allocation13 + $0xbe4] ss:$16 sps:$4 sm:$0xff]   ;;  %v8824_v2 = vld [vmem:[#allocation13 + $0x9ec] ss:$16 sps:$4 sm:$0xff]  }
 0x410   : > { %6316 = vmatprep.subr.bf16.mxu0 %v8758_v48  ;;  %v8819_v48 = vld [vmem:[#allocation13 + $0xbe0] ss:$16 sps:$4 sm:$0xff]  }
 0x412   : > { %5495 = vmatpush2.bf16.msra.mxu1 %v8753_v4  ;;  %v8822_v4 = vld [vmem:[#allocation13 + $0x9e8] ss:$16 sps:$4 sm:$0xff]  }
 0x413   : > { %6317 = vmatpush2.bf16.msra.mxu0 %v8756_v31  ;;  %5496 = vmatprep.subr.bf16.mxu1 %v8761_v50  ;;  %v8827_v31 = vld [vmem:[#allocation13 + $0xbc4] ss:$16 sps:$4 sm:$0xff]   ;;  %v8830_v50 = vld [vmem:[#allocation13 + $0x9cc] ss:$16 sps:$4 sm:$0xff]  }
 0x414   : > { %6318 = vmatprep.subr.bf16.mxu0 %v8764_v32  ;;  %v8825_v32 = vld [vmem:[#allocation13 + $0xbc0] ss:$16 sps:$4 sm:$0xff]  }
 0x416   : > { %5497 = vmatpush2.bf16.msra.mxu1 %v8759_v59  ;;  %v8828_v59 = vld [vmem:[#allocation13 + $0x9c8] ss:$16 sps:$4 sm:$0xff]  }
 0x417   : > { %6319 = vmatpush2.bf16.msra.mxu0 %v8762_v46  ;;  %5498 = vmatprep.subr.bf16.mxu1 %v8767_v33  ;;  %v8833_v46 = vld [vmem:[#allocation13 + $0xba4] ss:$16 sps:$4 sm:$0xff]   ;;  %v8836_v33 = vld [vmem:[#allocation13 + $0x9ac] ss:$16 sps:$4 sm:$0xff]  }
 0x418   : > { %6320 = vmatprep.subr.bf16.mxu0 %v8770_v37  ;;  %v8831_v37 = vld [vmem:[#allocation13 + $0xba0] ss:$16 sps:$4 sm:$0xff]  }
 0x41a   : > { %5499 = vmatpush2.bf16.msra.mxu1 %v8765_v63  ;;  %v8834_v63 = vld [vmem:[#allocation13 + $0x9a8] ss:$16 sps:$4 sm:$0xff]  }
 0x41b   : > { %6321 = vmatpush2.bf16.msra.mxu0 %v8768_v12  ;;  %6331 = vmatprep.subr.bf16.mxu1 %v8773_v55  ;;  %v8839_v12 = vld [vmem:[#allocation13 + $0xb84] ss:$16 sps:$4 sm:$0xff]   ;;  %v8842_v55 = vld [vmem:[#allocation13 + $0x98c] ss:$16 sps:$4 sm:$0xff]  }
 0x41c   : > { %6372 = vmatprep.subr.bf16.mxu0 %v8776_v13  ;;  %v8837_v13 = vld [vmem:[#allocation13 + $0xb80] ss:$16 sps:$4 sm:$0xff]  }
 0x41d   : > { %v10048_v19 = vpop.f32.mrf.mxu0  ;;  %7429 = vmatmul.mubr.msk.bf16.vlgmr.msra.gmra.mxu1 %vm10012_vm9, %v9990_v8  ;;  %v4616_v21 = vpop.f32.mrf.mxu1  ;;  %v8780_v8 = vld [vmem:[#allocation13 + $0x8c8] ss:$16 sps:$4 sm:$0xff]  }
 0x41e   : > { %6323 = vmatmul.mubr.bf16.vlgmr.msra.gmra.mxu0 %v5642_v14  ;;  %v10057_v25 = vadd.f32 %v4616_v21, %v10034_v56  ;;  %6332 = vmatpush1.bf16.msra.mxu1 %v8771_v17  ;;  %v8788_v56 = vld [vmem:[#allocation13 + $0x8ac] ss:$16 sps:$4 sm:$0xff]   ;;  %v8840_v17 = vld [vmem:[#allocation13 + $0x988] ss:$16 sps:$4 sm:$0xff]   ;;  %v8843_v21 = vld [vmem:[#allocation13 + $0xb60] ss:$16 sps:$4 sm:$0xff]  }
 0x41f   : > { %6363 = vmatprep.mubr.bf16.mxu1 %v5645_v22  ;;  %6373 = vmatpush1.bf16.msra.mxu0 %v8774_v44  ;;  %v10061_v29 = vpop.f32.mrf.mxu0  ;;  %v4618_v36 = vpop.f32.mrf.mxu1  ;;  %v8845_v44 = vld [vmem:[#allocation13 + $0xb64] ss:$16 sps:$4 sm:$0xff]  }
 0x420   : > { %6404 = vmatprep.mubr.bf16.mxu0 %v5643_v27  ;;  %v10066_v16 = vadd.f32 %v4618_v36, %v10043_v49  ;;  %6333 = vmatprep.subr.bf16.mxu1 %v8779_v45  ;;  %v8792_v27 = vld [vmem:[#allocation13 + $0x888] ss:$16 sps:$4 sm:$0xff]   ;;  %v8797_v49 = vld [vmem:[#allocation13 + $0xa64] ss:$16 sps:$4 sm:$0xff]   ;;  %v8848_v45 = vld [vmem:[#allocation13 + $0x96c] ss:$16 sps:$4 sm:$0xff]  }
 0x421   : > { %v4661_v53 = vpop.f32.mrf.mxu0  ;;  %6374 = vmatprep.subr.bf16.mxu0 %v8782_v23  ;;  %v4620_v38 = vpop.f32.mrf.mxu1  ;;  %v8846_v23 = vld [vmem:[#allocation13 + $0x968] ss:$16 sps:$4 sm:$0xff]   ;;  %v8854_v36 = vld [vmem:[#allocation13 + $0x94c] ss:$16 sps:$4 sm:$0xff]  }
 0x422   : > { %6334 = vmatpush1.bf16.msra.mxu1 %v8777_v9  ;;  %v8851_v9 = vld [vmem:[#allocation13 + $0xb44] ss:$16 sps:$4 sm:$0xff]   ;;  %v8860_v53 = vld [vmem:[#allocation13 + $0x92c] ss:$16 sps:$4 sm:$0xff]   ;;  %v8855_v38 = vld [vmem:[#allocation13 + $0xb20] ss:$16 sps:$4 sm:$0xff]  }
 0x423   : > { %6375 = vmatpush1.bf16.msra.mxu0 %v8780_v8  ;;  %v4662_v15 = vpop.f32.mrf.mxu0  ;;  %v4621_v62 = vpop.f32.mrf.mxu1  ;;  %6335 = vmatprep.subr.bf16.mxu1 %v8785_v30  ;;  %v8849_v8 = vld [vmem:[#allocation13 + $0xb40] ss:$16 sps:$4 sm:$0xff]   ;;  %v8852_v30 = vld [vmem:[#allocation13 + $0x948] ss:$16 sps:$4 sm:$0xff]  }
 0x424   : > { %6376 = vmatprep.subr.bf16.mxu0 %v8788_v56  ;;  %v8857_v56 = vld [vmem:[#allocation13 + $0xb24] ss:$16 sps:$4 sm:$0xff]   ;;  %v8866_v62 = vld [vmem:[#allocation13 + $0x90c] ss:$16 sps:$4 sm:$0xff]  }
 0x425   : > { %v8863_v15 = vld [vmem:[#allocation13 + $0xb04] ss:$16 sps:$4 sm:$0xff]  }
 0x426   : > { %6336 = vmatpush1.bf16.msra.mxu1 %v8783_v39  ;;  %v8858_v39 = vld [vmem:[#allocation13 + $0x928] ss:$16 sps:$4 sm:$0xff]  }
 0x427   : > { %6377 = vmatpush1.bf16.msra.mxu0 %v8786_v42  ;;  %6337 = vmatprep.subr.bf16.mxu1 %v8791_v3  ;;  %v8861_v42 = vld [vmem:[#allocation13 + $0xb00] ss:$16 sps:$4 sm:$0xff]   ;;  %v8864_v3 = vld [vmem:[#allocation13 + $0x908] ss:$16 sps:$4 sm:$0xff]  }
 0x428   : > { %6378 = vmatprep.subr.bf16.mxu0 %v8794_v41  ;;  %v8869_v41 = vld [vmem:[#allocation13 + $0xaec] ss:$16 sps:$4 sm:$0xff]  }
 0x42a   : > { %6338 = vmatpush1.bf16.msra.mxu1 %v8789_v57  ;;  %v8867_v57 = vld [vmem:[#allocation13 + $0xae8] ss:$16 sps:$4 sm:$0xff]  }
 0x42b   : > { %6379 = vmatpush1.bf16.msra.mxu0 %v8792_v27  ;;  %6339 = vmatprep.subr.bf16.mxu1 %v8797_v49  ;;  %v5644_v27 = vrot.slane %v9992_v10, 1  ;;  %v8872_v49 = vld [vmem:[#allocation13 + $0xacc] ss:$16 sps:$4 sm:$0xff]  }
 0x42c   : > { %6380 = vmatprep.subr.bf16.mxu0 %v8800_v43 }
 0x42e   : > { %6340 = vmatpush1.bf16.msra.mxu1 %v8795_v7 }
 0x42f   : > { %6381 = vmatpush1.bf16.msra.mxu0 %v8798_v51  ;;  %6341 = vmatprep.subr.bf16.mxu1 %v8803_v20 }
 0x430   : > { %6382 = vmatprep.subr.bf16.mxu0 %v8806_v54  ;;  %v8870_v54 = vld [vmem:[#allocation13 + $0xac8] ss:$16 sps:$4 sm:$0xff]  }
 0x432   : > { %6342 = vmatpush1.bf16.msra.mxu1 %v8801_v60 }
 0x433   : > { %6383 = vmatpush1.bf16.msra.mxu0 %v8804_v61  ;;  %6343 = vmatprep.subr.bf16.mxu1 %v8809_v26  ;;  %v8875_v26 = vld [vmem:[#allocation13 + $0xaac] ss:$16 sps:$4 sm:$0xff]  }
 0x434   : > { %6384 = vmatprep.subr.bf16.mxu0 %v8812_v28 }
 0x436   : > { %6344 = vmatpush1.bf16.msra.mxu1 %v8807_v0 }
 0x437   : > { %6385 = vmatpush1.bf16.msra.mxu0 %v8810_v11  ;;  %6345 = vmatprep.subr.bf16.mxu1 %v8815_v34  ;;  %v8878_v34 = vld [vmem:[#allocation13 + $0xa8c] ss:$16 sps:$4 sm:$0xff]  }
 0x438   : > { %6386 = vmatprep.subr.bf16.mxu0 %v8818_v35  ;;  %v8879_v35 = vld [vmem:[#allocation13 + $0xa68] ss:$16 sps:$4 sm:$0xff]  }
 0x43a   : > { %6346 = vmatpush1.bf16.msra.mxu1 %v8813_v52  ;;  %v8882_v52 = vld [vmem:[#allocation13 + $0xa48] ss:$16 sps:$4 sm:$0xff]  }
 0x43b   : > { %6387 = vmatpush1.bf16.msra.mxu0 %v8816_v40  ;;  %6347 = vmatprep.subr.bf16.mxu1 %v8821_v24  ;;  %v8885_v40 = vld [vmem:[#allocation13 + $0xa28] ss:$16 sps:$4 sm:$0xff]   ;;  %v8890_v24 = vld [vmem:[#allocation13 + $0xa0c] ss:$16 sps:$4 sm:$0xff]  }
 0x43c   : > { %6388 = vmatprep.subr.bf16.mxu0 %v8824_v2  ;;  %v8888_v2 = vld [vmem:[#allocation13 + $0xa08] ss:$16 sps:$4 sm:$0xff]  }
 0x43e   : > { %6348 = vmatpush2.bf16.msra.mxu1 %v8819_v48  ;;  %v8893_v48 = vld [vmem:[#allocation13 + $0xbec] ss:$16 sps:$4 sm:$0xff]  }
 0x43f   : > { %6389 = vmatpush2.bf16.msra.mxu0 %v8822_v4  ;;  %6349 = vmatprep.subr.bf16.mxu1 %v8827_v31  ;;  %v8891_v4 = vld [vmem:[#allocation13 + $0xbe8] ss:$16 sps:$4 sm:$0xff]   ;;  %v8896_v31 = vld [vmem:[#allocation13 + $0xbcc] ss:$16 sps:$4 sm:$0xff]  }
 0x440   : > { %6390 = vmatprep.subr.bf16.mxu0 %v8830_v50  ;;  %v8894_v50 = vld [vmem:[#allocation13 + $0xbc8] ss:$16 sps:$4 sm:$0xff]  }
 0x442   : > { %6350 = vmatpush2.bf16.msra.mxu1 %v8825_v32  ;;  %v8899_v32 = vld [vmem:[#allocation13 + $0xbac] ss:$16 sps:$4 sm:$0xff]  }
 0x443   : > { %6391 = vmatpush2.bf16.msra.mxu0 %v8828_v59  ;;  %6351 = vmatprep.subr.bf16.mxu1 %v8833_v46  ;;  %v8897_v59 = vld [vmem:[#allocation13 + $0xba8] ss:$16 sps:$4 sm:$0xff]   ;;  %v8902_v46 = vld [vmem:[#allocation13 + $0xb8c] ss:$16 sps:$4 sm:$0xff]  }
 0x444   : > { %6392 = vmatprep.subr.bf16.mxu0 %v8836_v33  ;;  %v8900_v33 = vld [vmem:[#allocation13 + $0xb88] ss:$16 sps:$4 sm:$0xff]  }
 0x446   : > { %6352 = vmatpush2.bf16.msra.mxu1 %v8831_v37  ;;  %v8905_v37 = vld [vmem:[#allocation13 + $0xb6c] ss:$16 sps:$4 sm:$0xff]  }
 0x447   : > { %6393 = vmatpush2.bf16.msra.mxu0 %v8834_v63  ;;  %6353 = vmatprep.subr.bf16.mxu1 %v8839_v12  ;;  %v8903_v63 = vld [vmem:[#allocation13 + $0xb68] ss:$16 sps:$4 sm:$0xff]   ;;  %v8908_v12 = vld [vmem:[#allocation13 + $0xb4c] ss:$16 sps:$4 sm:$0xff]  }
 0x448   : > { %6394 = vmatprep.subr.bf16.mxu0 %v8842_v55  ;;  %v8906_v55 = vld [vmem:[#allocation13 + $0xb48] ss:$16 sps:$4 sm:$0xff]  }
 0x44a   : > { %6354 = vmatpush2.bf16.msra.mxu1 %v8837_v13  ;;  %v8911_v13 = vld [vmem:[#allocation13 + $0xb2c] ss:$16 sps:$4 sm:$0xff]  }
 0x44b   : > { %6395 = vmatpush2.bf16.msra.mxu0 %v8840_v17  ;;  %6355 = vmatprep.subr.bf16.mxu1 %v8845_v44  ;;  %v8909_v17 = vld [vmem:[#allocation13 + $0xb28] ss:$16 sps:$4 sm:$0xff]   ;;  %v8914_v44 = vld [vmem:[#allocation13 + $0xb0c] ss:$16 sps:$4 sm:$0xff]  }
 0x44c   : > { %6396 = vmatprep.subr.bf16.mxu0 %v8848_v45  ;;  %v8912_v45 = vld [vmem:[#allocation13 + $0xb08] ss:$16 sps:$4 sm:$0xff]  }
 0x44e   : > { %6356 = vmatpush2.bf16.msra.mxu1 %v8843_v21 }
 0x44f   : > { %6397 = vmatpush2.bf16.msra.mxu0 %v8846_v23  ;;  %6357 = vmatprep.subr.bf16.mxu1 %v8851_v9 }
 0x450   : > { %6398 = vmatprep.subr.bf16.mxu0 %v8854_v36 }
 0x452   : > { %6358 = vmatpush2.bf16.msra.mxu1 %v8849_v8 }
 0x453   : > { %6399 = vmatpush2.bf16.msra.mxu0 %v8852_v30  ;;  %6359 = vmatprep.subr.bf16.mxu1 %v8857_v56 }
 0x454   : > { %6400 = vmatprep.subr.bf16.mxu0 %v8860_v53 }
 0x456   : > { %6360 = vmatpush2.bf16.msra.mxu1 %v8855_v38 }
 0x457   : > { %6401 = vmatpush2.bf16.msra.mxu0 %v8858_v39  ;;  %6361 = vmatprep.subr.bf16.mxu1 %v8863_v15 }
 0x458   : > { %6402 = vmatprep.subr.bf16.mxu0 %v8866_v62 }
 0x45a   : > { %6362 = vmatpush2.bf16.msra.mxu1 %v8861_v42 }
 0x45b   : > { %6403 = vmatpush2.bf16.msra.mxu0 %v8864_v3  ;;  %6413 = vmatprep.subr.bf16.mxu1 %v8869_v41 }
 0x45d   : > { %v4698_v43 = vpop.f32.mrf.mxu1  ;;  %v5379_v7 = vpop.f32.mrf.mxu0  ;;  %6364 = vmatmul.mubr.bf16.vlgmr.msra.gmra.mxu1 %v5644_v27 }
 0x45e   : > { %v10072_v51 = vadd.f32 %v4698_v43, %v10048_v19  ;;  %v10075_v20 = vadd.f32 %v5379_v7, %v10057_v25  ;;  %6405 = vmatmul.mubr.bf16.vlgmr.msra.gmra.mxu0 %v5642_v14  ;;  %6414 = vmatpush1.bf16.msra.mxu1 %v8867_v57 }
 0x45f   : > { %6445 = vmatprep.mubr.bf16.mxu1 %v5645_v22  ;;  %v4700_v60 = vpop.f32.mrf.mxu1  ;;  %v5381_v61 = vpop.f32.mrf.mxu0  ;;  %6415 = vmatprep.subr.bf16.mxu1 %v8872_v49  ;;  %v8881_v22 = vld [vmem:[#allocation13 + $0xa6c] ss:$16 sps:$4 sm:$0xff]  }
 0x460   : > { %v10082_v28 = vadd.f32 %v4700_v60, %v10061_v29  ;;  %v10085_v19 = vadd.f32 %v5381_v61, %v10066_v16  ;;  %v8884_v29 = vld [vmem:[#allocation13 + $0xa4c] ss:$16 sps:$4 sm:$0xff]   ;;  %v6484_v60 = vld [vmem:[#allocation16] sm:$0xf] }
 0x461   : > { %v4702_v25 = vpop.f32.mrf.mxu1  ;;  %v5383_v0 = vpop.f32.mrf.mxu0  ;;  %v8887_v16 = vld [vmem:[#allocation13 + $0xa2c] ss:$16 sps:$4 sm:$0xff]  }
 0x462   : > { %6416 = vmatpush1.bf16.msra.mxu1 %v8870_v54  ;;  %v6489_v0 = vrot.slane %v6484_v60, %v9907_v58 }
 0x463   : > { %v4703_v14 = vpop.f32.mrf.mxu1  ;;  %v5384_v11 = vpop.f32.mrf.mxu0  ;;  %6417 = vmatprep.subr.bf16.mxu1 %v8875_v26 }
 0x466   : > { %6418 = vmatpush1.bf16.msra.mxu1 %v8873_v47 }
 0x467   : > { %6419 = vmatprep.subr.bf16.mxu1 %v8878_v34 }
 0x46a   : > { %6420 = vmatpush1.bf16.msra.mxu1 %v8876_v6 }
 0x46b   : > { %6421 = vmatprep.subr.bf16.mxu1 %v8881_v22 }
 0x46e   : > { %6422 = vmatpush1.bf16.msra.mxu1 %v8879_v35  ;;  %v6493_v35 = vrot.slane %v6484_v60, %v9915_v1 }
 0x46f   : > { %6423 = vmatprep.subr.bf16.mxu1 %v8884_v29 }
 0x472   : > { %6424 = vmatpush1.bf16.msra.mxu1 %v8882_v52 }
 0x473   : > { %6425 = vmatprep.subr.bf16.mxu1 %v8887_v16 }
 0x476   : > { %6426 = vmatpush1.bf16.msra.mxu1 %v8885_v40 }
 0x477   : > { %6427 = vmatprep.subr.bf16.mxu1 %v8890_v24 }
 0x47a   : > { %6428 = vmatpush1.bf16.msra.mxu1 %v8888_v2  ;;  %v8915_v2 = vld [vmem:[%s9715_s28] sm:$0xff] }
 0x47b   : > { %6429 = vmatprep.subr.bf16.mxu1 %v8893_v48 }
 0x47e   : > { %6430 = vmatpush2.bf16.msra.mxu1 %v8891_v4  ;;  %v8916_v4 = vld [vmem:[%s9715_s28 + $0x8] sm:$0xff] }
 0x47f   : > { %6431 = vmatprep.subr.bf16.mxu1 %v8896_v31 }
 0x482   : > { %6432 = vmatpush2.bf16.msra.mxu1 %v8894_v50 }
 0x483   : > { %6433 = vmatprep.subr.bf16.mxu1 %v8899_v32 }
 0x486   : > { %6434 = vmatpush2.bf16.msra.mxu1 %v8897_v59 }
 0x487   : > { %6435 = vmatprep.subr.bf16.mxu1 %v8902_v46 }
 0x48a   : > { %6436 = vmatpush2.bf16.msra.mxu1 %v8900_v33  ;;  %v6497_v33 = vrot.slane %v6484_v60, %v9969_v5 }
 0x48b   : > { %6437 = vmatprep.subr.bf16.mxu1 %v8905_v37 }
 0x48e   : > { %6438 = vmatpush2.bf16.msra.mxu1 %v8903_v63 }
 0x48f   : > { %6439 = vmatprep.subr.bf16.mxu1 %v8908_v12 }
 0x492   : > { %6440 = vmatpush2.bf16.msra.mxu1 %v8906_v55 }
 0x493   : > { %6441 = vmatprep.subr.bf16.mxu1 %v8911_v13 }
 0x496   : > { %6442 = vmatpush2.bf16.msra.mxu1 %v8909_v17  ;;  %v6501_v17 = vrot.slane %v6484_v60, %v9972_v18 }
 0x497   : > { %6443 = vmatprep.subr.bf16.mxu1 %v8914_v44 }
 0x49a   : > { %6444 = vmatpush2.bf16.msra.mxu1 %v8912_v45 }
 0x49d   : > { %v5420_v21 = vpop.f32.mrf.mxu1  ;;  %6446 = vmatmul.mubr.bf16.vlgmr.msra.gmra.mxu1 %v5644_v27 }
 0x49e   : > { %v5421_v23 = vadd.f32 %v5420_v21, %v10075_v20  ;;  %v5461_v9 = vpop.f32.mrf.mxu0  ;;  %v6458_v20 = vld [vmem:[#allocation14] sm:$0xf] }
 0x49f   : > { %v5462_v36 = vadd.f32 %v5461_v9, %v10072_v51  ;;  %v5422_v8 = vpop.f32.mrf.mxu1  ;;  %v6463_v26 = vrot.slane %v6458_v20, %v9907_v58  ;;  %v6467_v14 = vrot.slane %v6458_v20, %v9915_v1  ;;  %v6471_v32 = vrot.slane %v6458_v20, %v9969_v5  ;;  %v8917_v5 = vld [vmem:[%s9715_s28 + $0x10] sm:$0xff] }
 0x4a0   : > { %v5423_v30 = vadd.f32 %v5422_v8, %v10085_v19  ;;  %v5463_v56 = vpop.f32.mrf.mxu0  ;;  %v6475_v63 = vrot.slane %v6458_v20, %v9972_v18 }
 0x4a1   : > { %v5464_v53 = vadd.f32 %v5463_v56, %v10082_v28  ;;  %v5424_v38 = vpop.f32.mrf.mxu1 }
 0x4a2   : > { %v5465_v39 = vpop.f32.mrf.mxu0 }
 0x4a3   : > { %v5425_v15 = vpop.f32.mrf.mxu1 }
 0x4a4   : > { %v5466_v62 = vpop.f32.mrf.mxu0 }
 0x4dd   : > { %v5502_v42 = vpop.f32.mrf.mxu1 }
 0x4de   : > { %v5503_v3 = vadd.f32 %v5502_v42, %v5462_v36  ;;  %v6324_v41 = vpop.f32.mrf.mxu0  ;;  %v8918_v36 = vld [vmem:[%s9715_s28 + $0x18] sm:$0xff] }
 0x4df   : > { %v5504_v10 = vpop.f32.mrf.mxu1 }
 0x4e0   : > { %v5505_v57 = vadd.f32 %v5504_v10, %v5464_v53  ;;  %v6326_v27 = vpop.f32.mrf.mxu0 }
 0x4e1   : > { %v5506_v49 = vpop.f32.mrf.mxu1 }
 0x4e2   : > { %v6328_v43 = vpop.f32.mrf.mxu0 }
 0x4e3   : > { %v5507_v7 = vpop.f32.mrf.mxu1 }
 0x4e4   : > { %v6329_v51 = vpop.f32.mrf.mxu0 }
 0x51d   : > { %v6365_v54 = vpop.f32.mrf.mxu1 }
 0x51e   : > { %v6366_v61 = vadd.f32 %v6365_v54, %v6324_v41  ;;  %v6406_v28 = vpop.f32.mrf.mxu0 }
 0x51f   : > { %v6367_v19 = vpop.f32.mrf.mxu1 }
 0x520   : > { %v6454_v25 = vadd.f32 %v6366_v61, %v5421_v23  ;;  %v6368_v47 = vadd.f32 %v6367_v19, %v6326_v27  ;;  %v6408_v11 = vpop.f32.mrf.mxu0 }
 0x521   : > { %v6369_v34 = vpop.f32.mrf.mxu1 }
 0x522   : > { %v6480_v6 = vmul.f32 %v6463_v26, %v6454_v25  ;;  %v6455_v22 = vadd.f32 %v6368_v47, %v5423_v30  ;;  %v6410_v29 = vpop.f32.mrf.mxu0 }
 0x523   : > { %v6370_v52 = vpop.f32.mrf.mxu1 }
 0x524   : > { %v6506_v16 = vadd.f32 %v6489_v0, %v6480_v6  ;;  %v6481_v40 = vmul.f32 %v6467_v14, %v6455_v22  ;;  %v6411_v24 = vpop.f32.mrf.mxu0 }
 0x526   : > { %v6510_v58 = vadd.f32 %v8915_v2, %v6506_v16  ;;  %v6507_v48 = vadd.f32 %v6493_v35, %v6481_v40 }
 0x528   : > { %6514 = vst [vmem:[%s10100_s14] sm:$0xff] %v6510_v58  ;;  %v6511_v31 = vadd.f32 %v8916_v4, %v6507_v48 }
 0x52a   : > { %6515 = vst [vmem:[%s10100_s14 + $0x8] sm:$0xff] %v6511_v31 }
 0x55d   : > { %v6447_v1 = vpop.f32.mrf.mxu1 }
 0x55e   : > { %v6448_v50 = vadd.f32 %v6447_v1, %v6406_v28 }
 0x55f   : > { %v6449_v59 = vpop.f32.mrf.mxu1 }
 0x560   : > { %v6456_v46 = vadd.f32 %v6448_v50, %v5503_v3  ;;  %v6450_v37 = vadd.f32 %v6449_v59, %v6408_v11 }
 0x561   : > { %v6451_v12 = vpop.f32.mrf.mxu1 }
 0x562   : > { %v6482_v55 = vmul.f32 %v6471_v32, %v6456_v46  ;;  %v6457_v13 = vadd.f32 %v6450_v37, %v5505_v57 }
 0x563   : > { %v6452_v44 = vpop.f32.mrf.mxu1 }
 0x564   : > { %v6508_v45 = vadd.f32 %v6497_v33, %v6482_v55  ;;  %v6483_v21 = vmul.f32 %v6475_v63, %v6457_v13 }
 0x566   : > { %v6512_v23 = vadd.f32 %v8917_v5, %v6508_v45  ;;  %v6509_v9 = vadd.f32 %v6501_v17, %v6483_v21 }
 0x568   : > { %6516 = vst [vmem:[%s10100_s14 + $0x10] sm:$0xff] %v6512_v23  ;;  %v6513_v8 = vadd.f32 %v8918_v36, %v6509_v9 }
 0x56a   : > { %6517 = vst [vmem:[%s10100_s14 + $0x18] sm:$0xff] %v6513_v8 }
 0x56b   : > { %9172 = shalt.err (!%p9169_p1)
}
 0x56c   : > { %s9173_s28 = scalar_lea.hbm %s6533_s1, 512  ;;  %s9177_s29 = scalar_lea.hbm %s10302_s23, 2048 }
 0x56d   : > { %p9174_p3 = scmp.ne.s32.totalorder %s6533_s1, %s9173_s28  ;;  %p9178_p10 = scmp.lt.s32.totalorder %s6533_s1, %s10302_s23 }
 0x56e   : > { %p9179_p11 = scmp.lt.s32.totalorder %s9177_s29, %s9173_s28 }
 0x56f   : > { %p9175_p4 = pnand %p9174_p3, %p10303_p2 }
 0x570   : > { %p9180_p7 = por %p9179_p11, %p9178_p10 }
 0x571   : > { %p9176_p5 = pneg %p9175_p4 }
 0x573   : > { %p9181_p9 = pnand %p9180_p7, %p9176_p5 }
 0x575   : > { %9184 = shalt.err (!%p9181_p9)
}
 0x576   : > { %7594 = dma.vmem_to_hbm [thread:$0]  (%p10303_p2), %s6536_s18, 512, %s6533_s1, %s6519_s25  }
 0x577 PF: > { %p7642_p13 = scmp.ge.s32.totalorder %s9327_s22, 2  ;;  %s6547_s30 = sand.u32 1, %s9299_s15  }
 0x578   : > { %p10304_p0 = scmp.ne.s32.totalorder %s10262_s13, 0  ;;  %s6548_s4 = scalar_lea.sflag [#allocation4], %s6547_s30 }
 0x57a   : > { %p7626_p6 = pnand %p7642_p13, %p10304_p0 }
 0x57c   : > { %p7627_p8 = pneg %p7626_p6 }
 0x57e   : > { %9266 = dma.done.wait (%p7627_p8), %s6548_s4, 512  }
 0x57f   : > { %9268 = vsyncadd (%p7627_p8), %s6548_s4, 4294966784  ;;  %s31_s22 = sadd.s32 1, %s9327_s22   ;;  %s10306_s30 = sld [smem:[#allocation26_spill]] }
 0x580   : > { %p10137_p12 = scmp.ge.s32.totalorder %s31_s22, 6   ;;  %s10307_s12 = sld [smem:[#allocation27_spill]] }
 0x581   : > { %s10308_s13 = sld [smem:[#allocation28_spill]]  ;;  %s10313_s10 = smov %s9283_s11 }
 0x582   : > { %s10309_s14 = sld [smem:[#allocation35_spill]]  ;;  %s10314_s11 = smov %s9685_s3 }
 0x583   : > { %s10310_s2 = sld [smem:[#allocation32_spill]]  ;;  %s10315_s15 = smov %s9303_s16 }
 0x584   : > { %s10311_s1 = sld [smem:[#allocation33_spill]]  ;;  %s10316_s16 = smov %s9307_s17 }
 0x585   : > { %s10317_s17 = smov %s9622_s7  ;;  %s10318_s18 = smov %s9319_s20 }
 0x586   : > { %s10319_s19 = smov %s9323_s21  ;;  %30 = sbr.rel (!%p10137_p12) target bundleno = 24 (0x18), region = 153 }
 0x589   : > { %s10320_s20 = smov %s10310_s2 }
 0x58a   : > { %s10321_s21 = smov %s10311_s1 }
 0x58b   :  { %6553 = vsyncpa [#allocation3], 1 }
 0x58c   :  { %6555 = vsyncpa [#allocation3 + $0x1], 1 }
 0x58d   :  { %6556 = vsyncpa [#allocation6], 1 }
 0x58e   :  { %6558 = vsyncpa [#allocation6 + $0x1], 1 }
 0x58f   :  { %6559 = vsyncpa [#allocation9], 1 }
 0x590   :  { %6560 = vsyncpa [#allocation12], 1 }
 0x591   :  { %6561 = vsyncpa [#allocation15], 1 }
 0x592   :  { %6562 = vsyncpa [#allocation4], 1 }
 0x593   :  { %6564 = vsyncpa [#allocation4 + $0x1], 1 }

</bundles_post_ra>
